<compile_context>
chip_gen: v7x
topology: tpu7x:2x2x1
jax: 0.10.0
libtpu: 0.0.40
codegen_flags: <defaults>
</compile_context>

<pallas_src>
import math
import functools

import jax
import jax.numpy as jnp
from jax import lax
from jax.experimental import pallas as pl
from jax.experimental.pallas import tpu as pltpu


_INV_SQRT2 = 1.0 / math.sqrt(2.0)


@functools.lru_cache(maxsize=1)
def _vmem_limit_bytes():
    # ~half of physical VMEM: 64 MiB on 128 MiB parts (v5e/v6e), 32 MiB on v7x.
    try:
        cap = int(pltpu.get_tpu_info().vmem_capacity_bytes)
        return int(min(96 << 20, max(32 << 20, cap // 2)))
    except Exception:
        return 32 << 20


def _cparams():
    return pltpu.CompilerParams(
        dimension_semantics=("parallel",),          # lets v7x megacore shard the grid
        vmem_limit_bytes=_vmem_limit_bytes())


def _row_tile(n, target=2048):
    """Largest multiple-of-8 row tile <= target, always giving >=2 grid steps when possible
    (v7x has 2 TensorCores; a 1-step grid leaves half the chip idle)."""
    if n <= 8:
        return n
    half = max(8, ((n // 2) // 8) * 8)
    return min(target, half)


# ------------- fused LayerNorm + 1x1 conv (all output channel groups in one matmul) ---------

def _ln_matmul_kernel(x_ref, g_ref, b_ref, w_ref, o_ref):
    # x: (TM, C) f32; g,b: (1, C) f32; w: (C, Cout_total) bf16; o: (TM, Cout_total) bf16
    x = x_ref[...]
    mu = jnp.mean(x, axis=-1, keepdims=True)
    xc = x - mu
    var = jnp.mean(xc * xc, axis=-1, keepdims=True)            # unbiased=False
    y = xc * lax.rsqrt(var + 1e-5)                             # EUP rsqrt
    y = (y * g_ref[...] + b_ref[...]).astype(jnp.bfloat16)
    o_ref[...] = jnp.dot(y, w_ref[...],
                         preferred_element_type=jnp.float32).astype(o_ref.dtype)


def ln_conv1x1(x2d, gamma1c, beta1c, w):
    """WithBias LayerNorm over channels + 1x1 conv.  (N, C) f32 -> (N, Cout_total) bf16.
    All output channel groups (q|k|v or x1|x2) stay merged on the lane axis."""
    N, C = x2d.shape
    Cout = w.shape[1]
    tm = _row_tile(N)
    return pl.pallas_call(
        _ln_matmul_kernel,
        grid=(pl.cdiv(N, tm),),
        out_shape=jax.ShapeDtypeStruct((N, Cout), jnp.bfloat16),
        in_specs=[pl.BlockSpec((tm, C), lambda i: (i, 0)),
                  pl.BlockSpec((1, C), lambda i: (0, 0)),
                  pl.BlockSpec((1, C), lambda i: (0, 0)),
                  pl.BlockSpec((C, Cout), lambda i: (0, 0))],
        out_specs=pl.BlockSpec((tm, Cout), lambda i: (i, 0)),
        compiler_params=_cparams(),
    )(x2d, gamma1c, beta1c, w)


# ------------------------------- depthwise 3x3 conv -----------------------------------------

def _dwconv3_kernel(x_ref, w_ref, o_ref, xp_ref):
    # x: (1, H, W, Ct) bf16; w: (3, 3, Ct) f32; o: (1, H, W, Ct) bf16
    # xp scratch: (1, H+2, W+2, Ct) f32 -> zero halo lives in VMEM, no HBM pad round trip.
    H, W = o_ref.shape[1], o_ref.shape[2]
    xp_ref[...] = jnp.zeros_like(xp_ref)
    xp_ref[:, 1:H + 1, 1:W + 1, :] = x_ref[...].astype(jnp.float32)
    w = w_ref[...]
    acc = jnp.zeros(o_ref.shape, jnp.float32)
    for dj in range(3):                                   # only 3 sublane (W) shifts,
        col = xp_ref[:, :, dj:dj + W, :]                  # reused across the 3 row taps
        for di in range(3):
            acc = acc + col[:, di:di + H] * w[di, dj][None, None, None, :]
    o_ref[...] = acc.astype(o_ref.dtype)


def dwconv3x3(x_bhwc, w_33c):
    """Depthwise 3x3 (stride 1, pad 1, no bias) over all Ct channels of each image."""
    B, H, W, Ct = x_bhwc.shape
    # TODO(synk): tile over H (with halo exchange) for very large images on v7x's 64 MiB VMEM.
    return pl.pallas_call(
        _dwconv3_kernel,
        grid=(B,),
        out_shape=jax.ShapeDtypeStruct((B, H, W, Ct), jnp.bfloat16),
        in_specs=[pl.BlockSpec((1, H, W, Ct), lambda b: (b, 0, 0, 0)),
                  pl.BlockSpec((3, 3, Ct), lambda b: (0, 0, 0))],
        out_specs=pl.BlockSpec((1, H, W, Ct), lambda b: (b, 0, 0, 0)),
        scratch_shapes=[pltpu.VMEM((1, H + 2, W + 2, Ct), jnp.float32)],
        compiler_params=_cparams(),
    )(x_bhwc, w_33c)


# -------- channel attention (MDTA), project_out folded into attn matrix, + residual ---------

def _chan_attn_kernel(qkv_ref, xres_ref, scale_ref, w_ref, o_ref):
    # qkv: (1, HW, 3C) bf16 with lanes [q | k | v]; xres: (1, HW, C) f32
    # scale: (C, C) f32 block-diagonal per-head mask with temperature folded in
    # w: (C, C) bf16 project_out; o: (1, HW, C) f32
    C = w_ref.shape[0]
    qkv = qkv_ref[0]
    q = qkv[:, 0:C].astype(jnp.float32)
    k = qkv[:, C:2 * C].astype(jnp.float32)
    v = qkv[:, 2 * C:3 * C]                                   # stays bf16 for the MXU
    # F.normalize(dim=-1) over tokens per channel, eps=1e-12:
    #   x / max(||x||, 1e-12) == x * rsqrt(max(||x||^2, 1e-24))
    qn = (q * lax.rsqrt(jnp.maximum(jnp.sum(q * q, axis=0, keepdims=True), 1e-24))
          ).astype(jnp.bfloat16)
    kn = (k * lax.rsqrt(jnp.maximum(jnp.sum(k * k, axis=0, keepdims=True), 1e-24))
          ).astype(jnp.bfloat16)
    # Full channel Gram contracting over tokens; cross-head entries are killed by the
    # block-diagonal scale mask (+ ReLU).  For small head dim this beats per-head matmuls.
    gram = lax.dot_general(qn, kn, (((0,), (0,)), ((), ())),
                           preferred_element_type=jnp.float32)            # (C, C)
    attn = jnp.maximum(gram * scale_ref[...], 0.0)                        # relu activation
    # Fold project_out:  out = (v @ attn^T) @ W_out = v @ (attn^T @ W_out) = v @ M
    m = lax.dot_general(attn.astype(jnp.bfloat16), w_ref[...],
                        (((0,), (0,)), ((), ())),
                        preferred_element_type=jnp.float32)               # (C, C), tiny
    out = jnp.dot(v, m.astype(jnp.bfloat16),
                  preferred_element_type=jnp.float32)                     # (HW, C)
    o_ref[0] = (out + xres_ref[0]).astype(o_ref.dtype)


def channel_attention(qkv_b, x_res, scale_mat, w_out):
    # qkv_b: (B, HW, 3C) bf16; x_res: (B, HW, C) f32
    B, HW, C3 = qkv_b.shape
    C = C3 // 3
    # TODO(synk): for very large HW, tile the token axis (accumulate Gram / ||q||,||k|| over
    # token tiles, apply M in a second pass) to stay within v7x's 64 MiB VMEM.
    return pl.pallas_call(
        _chan_attn_kernel,
        grid=(B,),
        out_shape=jax.ShapeDtypeStruct((B, HW, C), jnp.float32),
        in_specs=[pl.BlockSpec((1, HW, C3), lambda b: (b, 0, 0)),
                  pl.BlockSpec((1, HW, C), lambda b: (b, 0, 0)),
                  pl.BlockSpec((C, C), lambda b: (0, 0)),
                  pl.BlockSpec((C, C), lambda b: (0, 0))],
        out_specs=pl.BlockSpec((1, HW, C), lambda b: (b, 0, 0)),
        compiler_params=_cparams(),
    )(qkv_b, x_res, scale_mat, w_out)


# ------------- GDFN gate fused with project_out + residual (token-tiled) --------------------

def _gate_proj_res_kernel(h_ref, xres_ref, w_ref, o_ref):
    # h: (TM, 2*hidden) bf16 with lanes [x1 | x2]; xres: (TM, C) f32; w: (hidden, C) bf16
    Hf = w_ref.shape[0]
    h = h_ref[...]
    x1 = h[:, 0:Hf].astype(jnp.float32)
    x2 = h[:, Hf:2 * Hf].astype(jnp.float32)
    g = 0.5 * x1 * (1.0 + lax.erf(x1 * _INV_SQRT2))           # exact (erf) GELU
    g = (g * x2).astype(jnp.bfloat16)
    y = jnp.dot(g, w_ref[...], preferred_element_type=jnp.float32)
    o_ref[...] = (y + xres_ref[...]).astype(o_ref.dtype)


def gdfn_gate_project_residual(h2d, x_res, w_out):
    N, H2 = h2d.shape
    Hf, C = w_out.shape
    tm = _row_tile(N)
    return pl.pallas_call(
        _gate_proj_res_kernel,
        grid=(pl.cdiv(N, tm),),
        out_shape=jax.ShapeDtypeStruct((N, C), jnp.float32),
        in_specs=[pl.BlockSpec((tm, H2), lambda i: (i, 0)),
                  pl.BlockSpec((tm, C), lambda i: (i, 0)),
                  pl.BlockSpec((Hf, C), lambda i: (0, 0))],
        out_specs=pl.BlockSpec((tm, C), lambda i: (i, 0)),
        compiler_params=_cparams(),
    )(h2d, x_res, w_out)


# ------------------------------------ parameters --------------------------------------------

def init_params(key, dim, num_heads, ffn_expansion_factor=2.0):
    hidden = int(dim * ffn_expansion_factor)
    ks = jax.random.split(key, 6)
    s = 0.05
    return dict(
        ln3_w=jnp.ones((dim,), jnp.float32),
        ln3_b=jnp.zeros((dim,), jnp.float32),
        ln4_w=jnp.ones((dim,), jnp.float32),
        ln4_b=jnp.zeros((dim,), jnp.float32),
        temperature=jnp.ones((num_heads,), jnp.float32),
        w_qkv=s * jax.random.normal(ks[0], (dim, 3 * dim), jnp.float32),          # qkv 1x1
        w_qkv_dw=s * jax.random.normal(ks[1], (3, 3, 3 * dim), jnp.float32),      # qkv dw 3x3
        w_attn_out=s * jax.random.normal(ks[2], (dim, dim), jnp.float32),         # project_out
        w_ffn_in=s * jax.random.normal(ks[3], (dim, 2 * hidden), jnp.float32),    # project_in
        w_ffn_dw=s * jax.random.normal(ks[4], (3, 3, 2 * hidden), jnp.float32),   # GDFN dw 3x3
        w_ffn_out=s * jax.random.normal(ks[5], (hidden, dim), jnp.float32),       # project_out
    )


def prepare_params(params, dim, num_heads):
    """One-time weight prep (bf16 casts, LN param reshape, per-head scale mask) hoisted out
    of the per-call forward.  Channel groups stay merged on the lane axis in PyTorch order."""
    ch = dim // num_heads
    head_id = jnp.arange(dim) // ch
    same_head = head_id[:, None] == head_id[None, :]
    scale_mat = jnp.where(same_head, params['temperature'][head_id][:, None],
                          0.0).astype(jnp.float32)                                 # (C, C)
    return dict(
        ln3_w=params['ln3_w'].reshape(1, dim).astype(jnp.float32),
        ln3_b=params['ln3_b'].reshape(1, dim).astype(jnp.float32),
        ln4_w=params['ln4_w'].reshape(1, dim).astype(jnp.float32),
        ln4_b=params['ln4_b'].reshape(1, dim).astype(jnp.float32),
        scale_mat=scale_mat,
        w_qkv=params['w_qkv'].astype(jnp.bfloat16),                                # (C, 3C)
        w_qkv_dw=params['w_qkv_dw'].astype(jnp.float32),                           # (3,3,3C)
        w_attn_out=params['w_attn_out'].astype(jnp.bfloat16),                      # (C, C)
        w_ffn_in=params['w_ffn_in'].astype(jnp.bfloat16),                          # (C, 2*hid)
        w_ffn_dw=params['w_ffn_dw'].astype(jnp.float32),                           # (3,3,2*hid)
        w_ffn_out=params['w_ffn_out'].astype(jnp.bfloat16),                        # (hid, C)
    )


# ------------------------------------ forward glue ------------------------------------------

def sparse_attention_layer_block(x_nchw, prep):
    B, C, H, W = x_nchw.shape
    hidden = prep['w_ffn_out'].shape[0]
    N = B * H * W
    HW = H * W

    x_tok = jnp.transpose(x_nchw, (0, 2, 3, 1)).reshape(N, C)     # f32 residual stream

    # ---- x = restormer_attn(norm3(x)) + x ----
    qkv = ln_conv1x1(x_tok, prep['ln3_w'], prep['ln3_b'], prep['w_qkv'])          # (N, 3C) bf16
    qkv = dwconv3x3(qkv.reshape(B, H, W, 3 * C), prep['w_qkv_dw'])                # (B,H,W,3C) bf16
    x_tok = channel_attention(qkv.reshape(B, HW, 3 * C),
                              x_tok.reshape(B, HW, C),
                              prep['scale_mat'], prep['w_attn_out']).reshape(N, C)

    # ---- x = restormer_ffn(norm4(x)) + x  (GDFN) ----
    h = ln_conv1x1(x_tok, prep['ln4_w'], prep['ln4_b'], prep['w_ffn_in'])         # (N, 2*hid) bf16
    h = dwconv3x3(h.reshape(B, H, W, 2 * hidden), prep['w_ffn_dw'])               # bf16
    x_tok = gdfn_gate_project_residual(h.reshape(N, 2 * hidden), x_tok, prep['w_ffn_out'])

    return jnp.transpose(x_tok.reshape(B, H, W, C), (0, 3, 1, 2))                 # back to NCHW


# --------------------------------------- main ------------------------------------------------

if __name__ == "__main__":
    key = jax.random.PRNGKey(0)
    kx, kp = jax.random.split(key)

    B, C, H, W = 2, 24, 8, 8          # dim=24 divisible by restormer_num_heads=6
    num_heads = 6

    x = jax.random.normal(kx, (B, C, H, W), jnp.float32)
    params = init_params(kp, C, num_heads, ffn_expansion_factor=2.0)
    prep = prepare_params(params, C, num_heads)        # one-time weight re-layout

    fwd = jax.jit(sparse_attention_layer_block)
    out = jax.block_until_ready(fwd(x, prep))
    assert out.shape == (B, C, H, W) and bool(jnp.all(jnp.isfinite(out)))
    print("KERNEL_OK")
</pallas_src>

<mosaic_0001>
module attributes {stable_mosaic.version = 11 : i64} {
  func.func @_chan_attn_kernel(%arg0: i32, %arg1: memref<1x64x72xbf16, #tpu.memory_space<vmem>>, %arg2: memref<1x64x24xf32, #tpu.memory_space<vmem>>, %arg3: memref<24x24xf32, #tpu.memory_space<vmem>>, %arg4: memref<24x24xbf16, #tpu.memory_space<vmem>>, %arg5: memref<1x64x24xf32, #tpu.memory_space<vmem>>) attributes {dimension_semantics = [#tpu.dimension_semantics<parallel>], iteration_bounds = array<i64: 2>, scalar_prefetch = 0 : i64, scratch_operands = 0 : i64, tpu.core_type = #tpu.core_type<tc>, window_params = [{transform_indices = @transform_0, window_bounds = array<i64: 1, 64, 72>}, {transform_indices = @transform_1, window_bounds = array<i64: 1, 64, 24>}, {pipeline_mode = #tpu.pipeline_mode<synchronous>, transform_indices = @transform_2, window_bounds = array<i64: 24, 24>}, {pipeline_mode = #tpu.pipeline_mode<synchronous>, transform_indices = @transform_3, window_bounds = array<i64: 24, 24>}, {transform_indices = @transform_4, window_bounds = array<i64: 1, 64, 24>}]} {
    %c0 = arith.constant 0 : index
    %c0_0 = arith.constant 0 : index
    %c0_1 = arith.constant 0 : index
    %0 = vector.load %arg1[%c0, %c0_0, %c0_1] : memref<1x64x72xbf16, #tpu.memory_space<vmem>>, vector<1x64x72xbf16>
    %1 = vector.shape_cast %0 : vector<1x64x72xbf16> to vector<64x72xbf16>
    %2 = vector.extract_strided_slice %1 {offsets = [0, 0], sizes = [64, 24], strides = [1, 1]} : vector<64x72xbf16> to vector<64x24xbf16>
    %3 = arith.extf %2 : vector<64x24xbf16> to vector<64x24xf32>
    %4 = vector.extract_strided_slice %1 {offsets = [0, 24], sizes = [64, 24], strides = [1, 1]} : vector<64x72xbf16> to vector<64x24xbf16>
    %5 = arith.extf %4 : vector<64x24xbf16> to vector<64x24xf32>
    %6 = vector.extract_strided_slice %1 {offsets = [0, 48], sizes = [64, 24], strides = [1, 1]} : vector<64x72xbf16> to vector<64x24xbf16>
    %7 = arith.mulf %3, %3 : vector<64x24xf32>
    %cst = arith.constant dense<0.000000e+00> : vector<24xf32>
    %8 = vector.multi_reduction <add>, %7, %cst [0] : vector<64x24xf32> to vector<24xf32>
    %9 = vector.shape_cast %8 : vector<24xf32> to vector<1x24xf32>
    %cst_2 = arith.constant 1.000000e-24 : f32
    %10 = vector.broadcast %cst_2 : f32 to vector<1x24xf32>
    %11 = arith.maximumf %9, %10 : vector<1x24xf32>
    %12 = math.rsqrt %11 : vector<1x24xf32>
    %13 = vector.broadcast %12 : vector<1x24xf32> to vector<64x24xf32>
    %14 = arith.mulf %3, %13 : vector<64x24xf32>
    %15 = arith.truncf %14 : vector<64x24xf32> to vector<64x24xbf16>
    %16 = arith.mulf %5, %5 : vector<64x24xf32>
    %cst_3 = arith.constant dense<0.000000e+00> : vector<24xf32>
    %17 = vector.multi_reduction <add>, %16, %cst_3 [0] : vector<64x24xf32> to vector<24xf32>
    %18 = vector.shape_cast %17 : vector<24xf32> to vector<1x24xf32>
    %cst_4 = arith.constant 1.000000e-24 : f32
    %19 = vector.broadcast %cst_4 : f32 to vector<1x24xf32>
    %20 = arith.maximumf %18, %19 : vector<1x24xf32>
    %21 = math.rsqrt %20 : vector<1x24xf32>
    %22 = vector.broadcast %21 : vector<1x24xf32> to vector<64x24xf32>
    %23 = arith.mulf %5, %22 : vector<64x24xf32>
    %24 = arith.truncf %23 : vector<64x24xf32> to vector<64x24xbf16>
    %cst_5 = arith.constant dense<0.000000e+00> : vector<24x24xf32>
    %25 = tpu.matmul %15, %24, %cst_5 {dimension_numbers = #tpu.dot_dimension_numbers<[0], [0], [1], [1], [0, 1, 1, 1], [], []>} : vector<64x24xbf16>, vector<64x24xbf16>, vector<24x24xf32> -> vector<24x24xf32>
    %c0_6 = arith.constant 0 : index
    %c0_7 = arith.constant 0 : index
    %26 = vector.load %arg3[%c0_6, %c0_7] : memref<24x24xf32, #tpu.memory_space<vmem>>, vector<24x24xf32>
    %27 = arith.mulf %25, %26 : vector<24x24xf32>
    %cst_8 = arith.constant 0.000000e+00 : f32
    %28 = vector.broadcast %cst_8 : f32 to vector<24x24xf32>
    %29 = arith.maximumf %27, %28 : vector<24x24xf32>
    %30 = arith.truncf %29 : vector<24x24xf32> to vector<24x24xbf16>
    %c0_9 = arith.constant 0 : index
    %c0_10 = arith.constant 0 : index
    %31 = vector.load %arg4[%c0_9, %c0_10] : memref<24x24xbf16, #tpu.memory_space<vmem>>, vector<24x24xbf16>
    %cst_11 = arith.constant dense<0.000000e+00> : vector<24x24xf32>
    %32 = tpu.matmul %30, %31, %cst_11 {dimension_numbers = #tpu.dot_dimension_numbers<[0], [0], [1], [1], [0, 1, 1, 1], [], []>} : vector<24x24xbf16>, vector<24x24xbf16>, vector<24x24xf32> -> vector<24x24xf32>
    %33 = arith.truncf %32 : vector<24x24xf32> to vector<24x24xbf16>
    %cst_12 = arith.constant dense<0.000000e+00> : vector<64x24xf32>
    %34 = tpu.matmul %6, %33, %cst_12 {dimension_numbers = #tpu.dot_dimension_numbers<[1], [0], [0], [1], [0, 0, 1, 1], [], []>} : vector<64x24xbf16>, vector<24x24xbf16>, vector<64x24xf32> -> vector<64x24xf32>
    %c0_13 = arith.constant 0 : index
    %c0_14 = arith.constant 0 : index
    %c0_15 = arith.constant 0 : index
    %35 = vector.load %arg2[%c0_13, %c0_14, %c0_15] : memref<1x64x24xf32, #tpu.memory_space<vmem>>, vector<1x64x24xf32>
    %36 = vector.shape_cast %35 : vector<1x64x24xf32> to vector<64x24xf32>
    %37 = arith.addf %34, %36 : vector<64x24xf32>
    %c0_16 = arith.constant 0 : index
    %c0_17 = arith.constant 0 : index
    %c0_18 = arith.constant 0 : index
    %38 = vector.load %arg5[%c0_16, %c0_17, %c0_18] : memref<1x64x24xf32, #tpu.memory_space<vmem>>, vector<1x64x24xf32>
    %39 = vector.shape_cast %38 : vector<1x64x24xf32> to vector<64x24xf32>
    %40 = vector.shape_cast %37 : vector<64x24xf32> to vector<1x64x24xf32>
    tpu.vector_store %arg5[%c0_16, %c0_17, %c0_18], %40 {strides = array<i32>} : memref<1x64x24xf32, #tpu.memory_space<vmem>>, vector<1x64x24xf32>,
    return
  }
  func.func @transform_0(%arg0: i32) -> (i32, i32, i32) {
    %c0_i32 = arith.constant 0 : i32
    %c0_i32_0 = arith.constant 0 : i32
    %c0_i32_1 = arith.constant 0 : i32
    return %arg0, %c0_i32, %c0_i32_0 : i32, i32, i32
  }
  func.func @transform_1(%arg0: i32) -> (i32, i32, i32) {
    %c0_i32 = arith.constant 0 : i32
    %c0_i32_0 = arith.constant 0 : i32
    %c0_i32_1 = arith.constant 0 : i32
    return %arg0, %c0_i32, %c0_i32_0 : i32, i32, i32
  }
  func.func @transform_2(%arg0: i32) -> (i32, i32) {
    %c0_i32 = arith.constant 0 : i32
    %c0_i32_0 = arith.constant 0 : i32
    %c0_i32_1 = arith.constant 0 : i32
    return %c0_i32, %c0_i32_0 : i32, i32
  }
  func.func @transform_3(%arg0: i32) -> (i32, i32) {
    %c0_i32 = arith.constant 0 : i32
    %c0_i32_0 = arith.constant 0 : i32
    %c0_i32_1 = arith.constant 0 : i32
    return %c0_i32, %c0_i32_0 : i32, i32
  }
  func.func @transform_4(%arg0: i32) -> (i32, i32, i32) {
    %c0_i32 = arith.constant 0 : i32
    %c0_i32_0 = arith.constant 0 : i32
    %c0_i32_1 = arith.constant 0 : i32
    return %arg0, %c0_i32, %c0_i32_0 : i32, i32, i32
  }
}

module attributes {stable_mosaic.version = 11 : i64} {
  func.func @_ln_matmul_kernel(%arg0: i32, %arg1: memref<64x24xf32, #tpu.memory_space<vmem>>, %arg2: memref<1x24xf32, #tpu.memory_space<vmem>>, %arg3: memref<1x24xf32, #tpu.memory_space<vmem>>, %arg4: memref<24x72xbf16, #tpu.memory_space<vmem>>, %arg5: memref<64x72xbf16, #tpu.memory_space<vmem>>) attributes {dimension_semantics = [#tpu.dimension_semantics<parallel>], iteration_bounds = array<i64: 2>, scalar_prefetch = 0 : i64, scratch_operands = 0 : i64, tpu.core_type = #tpu.core_type<tc>, window_params = [{transform_indices = @transform_0, window_bounds = array<i64: 64, 24>}, {pipeline_mode = #tpu.pipeline_mode<synchronous>, transform_indices = @transform_1, window_bounds = array<i64: 1, 24>}, {pipeline_mode = #tpu.pipeline_mode<synchronous>, transform_indices = @transform_2, window_bounds = array<i64: 1, 24>}, {pipeline_mode = #tpu.pipeline_mode<synchronous>, transform_indices = @transform_3, window_bounds = array<i64: 24, 72>}, {transform_indices = @transform_4, window_bounds = array<i64: 64, 72>}]} {
    %c0 = arith.constant 0 : index
    %c0_0 = arith.constant 0 : index
    %0 = vector.load %arg1[%c0, %c0_0] : memref<64x24xf32, #tpu.memory_space<vmem>>, vector<64x24xf32>
    %cst = arith.constant dense<0.000000e+00> : vector<64xf32>
    %1 = vector.multi_reduction <add>, %0, %cst [1] : vector<64x24xf32> to vector<64xf32>
    %2 = vector.shape_cast %1 : vector<64xf32> to vector<64x1xf32>
    %cst_1 = arith.constant 2.400000e+01 : f32
    %3 = vector.broadcast %cst_1 : f32 to vector<64x1xf32>
    %4 = arith.divf %2, %3 : vector<64x1xf32>
    %5 = vector.broadcast %4 : vector<64x1xf32> to vector<64x24xf32>
    %6 = arith.subf %0, %5 : vector<64x24xf32>
    %7 = arith.mulf %6, %6 : vector<64x24xf32>
    %cst_2 = arith.constant dense<0.000000e+00> : vector<64xf32>
    %8 = vector.multi_reduction <add>, %7, %cst_2 [1] : vector<64x24xf32> to vector<64xf32>
    %9 = vector.shape_cast %8 : vector<64xf32> to vector<64x1xf32>
    %cst_3 = arith.constant 2.400000e+01 : f32
    %10 = vector.broadcast %cst_3 : f32 to vector<64x1xf32>
    %11 = arith.divf %9, %10 : vector<64x1xf32>
    %cst_4 = arith.constant 9.99999974E-6 : f32
    %12 = vector.broadcast %cst_4 : f32 to vector<64x1xf32>
    %13 = arith.addf %11, %12 : vector<64x1xf32>
    %14 = math.rsqrt %13 : vector<64x1xf32>
    %15 = vector.broadcast %14 : vector<64x1xf32> to vector<64x24xf32>
    %16 = arith.mulf %6, %15 : vector<64x24xf32>
    %c0_5 = arith.constant 0 : index
    %c0_6 = arith.constant 0 : index
    %17 = vector.load %arg2[%c0_5, %c0_6] : memref<1x24xf32, #tpu.memory_space<vmem>>, vector<1x24xf32>
    %18 = vector.broadcast %17 : vector<1x24xf32> to vector<64x24xf32>
    %19 = arith.mulf %16, %18 : vector<64x24xf32>
    %c0_7 = arith.constant 0 : index
    %c0_8 = arith.constant 0 : index
    %20 = vector.load %arg3[%c0_7, %c0_8] : memref<1x24xf32, #tpu.memory_space<vmem>>, vector<1x24xf32>
    %21 = vector.broadcast %20 : vector<1x24xf32> to vector<64x24xf32>
    %22 = arith.addf %19, %21 : vector<64x24xf32>
    %23 = arith.truncf %22 : vector<64x24xf32> to vector<64x24xbf16>
    %c0_9 = arith.constant 0 : index
    %c0_10 = arith.constant 0 : index
    %24 = vector.load %arg4[%c0_9, %c0_10] : memref<24x72xbf16, #tpu.memory_space<vmem>>, vector<24x72xbf16>
    %cst_11 = arith.constant dense<0.000000e+00> : vector<64x72xf32>
    %25 = tpu.matmul %23, %24, %cst_11 {dimension_numbers = #tpu.dot_dimension_numbers<[1], [0], [0], [1], [0, 0, 1, 1], [], []>} : vector<64x24xbf16>, vector<24x72xbf16>, vector<64x72xf32> -> vector<64x72xf32>
    %26 = arith.truncf %25 : vector<64x72xf32> to vector<64x72xbf16>
    %c0_12 = arith.constant 0 : index
    %c0_13 = arith.constant 0 : index
    %27 = vector.load %arg5[%c0_12, %c0_13] : memref<64x72xbf16, #tpu.memory_space<vmem>>, vector<64x72xbf16>
    tpu.vector_store %arg5[%c0_12, %c0_13], %26 {strides = array<i32>} : memref<64x72xbf16, #tpu.memory_space<vmem>>, vector<64x72xbf16>,
    return
  }
  func.func @transform_0(%arg0: i32) -> (i32, i32) {
    %c0_i32 = arith.constant 0 : i32
    %c0_i32_0 = arith.constant 0 : i32
    return %arg0, %c0_i32 : i32, i32
  }
  func.func @transform_1(%arg0: i32) -> (i32, i32) {
    %c0_i32 = arith.constant 0 : i32
    %c0_i32_0 = arith.constant 0 : i32
    %c0_i32_1 = arith.constant 0 : i32
    return %c0_i32, %c0_i32_0 : i32, i32
  }
  func.func @transform_2(%arg0: i32) -> (i32, i32) {
    %c0_i32 = arith.constant 0 : i32
    %c0_i32_0 = arith.constant 0 : i32
    %c0_i32_1 = arith.constant 0 : i32
    return %c0_i32, %c0_i32_0 : i32, i32
  }
  func.func @transform_3(%arg0: i32) -> (i32, i32) {
    %c0_i32 = arith.constant 0 : i32
    %c0_i32_0 = arith.constant 0 : i32
    %c0_i32_1 = arith.constant 0 : i32
    return %c0_i32, %c0_i32_0 : i32, i32
  }
  func.func @transform_4(%arg0: i32) -> (i32, i32) {
    %c0_i32 = arith.constant 0 : i32
    %c0_i32_0 = arith.constant 0 : i32
    return %arg0, %c0_i32 : i32, i32
  }
}

module attributes {stable_mosaic.version = 11 : i64} {
  func.func @_dwconv3_kernel(%arg0: i32, %arg1: memref<1x8x8x72xbf16, #tpu.memory_space<vmem>>, %arg2: memref<3x3x72xf32, #tpu.memory_space<vmem>>, %arg3: memref<1x8x8x72xbf16, #tpu.memory_space<vmem>>, %arg4: memref<1x10x10x72xf32, #tpu.memory_space<vmem>>) attributes {dimension_semantics = [#tpu.dimension_semantics<parallel>], iteration_bounds = array<i64: 2>, scalar_prefetch = 0 : i64, scratch_operands = 1 : i64, tpu.core_type = #tpu.core_type<tc>, window_params = [{transform_indices = @transform_0, window_bounds = array<i64: 1, 8, 8, 72>}, {pipeline_mode = #tpu.pipeline_mode<synchronous>, transform_indices = @transform_1, window_bounds = array<i64: 3, 3, 72>}, {transform_indices = @transform_2, window_bounds = array<i64: 1, 8, 8, 72>}]} {
    %cst = arith.constant 0.000000e+00 : f32
    %0 = vector.broadcast %cst : f32 to vector<1x10x10x72xf32>
    %c0 = arith.constant 0 : index
    %c0_0 = arith.constant 0 : index
    %c0_1 = arith.constant 0 : index
    %c0_2 = arith.constant 0 : index
    %1 = vector.load %arg4[%c0, %c0_0, %c0_1, %c0_2] : memref<1x10x10x72xf32, #tpu.memory_space<vmem>>, vector<1x10x10x72xf32>
    tpu.vector_store %arg4[%c0, %c0_0, %c0_1, %c0_2], %0 {strides = array<i32>} : memref<1x10x10x72xf32, #tpu.memory_space<vmem>>, vector<1x10x10x72xf32>,
    %c0_3 = arith.constant 0 : index
    %c0_4 = arith.constant 0 : index
    %c0_5 = arith.constant 0 : index
    %c0_6 = arith.constant 0 : index
    %2 = vector.load %arg1[%c0_3, %c0_4, %c0_5, %c0_6] : memref<1x8x8x72xbf16, #tpu.memory_space<vmem>>, vector<1x8x8x72xbf16>
    %3 = arith.extf %2 : vector<1x8x8x72xbf16> to vector<1x8x8x72xf32>
    %c0_7 = arith.constant 0 : index
    %c1 = arith.constant 1 : index
    %c1_8 = arith.constant 1 : index
    %c0_9 = arith.constant 0 : index
    %4 = vector.load %arg4[%c0_7, %c1, %c1_8, %c0_9] : memref<1x10x10x72xf32, #tpu.memory_space<vmem>>, vector<1x8x8x72xf32>
    tpu.vector_store %arg4[%c0_7, %c1, %c1_8, %c0_9], %3 {strides = array<i32>} : memref<1x10x10x72xf32, #tpu.memory_space<vmem>>, vector<1x8x8x72xf32>,
    %c0_10 = arith.constant 0 : index
    %c0_11 = arith.constant 0 : index
    %c0_12 = arith.constant 0 : index
    %5 = vector.load %arg2[%c0_10, %c0_11, %c0_12] : memref<3x3x72xf32, #tpu.memory_space<vmem>>, vector<3x3x72xf32>
    %cst_13 = arith.constant 0.000000e+00 : f32
    %6 = vector.broadcast %cst_13 : f32 to vector<1x8x8x72xf32>
    %c0_14 = arith.constant 0 : index
    %c0_15 = arith.constant 0 : index
    %c0_16 = arith.constant 0 : index
    %c0_17 = arith.constant 0 : index
    %7 = vector.load %arg4[%c0_14, %c0_15, %c0_16, %c0_17] : memref<1x10x10x72xf32, #tpu.memory_space<vmem>>, vector<1x10x8x72xf32>
    %8 = vector.extract_strided_slice %7 {offsets = [0, 0, 0, 0], sizes = [1, 8, 8, 72], strides = [1, 1, 1, 1]} : vector<1x10x8x72xf32> to vector<1x8x8x72xf32>
    %9 = vector.extract_strided_slice %5 {offsets = [0, 0, 0], sizes = [1, 1, 72], strides = [1, 1, 1]} : vector<3x3x72xf32> to vector<1x1x72xf32>
    %10 = vector.shape_cast %9 : vector<1x1x72xf32> to vector<72xf32>
    %11 = vector.shape_cast %10 : vector<72xf32> to vector<1x1x1x72xf32>
    %12 = vector.broadcast %11 : vector<1x1x1x72xf32> to vector<1x8x8x72xf32>
    %13 = arith.mulf %8, %12 : vector<1x8x8x72xf32>
    %14 = arith.addf %6, %13 : vector<1x8x8x72xf32>
    %15 = vector.extract_strided_slice %7 {offsets = [0, 1, 0, 0], sizes = [1, 8, 8, 72], strides = [1, 1, 1, 1]} : vector<1x10x8x72xf32> to vector<1x8x8x72xf32>
    %16 = vector.extract_strided_slice %5 {offsets = [1, 0, 0], sizes = [1, 1, 72], strides = [1, 1, 1]} : vector<3x3x72xf32> to vector<1x1x72xf32>
    %17 = vector.shape_cast %16 : vector<1x1x72xf32> to vector<72xf32>
    %18 = vector.shape_cast %17 : vector<72xf32> to vector<1x1x1x72xf32>
    %19 = vector.broadcast %18 : vector<1x1x1x72xf32> to vector<1x8x8x72xf32>
    %20 = arith.mulf %15, %19 : vector<1x8x8x72xf32>
    %21 = arith.addf %14, %20 : vector<1x8x8x72xf32>
    %22 = vector.extract_strided_slice %7 {offsets = [0, 2, 0, 0], sizes = [1, 8, 8, 72], strides = [1, 1, 1, 1]} : vector<1x10x8x72xf32> to vector<1x8x8x72xf32>
    %23 = vector.extract_strided_slice %5 {offsets = [2, 0, 0], sizes = [1, 1, 72], strides = [1, 1, 1]} : vector<3x3x72xf32> to vector<1x1x72xf32>
    %24 = vector.shape_cast %23 : vector<1x1x72xf32> to vector<72xf32>
    %25 = vector.shape_cast %24 : vector<72xf32> to vector<1x1x1x72xf32>
    %26 = vector.broadcast %25 : vector<1x1x1x72xf32> to vector<1x8x8x72xf32>
    %27 = arith.mulf %22, %26 : vector<1x8x8x72xf32>
    %28 = arith.addf %21, %27 : vector<1x8x8x72xf32>
    %c0_18 = arith.constant 0 : index
    %c0_19 = arith.constant 0 : index
    %c1_20 = arith.constant 1 : index
    %c0_21 = arith.constant 0 : index
    %29 = vector.load %arg4[%c0_18, %c0_19, %c1_20, %c0_21] : memref<1x10x10x72xf32, #tpu.memory_space<vmem>>, vector<1x10x8x72xf32>
    %30 = vector.extract_strided_slice %29 {offsets = [0, 0, 0, 0], sizes = [1, 8, 8, 72], strides = [1, 1, 1, 1]} : vector<1x10x8x72xf32> to vector<1x8x8x72xf32>
    %31 = vector.extract_strided_slice %5 {offsets = [0, 1, 0], sizes = [1, 1, 72], strides = [1, 1, 1]} : vector<3x3x72xf32> to vector<1x1x72xf32>
    %32 = vector.shape_cast %31 : vector<1x1x72xf32> to vector<72xf32>
    %33 = vector.shape_cast %32 : vector<72xf32> to vector<1x1x1x72xf32>
    %34 = vector.broadcast %33 : vector<1x1x1x72xf32> to vector<1x8x8x72xf32>
    %35 = arith.mulf %30, %34 : vector<1x8x8x72xf32>
    %36 = arith.addf %28, %35 : vector<1x8x8x72xf32>
    %37 = vector.extract_strided_slice %29 {offsets = [0, 1, 0, 0], sizes = [1, 8, 8, 72], strides = [1, 1, 1, 1]} : vector<1x10x8x72xf32> to vector<1x8x8x72xf32>
    %38 = vector.extract_strided_slice %5 {offsets = [1, 1, 0], sizes = [1, 1, 72], strides = [1, 1, 1]} : vector<3x3x72xf32> to vector<1x1x72xf32>
    %39 = vector.shape_cast %38 : vector<1x1x72xf32> to vector<72xf32>
    %40 = vector.shape_cast %39 : vector<72xf32> to vector<1x1x1x72xf32>
    %41 = vector.broadcast %40 : vector<1x1x1x72xf32> to vector<1x8x8x72xf32>
    %42 = arith.mulf %37, %41 : vector<1x8x8x72xf32>
    %43 = arith.addf %36, %42 : vector<1x8x8x72xf32>
    %44 = vector.extract_strided_slice %29 {offsets = [0, 2, 0, 0], sizes = [1, 8, 8, 72], strides = [1, 1, 1, 1]} : vector<1x10x8x72xf32> to vector<1x8x8x72xf32>
    %45 = vector.extract_strided_slice %5 {offsets = [2, 1, 0], sizes = [1, 1, 72], strides = [1, 1, 1]} : vector<3x3x72xf32> to vector<1x1x72xf32>
    %46 = vector.shape_cast %45 : vector<1x1x72xf32> to vector<72xf32>
    %47 = vector.shape_cast %46 : vector<72xf32> to vector<1x1x1x72xf32>
    %48 = vector.broadcast %47 : vector<1x1x1x72xf32> to vector<1x8x8x72xf32>
    %49 = arith.mulf %44, %48 : vector<1x8x8x72xf32>
    %50 = arith.addf %43, %49 : vector<1x8x8x72xf32>
    %c0_22 = arith.constant 0 : index
    %c0_23 = arith.constant 0 : index
    %c2 = arith.constant 2 : index
    %c0_24 = arith.constant 0 : index
    %51 = vector.load %arg4[%c0_22, %c0_23, %c2, %c0_24] : memref<1x10x10x72xf32, #tpu.memory_space<vmem>>, vector<1x10x8x72xf32>
    %52 = vector.extract_strided_slice %51 {offsets = [0, 0, 0, 0], sizes = [1, 8, 8, 72], strides = [1, 1, 1, 1]} : vector<1x10x8x72xf32> to vector<1x8x8x72xf32>
    %53 = vector.extract_strided_slice %5 {offsets = [0, 2, 0], sizes = [1, 1, 72], strides = [1, 1, 1]} : vector<3x3x72xf32> to vector<1x1x72xf32>
    %54 = vector.shape_cast %53 : vector<1x1x72xf32> to vector<72xf32>
    %55 = vector.shape_cast %54 : vector<72xf32> to vector<1x1x1x72xf32>
    %56 = vector.broadcast %55 : vector<1x1x1x72xf32> to vector<1x8x8x72xf32>
    %57 = arith.mulf %52, %56 : vector<1x8x8x72xf32>
    %58 = arith.addf %50, %57 : vector<1x8x8x72xf32>
    %59 = vector.extract_strided_slice %51 {offsets = [0, 1, 0, 0], sizes = [1, 8, 8, 72], strides = [1, 1, 1, 1]} : vector<1x10x8x72xf32> to vector<1x8x8x72xf32>
    %60 = vector.extract_strided_slice %5 {offsets = [1, 2, 0], sizes = [1, 1, 72], strides = [1, 1, 1]} : vector<3x3x72xf32> to vector<1x1x72xf32>
    %61 = vector.shape_cast %60 : vector<1x1x72xf32> to vector<72xf32>
    %62 = vector.shape_cast %61 : vector<72xf32> to vector<1x1x1x72xf32>
    %63 = vector.broadcast %62 : vector<1x1x1x72xf32> to vector<1x8x8x72xf32>
    %64 = arith.mulf %59, %63 : vector<1x8x8x72xf32>
    %65 = arith.addf %58, %64 : vector<1x8x8x72xf32>
    %66 = vector.extract_strided_slice %51 {offsets = [0, 2, 0, 0], sizes = [1, 8, 8, 72], strides = [1, 1, 1, 1]} : vector<1x10x8x72xf32> to vector<1x8x8x72xf32>
    %67 = vector.extract_strided_slice %5 {offsets = [2, 2, 0], sizes = [1, 1, 72], strides = [1, 1, 1]} : vector<3x3x72xf32> to vector<1x1x72xf32>
    %68 = vector.shape_cast %67 : vector<1x1x72xf32> to vector<72xf32>
    %69 = vector.shape_cast %68 : vector<72xf32> to vector<1x1x1x72xf32>
    %70 = vector.broadcast %69 : vector<1x1x1x72xf32> to vector<1x8x8x72xf32>
    %71 = arith.mulf %66, %70 : vector<1x8x8x72xf32>
    %72 = arith.addf %65, %71 : vector<1x8x8x72xf32>
    %73 = arith.truncf %72 : vector<1x8x8x72xf32> to vector<1x8x8x72xbf16>
    %c0_25 = arith.constant 0 : index
    %c0_26 = arith.constant 0 : index
    %c0_27 = arith.constant 0 : index
    %c0_28 = arith.constant 0 : index
    %74 = vector.load %arg3[%c0_25, %c0_26, %c0_27, %c0_28] : memref<1x8x8x72xbf16, #tpu.memory_space<vmem>>, vector<1x8x8x72xbf16>
    tpu.vector_store %arg3[%c0_25, %c0_26, %c0_27, %c0_28], %73 {strides = array<i32>} : memref<1x8x8x72xbf16, #tpu.memory_space<vmem>>, vector<1x8x8x72xbf16>,
    return
  }
  func.func @transform_0(%arg0: i32) -> (i32, i32, i32, i32) {
    %c0_i32 = arith.constant 0 : i32
    %c0_i32_0 = arith.constant 0 : i32
    %c0_i32_1 = arith.constant 0 : i32
    %c0_i32_2 = arith.constant 0 : i32
    return %arg0, %c0_i32, %c0_i32_0, %c0_i32_1 : i32, i32, i32, i32
  }
  func.func @transform_1(%arg0: i32) -> (i32, i32, i32) {
    %c0_i32 = arith.constant 0 : i32
    %c0_i32_0 = arith.constant 0 : i32
    %c0_i32_1 = arith.constant 0 : i32
    %c0_i32_2 = arith.constant 0 : i32
    return %c0_i32, %c0_i32_0, %c0_i32_1 : i32, i32, i32
  }
  func.func @transform_2(%arg0: i32) -> (i32, i32, i32, i32) {
    %c0_i32 = arith.constant 0 : i32
    %c0_i32_0 = arith.constant 0 : i32
    %c0_i32_1 = arith.constant 0 : i32
    %c0_i32_2 = arith.constant 0 : i32
    return %arg0, %c0_i32, %c0_i32_0, %c0_i32_1 : i32, i32, i32, i32
  }
}

module attributes {stable_mosaic.version = 11 : i64} {
  func.func @_ln_matmul_kernel(%arg0: i32, %arg1: memref<64x24xf32, #tpu.memory_space<vmem>>, %arg2: memref<1x24xf32, #tpu.memory_space<vmem>>, %arg3: memref<1x24xf32, #tpu.memory_space<vmem>>, %arg4: memref<24x96xbf16, #tpu.memory_space<vmem>>, %arg5: memref<64x96xbf16, #tpu.memory_space<vmem>>) attributes {dimension_semantics = [#tpu.dimension_semantics<parallel>], iteration_bounds = array<i64: 2>, scalar_prefetch = 0 : i64, scratch_operands = 0 : i64, tpu.core_type = #tpu.core_type<tc>, window_params = [{transform_indices = @transform_0, window_bounds = array<i64: 64, 24>}, {pipeline_mode = #tpu.pipeline_mode<synchronous>, transform_indices = @transform_1, window_bounds = array<i64: 1, 24>}, {pipeline_mode = #tpu.pipeline_mode<synchronous>, transform_indices = @transform_2, window_bounds = array<i64: 1, 24>}, {pipeline_mode = #tpu.pipeline_mode<synchronous>, transform_indices = @transform_3, window_bounds = array<i64: 24, 96>}, {transform_indices = @transform_4, window_bounds = array<i64: 64, 96>}]} {
    %c0 = arith.constant 0 : index
    %c0_0 = arith.constant 0 : index
    %0 = vector.load %arg1[%c0, %c0_0] : memref<64x24xf32, #tpu.memory_space<vmem>>, vector<64x24xf32>
    %cst = arith.constant dense<0.000000e+00> : vector<64xf32>
    %1 = vector.multi_reduction <add>, %0, %cst [1] : vector<64x24xf32> to vector<64xf32>
    %2 = vector.shape_cast %1 : vector<64xf32> to vector<64x1xf32>
    %cst_1 = arith.constant 2.400000e+01 : f32
    %3 = vector.broadcast %cst_1 : f32 to vector<64x1xf32>
    %4 = arith.divf %2, %3 : vector<64x1xf32>
    %5 = vector.broadcast %4 : vector<64x1xf32> to vector<64x24xf32>
    %6 = arith.subf %0, %5 : vector<64x24xf32>
    %7 = arith.mulf %6, %6 : vector<64x24xf32>
    %cst_2 = arith.constant dense<0.000000e+00> : vector<64xf32>
    %8 = vector.multi_reduction <add>, %7, %cst_2 [1] : vector<64x24xf32> to vector<64xf32>
    %9 = vector.shape_cast %8 : vector<64xf32> to vector<64x1xf32>
    %cst_3 = arith.constant 2.400000e+01 : f32
    %10 = vector.broadcast %cst_3 : f32 to vector<64x1xf32>
    %11 = arith.divf %9, %10 : vector<64x1xf32>
    %cst_4 = arith.constant 9.99999974E-6 : f32
    %12 = vector.broadcast %cst_4 : f32 to vector<64x1xf32>
    %13 = arith.addf %11, %12 : vector<64x1xf32>
    %14 = math.rsqrt %13 : vector<64x1xf32>
    %15 = vector.broadcast %14 : vector<64x1xf32> to vector<64x24xf32>
    %16 = arith.mulf %6, %15 : vector<64x24xf32>
    %c0_5 = arith.constant 0 : index
    %c0_6 = arith.constant 0 : index
    %17 = vector.load %arg2[%c0_5, %c0_6] : memref<1x24xf32, #tpu.memory_space<vmem>>, vector<1x24xf32>
    %18 = vector.broadcast %17 : vector<1x24xf32> to vector<64x24xf32>
    %19 = arith.mulf %16, %18 : vector<64x24xf32>
    %c0_7 = arith.constant 0 : index
    %c0_8 = arith.constant 0 : index
    %20 = vector.load %arg3[%c0_7, %c0_8] : memref<1x24xf32, #tpu.memory_space<vmem>>, vector<1x24xf32>
    %21 = vector.broadcast %20 : vector<1x24xf32> to vector<64x24xf32>
    %22 = arith.addf %19, %21 : vector<64x24xf32>
    %23 = arith.truncf %22 : vector<64x24xf32> to vector<64x24xbf16>
    %c0_9 = arith.constant 0 : index
    %c0_10 = arith.constant 0 : index
    %24 = vector.load %arg4[%c0_9, %c0_10] : memref<24x96xbf16, #tpu.memory_space<vmem>>, vector<24x96xbf16>
    %cst_11 = arith.constant dense<0.000000e+00> : vector<64x96xf32>
    %25 = tpu.matmul %23, %24, %cst_11 {dimension_numbers = #tpu.dot_dimension_numbers<[1], [0], [0], [1], [0, 0, 1, 1], [], []>} : vector<64x24xbf16>, vector<24x96xbf16>, vector<64x96xf32> -> vector<64x96xf32>
    %26 = arith.truncf %25 : vector<64x96xf32> to vector<64x96xbf16>
    %c0_12 = arith.constant 0 : index
    %c0_13 = arith.constant 0 : index
    %27 = vector.load %arg5[%c0_12, %c0_13] : memref<64x96xbf16, #tpu.memory_space<vmem>>, vector<64x96xbf16>
    tpu.vector_store %arg5[%c0_12, %c0_13], %26 {strides = array<i32>} : memref<64x96xbf16, #tpu.memory_space<vmem>>, vector<64x96xbf16>,
    return
  }
  func.func @transform_0(%arg0: i32) -> (i32, i32) {
    %c0_i32 = arith.constant 0 : i32
    %c0_i32_0 = arith.constant 0 : i32
    return %arg0, %c0_i32 : i32, i32
  }
  func.func @transform_1(%arg0: i32) -> (i32, i32) {
    %c0_i32 = arith.constant 0 : i32
    %c0_i32_0 = arith.constant 0 : i32
    %c0_i32_1 = arith.constant 0 : i32
    return %c0_i32, %c0_i32_0 : i32, i32
  }
  func.func @transform_2(%arg0: i32) -> (i32, i32) {
    %c0_i32 = arith.constant 0 : i32
    %c0_i32_0 = arith.constant 0 : i32
    %c0_i32_1 = arith.constant 0 : i32
    return %c0_i32, %c0_i32_0 : i32, i32
  }
  func.func @transform_3(%arg0: i32) -> (i32, i32) {
    %c0_i32 = arith.constant 0 : i32
    %c0_i32_0 = arith.constant 0 : i32
    %c0_i32_1 = arith.constant 0 : i32
    return %c0_i32, %c0_i32_0 : i32, i32
  }
  func.func @transform_4(%arg0: i32) -> (i32, i32) {
    %c0_i32 = arith.constant 0 : i32
    %c0_i32_0 = arith.constant 0 : i32
    return %arg0, %c0_i32 : i32, i32
  }
}

module attributes {stable_mosaic.version = 11 : i64} {
  func.func @_dwconv3_kernel(%arg0: i32, %arg1: memref<1x8x8x96xbf16, #tpu.memory_space<vmem>>, %arg2: memref<3x3x96xf32, #tpu.memory_space<vmem>>, %arg3: memref<1x8x8x96xbf16, #tpu.memory_space<vmem>>, %arg4: memref<1x10x10x96xf32, #tpu.memory_space<vmem>>) attributes {dimension_semantics = [#tpu.dimension_semantics<parallel>], iteration_bounds = array<i64: 2>, scalar_prefetch = 0 : i64, scratch_operands = 1 : i64, tpu.core_type = #tpu.core_type<tc>, window_params = [{transform_indices = @transform_0, window_bounds = array<i64: 1, 8, 8, 96>}, {pipeline_mode = #tpu.pipeline_mode<synchronous>, transform_indices = @transform_1, window_bounds = array<i64: 3, 3, 96>}, {transform_indices = @transform_2, window_bounds = array<i64: 1, 8, 8, 96>}]} {
    %cst = arith.constant 0.000000e+00 : f32
    %0 = vector.broadcast %cst : f32 to vector<1x10x10x96xf32>
    %c0 = arith.constant 0 : index
    %c0_0 = arith.constant 0 : index
    %c0_1 = arith.constant 0 : index
    %c0_2 = arith.constant 0 : index
    %1 = vector.load %arg4[%c0, %c0_0, %c0_1, %c0_2] : memref<1x10x10x96xf32, #tpu.memory_space<vmem>>, vector<1x10x10x96xf32>
    tpu.vector_store %arg4[%c0, %c0_0, %c0_1, %c0_2], %0 {strides = array<i32>} : memref<1x10x10x96xf32, #tpu.memory_space<vmem>>, vector<1x10x10x96xf32>,
    %c0_3 = arith.constant 0 : index
    %c0_4 = arith.constant 0 : index
    %c0_5 = arith.constant 0 : index
    %c0_6 = arith.constant 0 : index
    %2 = vector.load %arg1[%c0_3, %c0_4, %c0_5, %c0_6] : memref<1x8x8x96xbf16, #tpu.memory_space<vmem>>, vector<1x8x8x96xbf16>
    %3 = arith.extf %2 : vector<1x8x8x96xbf16> to vector<1x8x8x96xf32>
    %c0_7 = arith.constant 0 : index
    %c1 = arith.constant 1 : index
    %c1_8 = arith.constant 1 : index
    %c0_9 = arith.constant 0 : index
    %4 = vector.load %arg4[%c0_7, %c1, %c1_8, %c0_9] : memref<1x10x10x96xf32, #tpu.memory_space<vmem>>, vector<1x8x8x96xf32>
    tpu.vector_store %arg4[%c0_7, %c1, %c1_8, %c0_9], %3 {strides = array<i32>} : memref<1x10x10x96xf32, #tpu.memory_space<vmem>>, vector<1x8x8x96xf32>,
    %c0_10 = arith.constant 0 : index
    %c0_11 = arith.constant 0 : index
    %c0_12 = arith.constant 0 : index
    %5 = vector.load %arg2[%c0_10, %c0_11, %c0_12] : memref<3x3x96xf32, #tpu.memory_space<vmem>>, vector<3x3x96xf32>
    %cst_13 = arith.constant 0.000000e+00 : f32
    %6 = vector.broadcast %cst_13 : f32 to vector<1x8x8x96xf32>
    %c0_14 = arith.constant 0 : index
    %c0_15 = arith.constant 0 : index
    %c0_16 = arith.constant 0 : index
    %c0_17 = arith.constant 0 : index
    %7 = vector.load %arg4[%c0_14, %c0_15, %c0_16, %c0_17] : memref<1x10x10x96xf32, #tpu.memory_space<vmem>>, vector<1x10x8x96xf32>
    %8 = vector.extract_strided_slice %7 {offsets = [0, 0, 0, 0], sizes = [1, 8, 8, 96], strides = [1, 1, 1, 1]} : vector<1x10x8x96xf32> to vector<1x8x8x96xf32>
    %9 = vector.extract_strided_slice %5 {offsets = [0, 0, 0], sizes = [1, 1, 96], strides = [1, 1, 1]} : vector<3x3x96xf32> to vector<1x1x96xf32>
    %10 = vector.shape_cast %9 : vector<1x1x96xf32> to vector<96xf32>
    %11 = vector.shape_cast %10 : vector<96xf32> to vector<1x1x1x96xf32>
    %12 = vector.broadcast %11 : vector<1x1x1x96xf32> to vector<1x8x8x96xf32>
    %13 = arith.mulf %8, %12 : vector<1x8x8x96xf32>
    %14 = arith.addf %6, %13 : vector<1x8x8x96xf32>
    %15 = vector.extract_strided_slice %7 {offsets = [0, 1, 0, 0], sizes = [1, 8, 8, 96], strides = [1, 1, 1, 1]} : vector<1x10x8x96xf32> to vector<1x8x8x96xf32>
    %16 = vector.extract_strided_slice %5 {offsets = [1, 0, 0], sizes = [1, 1, 96], strides = [1, 1, 1]} : vector<3x3x96xf32> to vector<1x1x96xf32>
    %17 = vector.shape_cast %16 : vector<1x1x96xf32> to vector<96xf32>
    %18 = vector.shape_cast %17 : vector<96xf32> to vector<1x1x1x96xf32>
    %19 = vector.broadcast %18 : vector<1x1x1x96xf32> to vector<1x8x8x96xf32>
    %20 = arith.mulf %15, %19 : vector<1x8x8x96xf32>
    %21 = arith.addf %14, %20 : vector<1x8x8x96xf32>
    %22 = vector.extract_strided_slice %7 {offsets = [0, 2, 0, 0], sizes = [1, 8, 8, 96], strides = [1, 1, 1, 1]} : vector<1x10x8x96xf32> to vector<1x8x8x96xf32>
    %23 = vector.extract_strided_slice %5 {offsets = [2, 0, 0], sizes = [1, 1, 96], strides = [1, 1, 1]} : vector<3x3x96xf32> to vector<1x1x96xf32>
    %24 = vector.shape_cast %23 : vector<1x1x96xf32> to vector<96xf32>
    %25 = vector.shape_cast %24 : vector<96xf32> to vector<1x1x1x96xf32>
    %26 = vector.broadcast %25 : vector<1x1x1x96xf32> to vector<1x8x8x96xf32>
    %27 = arith.mulf %22, %26 : vector<1x8x8x96xf32>
    %28 = arith.addf %21, %27 : vector<1x8x8x96xf32>
    %c0_18 = arith.constant 0 : index
    %c0_19 = arith.constant 0 : index
    %c1_20 = arith.constant 1 : index
    %c0_21 = arith.constant 0 : index
    %29 = vector.load %arg4[%c0_18, %c0_19, %c1_20, %c0_21] : memref<1x10x10x96xf32, #tpu.memory_space<vmem>>, vector<1x10x8x96xf32>
    %30 = vector.extract_strided_slice %29 {offsets = [0, 0, 0, 0], sizes = [1, 8, 8, 96], strides = [1, 1, 1, 1]} : vector<1x10x8x96xf32> to vector<1x8x8x96xf32>
    %31 = vector.extract_strided_slice %5 {offsets = [0, 1, 0], sizes = [1, 1, 96], strides = [1, 1, 1]} : vector<3x3x96xf32> to vector<1x1x96xf32>
    %32 = vector.shape_cast %31 : vector<1x1x96xf32> to vector<96xf32>
    %33 = vector.shape_cast %32 : vector<96xf32> to vector<1x1x1x96xf32>
    %34 = vector.broadcast %33 : vector<1x1x1x96xf32> to vector<1x8x8x96xf32>
    %35 = arith.mulf %30, %34 : vector<1x8x8x96xf32>
    %36 = arith.addf %28, %35 : vector<1x8x8x96xf32>
    %37 = vector.extract_strided_slice %29 {offsets = [0, 1, 0, 0], sizes = [1, 8, 8, 96], strides = [1, 1, 1, 1]} : vector<1x10x8x96xf32> to vector<1x8x8x96xf32>
    %38 = vector.extract_strided_slice %5 {offsets = [1, 1, 0], sizes = [1, 1, 96], strides = [1, 1, 1]} : vector<3x3x96xf32> to vector<1x1x96xf32>
    %39 = vector.shape_cast %38 : vector<1x1x96xf32> to vector<96xf32>
    %40 = vector.shape_cast %39 : vector<96xf32> to vector<1x1x1x96xf32>
    %41 = vector.broadcast %40 : vector<1x1x1x96xf32> to vector<1x8x8x96xf32>
    %42 = arith.mulf %37, %41 : vector<1x8x8x96xf32>
    %43 = arith.addf %36, %42 : vector<1x8x8x96xf32>
    %44 = vector.extract_strided_slice %29 {offsets = [0, 2, 0, 0], sizes = [1, 8, 8, 96], strides = [1, 1, 1, 1]} : vector<1x10x8x96xf32> to vector<1x8x8x96xf32>
    %45 = vector.extract_strided_slice %5 {offsets = [2, 1, 0], sizes = [1, 1, 96], strides = [1, 1, 1]} : vector<3x3x96xf32> to vector<1x1x96xf32>
    %46 = vector.shape_cast %45 : vector<1x1x96xf32> to vector<96xf32>
    %47 = vector.shape_cast %46 : vector<96xf32> to vector<1x1x1x96xf32>
    %48 = vector.broadcast %47 : vector<1x1x1x96xf32> to vector<1x8x8x96xf32>
    %49 = arith.mulf %44, %48 : vector<1x8x8x96xf32>
    %50 = arith.addf %43, %49 : vector<1x8x8x96xf32>
    %c0_22 = arith.constant 0 : index
    %c0_23 = arith.constant 0 : index
    %c2 = arith.constant 2 : index
    %c0_24 = arith.constant 0 : index
    %51 = vector.load %arg4[%c0_22, %c0_23, %c2, %c0_24] : memref<1x10x10x96xf32, #tpu.memory_space<vmem>>, vector<1x10x8x96xf32>
    %52 = vector.extract_strided_slice %51 {offsets = [0, 0, 0, 0], sizes = [1, 8, 8, 96], strides = [1, 1, 1, 1]} : vector<1x10x8x96xf32> to vector<1x8x8x96xf32>
    %53 = vector.extract_strided_slice %5 {offsets = [0, 2, 0], sizes = [1, 1, 96], strides = [1, 1, 1]} : vector<3x3x96xf32> to vector<1x1x96xf32>
    %54 = vector.shape_cast %53 : vector<1x1x96xf32> to vector<96xf32>
    %55 = vector.shape_cast %54 : vector<96xf32> to vector<1x1x1x96xf32>
    %56 = vector.broadcast %55 : vector<1x1x1x96xf32> to vector<1x8x8x96xf32>
    %57 = arith.mulf %52, %56 : vector<1x8x8x96xf32>
    %58 = arith.addf %50, %57 : vector<1x8x8x96xf32>
    %59 = vector.extract_strided_slice %51 {offsets = [0, 1, 0, 0], sizes = [1, 8, 8, 96], strides = [1, 1, 1, 1]} : vector<1x10x8x96xf32> to vector<1x8x8x96xf32>
    %60 = vector.extract_strided_slice %5 {offsets = [1, 2, 0], sizes = [1, 1, 96], strides = [1, 1, 1]} : vector<3x3x96xf32> to vector<1x1x96xf32>
    %61 = vector.shape_cast %60 : vector<1x1x96xf32> to vector<96xf32>
    %62 = vector.shape_cast %61 : vector<96xf32> to vector<1x1x1x96xf32>
    %63 = vector.broadcast %62 : vector<1x1x1x96xf32> to vector<1x8x8x96xf32>
    %64 = arith.mulf %59, %63 : vector<1x8x8x96xf32>
    %65 = arith.addf %58, %64 : vector<1x8x8x96xf32>
    %66 = vector.extract_strided_slice %51 {offsets = [0, 2, 0, 0], sizes = [1, 8, 8, 96], strides = [1, 1, 1, 1]} : vector<1x10x8x96xf32> to vector<1x8x8x96xf32>
    %67 = vector.extract_strided_slice %5 {offsets = [2, 2, 0], sizes = [1, 1, 96], strides = [1, 1, 1]} : vector<3x3x96xf32> to vector<1x1x96xf32>
    %68 = vector.shape_cast %67 : vector<1x1x96xf32> to vector<96xf32>
    %69 = vector.shape_cast %68 : vector<96xf32> to vector<1x1x1x96xf32>
    %70 = vector.broadcast %69 : vector<1x1x1x96xf32> to vector<1x8x8x96xf32>
    %71 = arith.mulf %66, %70 : vector<1x8x8x96xf32>
    %72 = arith.addf %65, %71 : vector<1x8x8x96xf32>
    %73 = arith.truncf %72 : vector<1x8x8x96xf32> to vector<1x8x8x96xbf16>
    %c0_25 = arith.constant 0 : index
    %c0_26 = arith.constant 0 : index
    %c0_27 = arith.constant 0 : index
    %c0_28 = arith.constant 0 : index
    %74 = vector.load %arg3[%c0_25, %c0_26, %c0_27, %c0_28] : memref<1x8x8x96xbf16, #tpu.memory_space<vmem>>, vector<1x8x8x96xbf16>
    tpu.vector_store %arg3[%c0_25, %c0_26, %c0_27, %c0_28], %73 {strides = array<i32>} : memref<1x8x8x96xbf16, #tpu.memory_space<vmem>>, vector<1x8x8x96xbf16>,
    return
  }
  func.func @transform_0(%arg0: i32) -> (i32, i32, i32, i32) {
    %c0_i32 = arith.constant 0 : i32
    %c0_i32_0 = arith.constant 0 : i32
    %c0_i32_1 = arith.constant 0 : i32
    %c0_i32_2 = arith.constant 0 : i32
    return %arg0, %c0_i32, %c0_i32_0, %c0_i32_1 : i32, i32, i32, i32
  }
  func.func @transform_1(%arg0: i32) -> (i32, i32, i32) {
    %c0_i32 = arith.constant 0 : i32
    %c0_i32_0 = arith.constant 0 : i32
    %c0_i32_1 = arith.constant 0 : i32
    %c0_i32_2 = arith.constant 0 : i32
    return %c0_i32, %c0_i32_0, %c0_i32_1 : i32, i32, i32
  }
  func.func @transform_2(%arg0: i32) -> (i32, i32, i32, i32) {
    %c0_i32 = arith.constant 0 : i32
    %c0_i32_0 = arith.constant 0 : i32
    %c0_i32_1 = arith.constant 0 : i32
    %c0_i32_2 = arith.constant 0 : i32
    return %arg0, %c0_i32, %c0_i32_0, %c0_i32_1 : i32, i32, i32, i32
  }
}

module attributes {stable_mosaic.version = 11 : i64} {
  func.func @_gate_proj_res_kernel(%arg0: i32, %arg1: memref<64x96xbf16, #tpu.memory_space<vmem>>, %arg2: memref<64x24xf32, #tpu.memory_space<vmem>>, %arg3: memref<48x24xbf16, #tpu.memory_space<vmem>>, %arg4: memref<64x24xf32, #tpu.memory_space<vmem>>) attributes {dimension_semantics = [#tpu.dimension_semantics<parallel>], iteration_bounds = array<i64: 2>, scalar_prefetch = 0 : i64, scratch_operands = 0 : i64, tpu.core_type = #tpu.core_type<tc>, window_params = [{transform_indices = @transform_0, window_bounds = array<i64: 64, 96>}, {transform_indices = @transform_1, window_bounds = array<i64: 64, 24>}, {pipeline_mode = #tpu.pipeline_mode<synchronous>, transform_indices = @transform_2, window_bounds = array<i64: 48, 24>}, {transform_indices = @transform_3, window_bounds = array<i64: 64, 24>}]} {
    %c0 = arith.constant 0 : index
    %c0_0 = arith.constant 0 : index
    %0 = vector.load %arg1[%c0, %c0_0] : memref<64x96xbf16, #tpu.memory_space<vmem>>, vector<64x96xbf16>
    %1 = vector.extract_strided_slice %0 {offsets = [0, 0], sizes = [64, 48], strides = [1, 1]} : vector<64x96xbf16> to vector<64x48xbf16>
    %2 = arith.extf %1 : vector<64x48xbf16> to vector<64x48xf32>
    %3 = vector.extract_strided_slice %0 {offsets = [0, 48], sizes = [64, 48], strides = [1, 1]} : vector<64x96xbf16> to vector<64x48xbf16>
    %4 = arith.extf %3 : vector<64x48xbf16> to vector<64x48xf32>
    %cst = arith.constant 5.000000e-01 : f32
    %5 = vector.broadcast %cst : f32 to vector<64x48xf32>
    %6 = arith.mulf %5, %2 : vector<64x48xf32>
    %cst_1 = arith.constant 0.707106769 : f32
    %7 = vector.broadcast %cst_1 : f32 to vector<64x48xf32>
    %8 = arith.mulf %2, %7 : vector<64x48xf32>
    %9 = math.erf %8 : vector<64x48xf32>
    %cst_2 = arith.constant 1.000000e+00 : f32
    %10 = vector.broadcast %cst_2 : f32 to vector<64x48xf32>
    %11 = arith.addf %10, %9 : vector<64x48xf32>
    %12 = arith.mulf %6, %11 : vector<64x48xf32>
    %13 = arith.mulf %12, %4 : vector<64x48xf32>
    %14 = arith.truncf %13 : vector<64x48xf32> to vector<64x48xbf16>
    %c0_3 = arith.constant 0 : index
    %c0_4 = arith.constant 0 : index
    %15 = vector.load %arg3[%c0_3, %c0_4] : memref<48x24xbf16, #tpu.memory_space<vmem>>, vector<48x24xbf16>
    %cst_5 = arith.constant dense<0.000000e+00> : vector<64x24xf32>
    %16 = tpu.matmul %14, %15, %cst_5 {dimension_numbers = #tpu.dot_dimension_numbers<[1], [0], [0], [1], [0, 0, 1, 1], [], []>} : vector<64x48xbf16>, vector<48x24xbf16>, vector<64x24xf32> -> vector<64x24xf32>
    %c0_6 = arith.constant 0 : index
    %c0_7 = arith.constant 0 : index
    %17 = vector.load %arg2[%c0_6, %c0_7] : memref<64x24xf32, #tpu.memory_space<vmem>>, vector<64x24xf32>
    %18 = arith.addf %16, %17 : vector<64x24xf32>
    %c0_8 = arith.constant 0 : index
    %c0_9 = arith.constant 0 : index
    %19 = vector.load %arg4[%c0_8, %c0_9] : memref<64x24xf32, #tpu.memory_space<vmem>>, vector<64x24xf32>
    tpu.vector_store %arg4[%c0_8, %c0_9], %18 {strides = array<i32>} : memref<64x24xf32, #tpu.memory_space<vmem>>, vector<64x24xf32>,
    return
  }
  func.func @transform_0(%arg0: i32) -> (i32, i32) {
    %c0_i32 = arith.constant 0 : i32
    %c0_i32_0 = arith.constant 0 : i32
    return %arg0, %c0_i32 : i32, i32
  }
  func.func @transform_1(%arg0: i32) -> (i32, i32) {
    %c0_i32 = arith.constant 0 : i32
    %c0_i32_0 = arith.constant 0 : i32
    return %arg0, %c0_i32 : i32, i32
  }
  func.func @transform_2(%arg0: i32) -> (i32, i32) {
    %c0_i32 = arith.constant 0 : i32
    %c0_i32_0 = arith.constant 0 : i32
    %c0_i32_1 = arith.constant 0 : i32
    return %c0_i32, %c0_i32_0 : i32, i32
  }
  func.func @transform_3(%arg0: i32) -> (i32, i32) {
    %c0_i32 = arith.constant 0 : i32
    %c0_i32_0 = arith.constant 0 : i32
    return %arg0, %c0_i32 : i32, i32
  }
}

</mosaic_0001>

<bundles_post_ra>
// kernel: sparse_attention_layer_block.9
= control target key start
LH: loop header
LB: loop body
LE: loop exit
PB: predicated region body
PF: predicated region fallthrough
CT: control target
= control target key end

     0   :  { %s658_s15 = smov 0   ;;  %s759_s0 = inlined_call_operand.vmem [shape: f32[128,24], index: 0, kind: input, shape index: {}]   ;;  %s760_s1 = inlined_call_operand.vmem [shape: f32[1,24], index: 1, kind: input, shape index: {}]   ;;  %s761_s2 = inlined_call_operand.vmem [shape: f32[1,24], index: 2, kind: input, shape index: {}]   ;;  %s762_s3 = inlined_call_operand.vmem [shape: bf16[24,96], index: 3, kind: input, shape index: {}]   ;;  %s763_s4 = inlined_call_operand.vmem [shape: bf16[128,96], index: 4, kind: output, shape index: {}]  }
   0x1 LB: > { %s540_s16 = sadd.s32 4294967295, %s631_s15   ;;  %p544_p0 = scmp.ge.s32.totalorder %s631_s15, 1  ;;  %s631_s15 = sphi %s658_s15, %s14_s15  }
   0x2   : > { %p163_p1 = scmp.lt.s32.totalorder %s631_s15, 3 }
   0x4   : > { %p164_p2 = pnand %p544_p0, %p163_p1 }
   0x5   : > { %s545_s17 = sshll.u32 (!%p164_p2), %s540_s16, 3  ;;  %vm210_vm0 = vcmask (!%p164_p2), 195584   ;;  %v607_v56 = vld [vmem:[%s762_s3] sm:$0xff] (!%p164_p2)   ;;  %v608_v57 = vld [vmem:[%s762_s3 + $0x8] ss:$0 sps:$4 sm:$0xff] (!%p164_p2)   ;;  %vm374_vm1 = vcmask (!%p164_p2), 1043456  }
   0x6   : > { %167 = sbr.rel (%p164_p2) target bundleno = 566 (0x236), region = 36  ;;  %p190_p3 = scmp.lt.s32.totalorder (!%p164_p2), %s545_s17, 15  ;;  %581 = vmatprep.subr.bf16.mxu0 (!%p164_p2), %v607_v56  ;;  %593 = vmatprep.subr.bf16.mxu1 (!%p164_p2), %v607_v56  ;;  %v376_v58 = vsel (!%p164_p2), %vm374_vm1, %v608_v57, 0  ;;  %vm475_vm2 = vcmask (!%p164_p2), 781312  }
   0x7   : > { %582 = vmatpush3.bf16.msra.mxu0 (!%p164_p2), %v607_v56  ;;  %595 = vmatpush3.bf16.msra.mxu1 (!%p164_p2), %v607_v56 }
   0x8   : > { %597 = vmatprep.subr.msk.bf16.mxu0 (!%p164_p2), %vm374_vm1, %v608_v57  ;;  %598 = vmatprep.subr.msk.bf16.mxu1 (!%p164_p2), %vm374_vm1, %v608_v57 }
   0xb   : > { %584 = vmatpush3.bf16.msra.mxu0 (!%p164_p2), %v376_v58  ;;  %596 = vmatpush3.bf16.msra.mxu1 (!%p164_p2), %v376_v58 }
   0xd   : > { %s765_s17 = smov (!%p190_p3, %s545_s17), 15 }
   0xe   : > { %s546_s18 = sshll.u32 %s765_s17, 3  ;;  %s548_s30 = sshll.u32 %s765_s17, 2 }
   0xf   : > { %s193_s21 = scalar_lea.vmem %s759_s0, %s546_s18  ;;  %s199_s7 = scalar_lea.vmem %s763_s4, %s548_s30 }
  0x10   : > { %v202_v0 = vld [vmem:[%s193_s21] sm:$0xff]  ;;  %v203_v2 = vld [vmem:[%s193_s21 + $0x8] sm:$0xff]  ;;  %v204_v8 = vld [vmem:[%s193_s21 + $0x10] sm:$0xff] }
  0x11   : > { %v206_v1 = vld [vmem:[%s193_s21 + $0x20] sm:$0xff]  ;;  %v211_v3 = vsel %vm210_vm0, %v202_v0, 0.0  ;;  %v207_v5 = vld [vmem:[%s193_s21 + $0x28] sm:$0xff]  ;;  %v214_v6 = vsel %vm210_vm0, %v203_v2, 0.0  ;;  %v205_v9 = vld [vmem:[%s193_s21 + $0x18] sm:$0xff]  ;;  %v217_v10 = vsel %vm210_vm0, %v204_v8, 0.0 }
  0x12   : > { %v223_v4 = vsel %vm210_vm0, %v206_v1, 0.0  ;;  %212 = vadd.xlane.f32.xlu0 %v211_v3  ;;  %v226_v7 = vsel %vm210_vm0, %v207_v5, 0.0  ;;  %v220_v11 = vsel %vm210_vm0, %v205_v9, 0.0  ;;  %v208_v12 = vld [vmem:[%s193_s21 + $0x30] sm:$0xff]  ;;  %v209_v13 = vld [vmem:[%s193_s21 + $0x38] sm:$0xff] }
  0x13   : > { %224 = vadd.xlane.f32.xlu1 %v223_v4  ;;  %v229_v14 = vsel %vm210_vm0, %v208_v12, 0.0  ;;  %v232_v15 = vsel %vm210_vm0, %v209_v13, 0.0 }
  0x16   : > { %215 = vadd.xlane.f32.xlu0 %v214_v6 }
  0x17   : > { %227 = vadd.xlane.f32.xlu1 %v226_v7 }
  0x1a   : > { %218 = vadd.xlane.f32.xlu0 %v217_v10 }
  0x1b   : > { %221 = vadd.xlane.f32.xlu1 %v220_v11 }
  0x1e   : > { %230 = vadd.xlane.f32.xlu0 %v229_v14 }
  0x1f   : > { %233 = vadd.xlane.f32.xlu1 %v232_v15 }
  0x9f   : > { %v213_v16 = vpop.xlane.xlu0 %212 }
  0xa0   : > { %v225_v17 = vpop.xlane.xlu1 %224  ;;  %v236_v18 = vmul.f32 0.041666668, %v213_v16 }
  0xa1   : > { %v240_v19 = vmul.f32 0.041666668, %v225_v17 }
  0xa2   : > { %v680_v20 = vsub.f32 %v202_v0, %v236_v18 }
  0xa3   : > { %v682_v21 = vsub.f32 %v206_v1, %v240_v19  ;;  %v216_v22 = vpop.xlane.xlu0 %215 }
  0xa4   : > { %v228_v23 = vpop.xlane.xlu1 %227  ;;  %v237_v24 = vmul.f32 0.041666668, %v216_v22  ;;  %v252_v26 = vmul.f32 %v680_v20, %v680_v20  ;;  %v549_v22 = vld [vmem:[%s760_s1] ss:$0 sm:$0xff] }
  0xa5   : > { %v241_v25 = vmul.f32 0.041666668, %v228_v23  ;;  %v256_v27 = vmul.f32 %v682_v21, %v682_v21 }
  0xa6   : > { %v688_v28 = vsub.f32 %v203_v2, %v237_v24  ;;  %v260_v30 = vsel %vm210_vm0, %v252_v26, 0.0 }
  0xa7   : > { %v690_v29 = vsub.f32 %v207_v5, %v241_v25  ;;  %261 = vadd.xlane.f32.xlu0 %v260_v30  ;;  %v219_v31 = vpop.xlane.xlu0 %218  ;;  %v272_v33 = vsel %vm210_vm0, %v256_v27, 0.0  ;;  %v550_v30 = vld [vmem:[%s761_s2] ss:$0 sm:$0xff] }
  0xa8   : > { %v222_v32 = vpop.xlane.xlu1 %221  ;;  %v238_v34 = vmul.f32 0.041666668, %v219_v31  ;;  %v253_v36 = vmul.f32 %v688_v28, %v688_v28 }
  0xa9   : > { %v239_v35 = vmul.f32 0.041666668, %v222_v32  ;;  %v257_v37 = vmul.f32 %v690_v29, %v690_v29 }
  0xaa   : > { %v698_v38 = vsub.f32 %v204_v8, %v238_v34  ;;  %v263_v40 = vsel %vm210_vm0, %v253_v36, 0.0 }
  0xab   : > { %v700_v39 = vsub.f32 %v205_v9, %v239_v35  ;;  %273 = vadd.xlane.f32.xlu0 %v272_v33  ;;  %264 = vadd.xlane.f32.xlu1 %v263_v40  ;;  %v231_v41 = vpop.xlane.xlu0 %230  ;;  %v275_v43 = vsel %vm210_vm0, %v257_v37, 0.0 }
  0xac   : > { %v234_v42 = vpop.xlane.xlu1 %233  ;;  %v242_v44 = vmul.f32 0.041666668, %v231_v41  ;;  %v254_v46 = vmul.f32 %v698_v38, %v698_v38 }
  0xad   : > { %v243_v45 = vmul.f32 0.041666668, %v234_v42  ;;  %v255_v47 = vmul.f32 %v700_v39, %v700_v39 }
  0xae   : > { %v708_v48 = vsub.f32 %v208_v12, %v242_v44  ;;  %v266_v50 = vsel %vm210_vm0, %v254_v46, 0.0 }
  0xaf   : > { %v710_v49 = vsub.f32 %v209_v13, %v243_v45  ;;  %276 = vadd.xlane.f32.xlu1 %v275_v43  ;;  %267 = vadd.xlane.f32.xlu0 %v266_v50  ;;  %v269_v51 = vsel %vm210_vm0, %v255_v47, 0.0 }
  0xb0   : > { %v258_v52 = vmul.f32 %v708_v48, %v708_v48 }
  0xb1   : > { %v259_v53 = vmul.f32 %v710_v49, %v710_v49 }
  0xb2   : > { %v278_v54 = vsel %vm210_vm0, %v258_v52, 0.0 }
  0xb3   : > { %270 = vadd.xlane.f32.xlu1 %v269_v51  ;;  %279 = vadd.xlane.f32.xlu0 %v278_v54  ;;  %v281_v55 = vsel %vm210_vm0, %v259_v53, 0.0 }
  0xb7   : > { %282 = vadd.xlane.f32.xlu1 %v281_v55 }
 0x134   : > { %v262_v59 = vpop.xlane.xlu0 %261 }
 0x135   : > { %v284_v60 = vmul.f32 0.041666668, %v262_v59 }
 0x137   : > { %v292_v61 = vadd.f32 1e-05, %v284_v60 }
 0x138   : > { %v265_v62 = vpop.xlane.xlu1 %264  ;;  %v274_v63 = vpop.xlane.xlu0 %273 }
 0x139   : > { %609 = vrsqrt.f32 %v292_v61  ;;  %v285_v0 = vmul.f32 0.041666668, %v265_v62  ;;  %v288_v1 = vmul.f32 0.041666668, %v274_v63 }
 0x13b   : > { %v293_v2 = vadd.f32 1e-05, %v285_v0  ;;  %v296_v3 = vadd.f32 1e-05, %v288_v1 }
 0x13c   : > { %v277_v4 = vpop.xlane.xlu1 %276  ;;  %v268_v5 = vpop.xlane.xlu0 %267 }
 0x13d   : > { %611 = vrsqrt.f32 %v293_v2  ;;  %v289_v6 = vmul.f32 0.041666668, %v277_v4  ;;  %v286_v7 = vmul.f32 0.041666668, %v268_v5 }
 0x13e   : > { %613 = vrsqrt.f32 %v296_v3 }
 0x13f   : > { %v297_v8 = vadd.f32 1e-05, %v289_v6  ;;  %v294_v9 = vadd.f32 1e-05, %v286_v7 }
 0x140   : > { %v271_v10 = vpop.xlane.xlu1 %270  ;;  %v280_v11 = vpop.xlane.xlu0 %279 }
 0x141   : > { %615 = vrsqrt.f32 %v297_v8  ;;  %v287_v12 = vmul.f32 0.041666668, %v271_v10  ;;  %v290_v13 = vmul.f32 0.041666668, %v280_v11 }
 0x142   : > { %617 = vrsqrt.f32 %v294_v9 }
 0x143   : > { %v610_v14 = vpop.eup %609  ;;  %v295_v15 = vadd.f32 1e-05, %v287_v12  ;;  %v298_v16 = vadd.f32 1e-05, %v290_v13 }
 0x144   : > { %v283_v17 = vpop.xlane.xlu1 %282  ;;  %v308_v18 = vmul.f32 %v610_v14, %v680_v20 }
 0x145   : > { %619 = vrsqrt.f32 %v295_v15  ;;  %v291_v19 = vmul.f32 0.041666668, %v283_v17 }
 0x146   : > { %621 = vrsqrt.f32 %v298_v16  ;;  %v323_v27 = vmul.f32 %v549_v22, %v308_v18 }
 0x147   : > { %v612_v23 = vpop.eup %611  ;;  %v299_v24 = vadd.f32 1e-05, %v291_v19 }
 0x148   : > { %v614_v25 = vpop.eup %613  ;;  %v309_v26 = vmul.f32 %v612_v23, %v688_v28  ;;  %v338_v34 = vadd.f32 %v550_v30, %v323_v27 }
 0x149   : > { %623 = vrsqrt.f32 %v299_v24  ;;  %v312_v20 = vmul.f32 %v614_v25, %v682_v21 }
 0x14a   : > { %v324_v31 = vmul.f32 %v549_v22, %v309_v26 }
 0x14b   : > { %v616_v32 = vpop.eup %615  ;;  %v327_v37 = vmul.f32 %v549_v22, %v312_v20 }
 0x14c   : > { %v618_v33 = vpop.eup %617  ;;  %v339_v35 = vadd.f32 %v550_v30, %v324_v31  ;;  %v313_v36 = vmul.f32 %v616_v32, %v690_v29 }
 0x14d   : > { %v310_v40 = vmul.f32 %v618_v33, %v698_v38  ;;  %v342_v45 = vadd.f32 %v550_v30, %v327_v37 }
 0x14e   : > { %v346_v41 = vpack.c.bf16 %v339_v35, %v338_v34  ;;  %v328_v28 = vmul.f32 %v549_v22, %v313_v36 }
 0x14f   : > { %v620_v42 = vpop.eup %619  ;;  %v325_v46 = vmul.f32 %v549_v22, %v310_v40 }
 0x150   : > { %v622_v43 = vpop.eup %621  ;;  %v311_v44 = vmul.f32 %v620_v42, %v700_v39  ;;  %585 = vmatprep.mubr.msk.bf16.mxu0 %vm210_vm0, %v346_v41  ;;  %v343_v21 = vadd.f32 %v550_v30, %v328_v28 }
 0x151   : > { %v314_v47 = vmul.f32 %v622_v43, %v708_v48  ;;  %v340_v38 = vadd.f32 %v550_v30, %v325_v46 }
 0x152   : > { %v348_v50 = vpack.c.bf16 %v343_v21, %v342_v45  ;;  %v326_v51 = vmul.f32 %v549_v22, %v311_v44 }
 0x153   : > { %v624_v29 = vpop.eup %623  ;;  %v329_v54 = vmul.f32 %v549_v22, %v314_v47 }
 0x154   : > { %v315_v52 = vmul.f32 %v624_v29, %v710_v49  ;;  %589 = vmatprep.mubr.msk.bf16.mxu1 %vm210_vm0, %v348_v50  ;;  %v341_v53 = vadd.f32 %v550_v30, %v326_v51 }
 0x155   : > { %v344_v56 = vadd.f32 %v550_v30, %v329_v54 }
 0x156   : > { %v347_v55 = vpack.c.bf16 %v341_v53, %v340_v38  ;;  %v330_v39 = vmul.f32 %v549_v22, %v315_v52 }
 0x158   : > { %586 = vmatmul.mubr.msk.bf16.vlgmr.msra.gmra.mrb[0].mxu0 %vm210_vm0, %v347_v55  ;;  %v345_v57 = vadd.f32 %v550_v30, %v330_v39 }
 0x15a   : > { %v349_v58 = vpack.c.bf16 %v345_v57, %v344_v56 }
 0x15c   : > { %590 = vmatmul.mubr.msk.bf16.vlgmr.msra.gmra.mrb[0].mxu1 %vm210_vm0, %v349_v58 }
 0x22b   : > { %v587_v48 = vpop.f32.mrb[0].mxu0 }
 0x22c   : > { %v569_v49 = vpack.c.bf16 %v587_v48, %v587_v48  ;;  %v412_v59 = vpop.f32.mrb[1].mxu0 }
 0x22d   : > { %v567_v60 = vpack.c.bf16 %v412_v59, %v412_v59  ;;  %v588_v61 = vpop.f32.mrb[2].mxu0 }
 0x22e   : > { %478 = vst.msk [vmem:[%s199_s7 + $0x8] sm:$0xf] %vm475_vm2, %v569_v49  ;;  %v570_v62 = vpack.c.bf16 %v588_v61, %v588_v61  ;;  %v415_v63 = vpop.f32.mrb[3].mxu0 }
 0x22f   : > { %476 = vst.msk [vmem:[%s199_s7] sm:$0xf] %vm475_vm2, %v567_v60  ;;  %v568_v0 = vpack.c.bf16 %v415_v63, %v415_v63  ;;  %v591_v1 = vpop.f32.mrb[0].mxu1 }
 0x230   : > { %479 = vst.msk [vmem:[%s199_s7 + $0xc] sm:$0xf] %vm475_vm2, %v570_v62  ;;  %v573_v2 = vpack.c.bf16 %v591_v1, %v591_v1  ;;  %v428_v3 = vpop.f32.mrb[1].mxu1 }
 0x231   : > { %477 = vst.msk [vmem:[%s199_s7 + $0x4] sm:$0xf] %vm475_vm2, %v568_v0  ;;  %v571_v4 = vpack.c.bf16 %v428_v3, %v428_v3  ;;  %v592_v5 = vpop.f32.mrb[2].mxu1 }
 0x232   : > { %482 = vst.msk [vmem:[%s199_s7 + $0x18] sm:$0xf] %vm475_vm2, %v573_v2  ;;  %v574_v6 = vpack.c.bf16 %v592_v5, %v592_v5  ;;  %v431_v7 = vpop.f32.mrb[3].mxu1 }
 0x233   : > { %480 = vst.msk [vmem:[%s199_s7 + $0x10] sm:$0xf] %vm475_vm2, %v571_v4  ;;  %v572_v8 = vpack.c.bf16 %v431_v7, %v431_v7 }
 0x234   : > { %483 = vst.msk [vmem:[%s199_s7 + $0x1c] sm:$0xf] %vm475_vm2, %v574_v6 }
 0x235   : > { %481 = vst.msk [vmem:[%s199_s7 + $0x14] sm:$0xf] %vm475_vm2, %v572_v8 }
 0x236 PF: > { %s14_s15 = sadd.s32 1, %s631_s15  }
 0x237   : > { %p11_p4 = scmp.ge.s32.totalorder %s14_s15, 4  }
 0x239   :  { %13 = sbr.rel (!%p11_p4) target bundleno = 1 (0x1), region = 66 }

// kernel: sparse_attention_layer_block.6
= control target key start
LH: loop header
LB: loop body
LE: loop exit
PB: predicated region body
PF: predicated region fallthrough
CT: control target
= control target key end

     0   :  { %9 = vsyncpa [#allocation3], 0  ;;  %s972_s0 = inlined_call_operand.hbm [shape: f32[128,24], index: 0, kind: input, shape index: {}]   ;;  %s973_s1 = inlined_call_operand.vmem [shape: f32[1,24], index: 1, kind: input, shape index: {}]   ;;  %s974_s2 = inlined_call_operand.vmem [shape: f32[1,24], index: 2, kind: input, shape index: {}]   ;;  %s975_s3 = inlined_call_operand.vmem [shape: bf16[24,72], index: 3, kind: input, shape index: {}]   ;;  %s976_s4 = inlined_call_operand.vmem [shape: bf16[128,72], index: 4, kind: output, shape index: {}]  }
   0x1   :  { %11 = vsyncpa [#allocation3 + $0x1], 0  ;;  %s785_s15 = smov 0   ;;  %s787_s16 = smov 0  }
   0x2   :  { %s789_s17 = smov 0   ;;  %s791_s18 = smov 0  }
   0x3 LB: > { %s570_s19 = sadd.s32 4294967295, %s755_s18   ;;  %s805_s20 = sadd.s32 1, %s755_s18   ;;  %s755_s18 = sphi %s791_s18, %s983_s18   ;;  %s751_s17 = sphi %s789_s17, %s982_s17   ;;  %s747_s16 = sphi %s787_s16, %s981_s16   ;;  %s743_s15 = sphi %s785_s15, %s980_s15  }
   0x4   : > { %s21_s21 = ssub.s32 %s755_s18, %s805_s20  ;;  %s24_s22 = sadd.s32 1, %s751_s17 }
   0x5   : > { %p22_p0 = scmp.eq.s32.totalorder %s21_s21, 0  ;;  %p31_p1 = scmp.ne.s32.totalorder %s751_s17, %s747_s16 }
   0x6   : > { %p32_p2 = scmp.eq.s32.totalorder %s755_s18, 0  ;;  %p37_p3 = scmp.ne.s32.totalorder %s747_s16, %s743_s15 }
   0x7   : > { %s815_s23 = scalar_select %p22_p0, %s751_s17, %s24_s22  }
   0x8   : > { %p33_p4 = por %p32_p2, %p31_p1  ;;  %p38_p5 = scmp.eq.s32.totalorder %s570_s19, 0 }
   0x9   : > { %p638_p6 = scmp.lt.s32.totalorder %s755_s18, 2  ;;  %s159_s25 = sand.u32 1, %s751_s17  }
   0xa   : > { %p820_p7 = por %p38_p5, %p37_p3  ;;  %s574_s26 = sshll.u32 %s159_s25, 6 }
   0xb   : > { %s599_s27 = sshll.u32 %s755_s18, 10  ;;  %s163_s5 = scalar_lea.vmem [#allocation2], %s574_s26 }
   0xc   : > { %s829_s30 = scalar_lea.hbm %s972_s0, %s599_s27  ;;  %s170_s6 = sshll.u32 %s163_s5, 4  ;;  %s831_s6 = int_to_ptr.vmem [resolvable:$true] %s170_s6 }
   0xd   : > { %p833_p8 = pnand %p638_p6, %p33_p4  ;;  %s838_s8 = scalar_lea.sflag [#allocation3], %s159_s25 }
   0xe   : > { %s691_s9 = scalar_lea.hbm %s829_s30, 1024  ;;  %s696_s12 = scalar_lea.hbm %s972_s0, 2048 }
   0xf   : > { %p692_p10 = scmp.ne.s32.totalorder %s829_s30, %s691_s9  ;;  %p693_p11 = pneg %p833_p8 }
  0x10   : > { %p697_p0 = scmp.lt.u32.totalorder %s829_s30, %s972_s0  ;;  %p698_p1 = scmp.lt.u32.totalorder %s696_s12, %s691_s9 }
  0x11   : > { %p694_p12 = pnand %p693_p11, %p692_p10  ;;  %p700_p3 = scmp.lt.u32.totalorder %s691_s9, %s829_s30 }
  0x12   : > { %p699_p2 = por %p698_p1, %p697_p0 }
  0x13   : > { %p695_p13 = pneg %p694_p12 }
  0x14   : > { %p701_p4 = por %p700_p3, %p699_p2 }
  0x16   : > { %p702_p5 = pnand %p701_p4, %p695_p13 }
  0x18   : > { %705 = shalt.err (!%p702_p5)
}
  0x19   : > { %s706_s15 = scalar_lea.vmem %s831_s6, 1024  ;;  %s757_s21 = smov [#allocation2]  }
  0x1a   : > { %p707_p6 = scmp.ne.s32.totalorder %s831_s6, %s706_s15  ;;  %s711_s22 = sshll.u32 %s757_s21, 4  ;;  %s712_s22 = int_to_ptr.vmem [resolvable:$false] %s711_s22 }
  0x1b   : > { %s713_s25 = scalar_lea.vmem %s712_s22, 2048  ;;  %p714_p9 = scmp.lt.s32.totalorder %s831_s6, %s712_s22 }
  0x1c   : > { %p709_p10 = pnand %p707_p6, %p693_p11  ;;  %p715_p0 = scmp.lt.s32.totalorder %s713_s25, %s706_s15 }
  0x1e   : > { %p710_p12 = pneg %p709_p10  ;;  %p716_p1 = por %p715_p0, %p714_p9 }
  0x20   : > { %p717_p2 = pnand %p716_p1, %p710_p12 }
  0x22   : > { %720 = shalt.err (!%p717_p2)
}
  0x23   : > { %s758_s26 = smov 128   ;;  %s759_s27 = smov 8  }
  0x24   : > { %637 = dma.hbm_to_vmem [thread:$0]  (!%p833_p8), %s829_s30, 1024, %s831_s6, %s838_s8, %s758_s26, %s758_s26, %s759_s27  }
  0x25   : > { %p178_p11 = scmp.lt.s32.totalorder %s755_s18, 3  ;;  %p979_p13 = scmp.ge.s32.totalorder %s755_s18, 1 }
  0x27   : > { %p179_p3 = pnand %p979_p13, %p178_p11 }
  0x28   : > { %s184_s28 = sand.u32 (!%p179_p3), 1, %s747_s16  }
  0x29   : > { %182 = sbr.rel (%p179_p3) target bundleno = 599 (0x257), region = 36  ;;  %s578_s29 = sshll.u32 (!%p179_p3), %s184_s28, 6 }
  0x2a   : > { %s185_s5 = scalar_lea.sflag (!%p179_p3), [#allocation3], %s184_s28  ;;  %s188_s9 = scalar_lea.vmem (!%p179_p3), [#allocation2], %s578_s29 }
  0x30   : > { %738 = dma.done.wait (%p820_p7), %s185_s5, 1024  }
  0x31   : > { %740 = vsyncadd (%p820_p7), %s185_s5, 4294966272  ;;  %vm229_vm0 = vcmask 195584   ;;  %v221_v0 = vld [vmem:[%s188_s9] sm:$0xff]  ;;  %v222_v2 = vld [vmem:[%s188_s9 + $0x8] sm:$0xff]  ;;  %vm393_vm1 = vcmask 1043456   ;;  %s579_s13 = sshll.u32 %s570_s19, 3 }
  0x32   : > { %v225_v1 = vld [vmem:[%s188_s9 + $0x20] sm:$0xff]  ;;  %v230_v3 = vsel %vm229_vm0, %v221_v0, 0.0  ;;  %v226_v5 = vld [vmem:[%s188_s9 + $0x28] sm:$0xff]  ;;  %v233_v6 = vsel %vm229_vm0, %v222_v2, 0.0  ;;  %v223_v8 = vld [vmem:[%s188_s9 + $0x10] sm:$0xff]  ;;  %p215_p7 = scmp.lt.s32.totalorder %s579_s13, 15 }
  0x33   : > { %v242_v4 = vsel %vm229_vm0, %v225_v1, 0.0  ;;  %231 = vadd.xlane.f32.xlu0 %v230_v3  ;;  %v245_v7 = vsel %vm229_vm0, %v226_v5, 0.0  ;;  %v224_v9 = vld [vmem:[%s188_s9 + $0x18] sm:$0xff]  ;;  %v236_v10 = vsel %vm229_vm0, %v223_v8, 0.0  ;;  %v227_v12 = vld [vmem:[%s188_s9 + $0x30] sm:$0xff]  ;;  %v673_v56 = vld [vmem:[%s975_s3] sm:$0xff]  }
  0x34   : > { %243 = vadd.xlane.f32.xlu1 %v242_v4  ;;  %v239_v11 = vsel %vm229_vm0, %v224_v9, 0.0  ;;  %v228_v13 = vld [vmem:[%s188_s9 + $0x38] sm:$0xff]  ;;  %v248_v14 = vsel %vm229_vm0, %v227_v12, 0.0  ;;  %614 = vmatprep.subr.bf16.mxu0 %v673_v56  ;;  %v674_v57 = vld [vmem:[%s975_s3 + $0x8] ss:$0 sps:$4 sm:$0xff]   ;;  %s985_s13 = smov (!%p215_p7, %s579_s13), 15 }
  0x35   : > { %v251_v15 = vsel %vm229_vm0, %v228_v13, 0.0  ;;  %626 = vmatprep.subr.bf16.mxu1 %v673_v56  ;;  %615 = vmatpush3.bf16.msra.mxu0 %v673_v56  ;;  %v395_v58 = vsel %vm393_vm1, %v674_v57, 0  ;;  %s580_s14 = sshll.u32 %s985_s13, 2  ;;  %vm494_vm2 = vcmask 584704  }
  0x36   : > { %628 = vmatpush3.bf16.msra.mxu1 %v673_v56  ;;  %630 = vmatprep.subr.msk.bf16.mxu0 %vm393_vm1, %v674_v57  ;;  %s218_s22 = scalar_lea.vmem %s976_s4, %s580_s14 }
  0x37   : > { %234 = vadd.xlane.f32.xlu0 %v233_v6  ;;  %631 = vmatprep.subr.msk.bf16.mxu1 %vm393_vm1, %v674_v57 }
  0x38   : > { %246 = vadd.xlane.f32.xlu1 %v245_v7 }
  0x39   : > { %617 = vmatpush3.bf16.msra.mxu0 %v395_v58 }
  0x3a   : > { %629 = vmatpush3.bf16.msra.mxu1 %v395_v58 }
  0x3b   : > { %237 = vadd.xlane.f32.xlu0 %v236_v10 }
  0x3c   : > { %240 = vadd.xlane.f32.xlu1 %v239_v11 }
  0x3f   : > { %249 = vadd.xlane.f32.xlu0 %v248_v14 }
  0x40   : > { %252 = vadd.xlane.f32.xlu1 %v251_v15 }
  0xc0   : > { %v232_v16 = vpop.xlane.xlu0 %231 }
  0xc1   : > { %v244_v17 = vpop.xlane.xlu1 %243  ;;  %v255_v18 = vmul.f32 0.041666668, %v232_v16 }
  0xc2   : > { %v259_v19 = vmul.f32 0.041666668, %v244_v17 }
  0xc3   : > { %v882_v20 = vsub.f32 %v221_v0, %v255_v18 }
  0xc4   : > { %v884_v21 = vsub.f32 %v225_v1, %v259_v19  ;;  %v235_v22 = vpop.xlane.xlu0 %234 }
  0xc5   : > { %v247_v23 = vpop.xlane.xlu1 %246  ;;  %v256_v24 = vmul.f32 0.041666668, %v235_v22  ;;  %v271_v26 = vmul.f32 %v882_v20, %v882_v20  ;;  %v581_v22 = vld [vmem:[%s973_s1] ss:$0 sm:$0xff] }
  0xc6   : > { %v260_v25 = vmul.f32 0.041666668, %v247_v23  ;;  %v275_v27 = vmul.f32 %v884_v21, %v884_v21 }
  0xc7   : > { %v890_v28 = vsub.f32 %v222_v2, %v256_v24  ;;  %v279_v30 = vsel %vm229_vm0, %v271_v26, 0.0 }
  0xc8   : > { %v892_v29 = vsub.f32 %v226_v5, %v260_v25  ;;  %280 = vadd.xlane.f32.xlu0 %v279_v30  ;;  %v238_v31 = vpop.xlane.xlu0 %237  ;;  %v291_v33 = vsel %vm229_vm0, %v275_v27, 0.0  ;;  %v582_v30 = vld [vmem:[%s974_s2] ss:$0 sm:$0xff] }
  0xc9   : > { %v241_v32 = vpop.xlane.xlu1 %240  ;;  %v257_v34 = vmul.f32 0.041666668, %v238_v31  ;;  %v272_v36 = vmul.f32 %v890_v28, %v890_v28 }
  0xca   : > { %v258_v35 = vmul.f32 0.041666668, %v241_v32  ;;  %v276_v37 = vmul.f32 %v892_v29, %v892_v29 }
  0xcb   : > { %v900_v38 = vsub.f32 %v223_v8, %v257_v34  ;;  %v282_v40 = vsel %vm229_vm0, %v272_v36, 0.0 }
  0xcc   : > { %v902_v39 = vsub.f32 %v224_v9, %v258_v35  ;;  %292 = vadd.xlane.f32.xlu0 %v291_v33  ;;  %283 = vadd.xlane.f32.xlu1 %v282_v40  ;;  %v250_v41 = vpop.xlane.xlu0 %249  ;;  %v294_v43 = vsel %vm229_vm0, %v276_v37, 0.0 }
  0xcd   : > { %v253_v42 = vpop.xlane.xlu1 %252  ;;  %v261_v44 = vmul.f32 0.041666668, %v250_v41  ;;  %v273_v46 = vmul.f32 %v900_v38, %v900_v38 }
  0xce   : > { %v262_v45 = vmul.f32 0.041666668, %v253_v42  ;;  %v274_v47 = vmul.f32 %v902_v39, %v902_v39 }
  0xcf   : > { %v910_v48 = vsub.f32 %v227_v12, %v261_v44  ;;  %v285_v50 = vsel %vm229_vm0, %v273_v46, 0.0 }
  0xd0   : > { %v912_v49 = vsub.f32 %v228_v13, %v262_v45  ;;  %295 = vadd.xlane.f32.xlu1 %v294_v43  ;;  %286 = vadd.xlane.f32.xlu0 %v285_v50  ;;  %v288_v51 = vsel %vm229_vm0, %v274_v47, 0.0 }
  0xd1   : > { %v277_v52 = vmul.f32 %v910_v48, %v910_v48 }
  0xd2   : > { %v278_v53 = vmul.f32 %v912_v49, %v912_v49 }
  0xd3   : > { %v297_v54 = vsel %vm229_vm0, %v277_v52, 0.0 }
  0xd4   : > { %289 = vadd.xlane.f32.xlu1 %v288_v51  ;;  %298 = vadd.xlane.f32.xlu0 %v297_v54  ;;  %v300_v55 = vsel %vm229_vm0, %v278_v53, 0.0 }
  0xd8   : > { %301 = vadd.xlane.f32.xlu1 %v300_v55 }
 0x155   : > { %v281_v59 = vpop.xlane.xlu0 %280 }
 0x156   : > { %v303_v60 = vmul.f32 0.041666668, %v281_v59 }
 0x158   : > { %v311_v61 = vadd.f32 1e-05, %v303_v60 }
 0x159   : > { %v284_v62 = vpop.xlane.xlu1 %283  ;;  %v293_v63 = vpop.xlane.xlu0 %292 }
 0x15a   : > { %675 = vrsqrt.f32 %v311_v61  ;;  %v304_v0 = vmul.f32 0.041666668, %v284_v62  ;;  %v307_v1 = vmul.f32 0.041666668, %v293_v63 }
 0x15c   : > { %v312_v2 = vadd.f32 1e-05, %v304_v0  ;;  %v315_v3 = vadd.f32 1e-05, %v307_v1 }
 0x15d   : > { %v296_v4 = vpop.xlane.xlu1 %295  ;;  %v287_v5 = vpop.xlane.xlu0 %286 }
 0x15e   : > { %677 = vrsqrt.f32 %v312_v2  ;;  %v308_v6 = vmul.f32 0.041666668, %v296_v4  ;;  %v305_v7 = vmul.f32 0.041666668, %v287_v5 }
 0x15f   : > { %679 = vrsqrt.f32 %v315_v3 }
 0x160   : > { %v316_v8 = vadd.f32 1e-05, %v308_v6  ;;  %v313_v9 = vadd.f32 1e-05, %v305_v7 }
 0x161   : > { %v290_v10 = vpop.xlane.xlu1 %289  ;;  %v299_v11 = vpop.xlane.xlu0 %298 }
 0x162   : > { %681 = vrsqrt.f32 %v316_v8  ;;  %v306_v12 = vmul.f32 0.041666668, %v290_v10  ;;  %v309_v13 = vmul.f32 0.041666668, %v299_v11 }
 0x163   : > { %683 = vrsqrt.f32 %v313_v9 }
 0x164   : > { %v676_v14 = vpop.eup %675  ;;  %v314_v15 = vadd.f32 1e-05, %v306_v12  ;;  %v317_v16 = vadd.f32 1e-05, %v309_v13 }
 0x165   : > { %v302_v17 = vpop.xlane.xlu1 %301  ;;  %v327_v18 = vmul.f32 %v676_v14, %v882_v20 }
 0x166   : > { %685 = vrsqrt.f32 %v314_v15  ;;  %v310_v19 = vmul.f32 0.041666668, %v302_v17 }
 0x167   : > { %687 = vrsqrt.f32 %v317_v16  ;;  %v342_v27 = vmul.f32 %v581_v22, %v327_v18 }
 0x168   : > { %v678_v23 = vpop.eup %677  ;;  %v318_v24 = vadd.f32 1e-05, %v310_v19 }
 0x169   : > { %v680_v25 = vpop.eup %679  ;;  %v328_v26 = vmul.f32 %v678_v23, %v890_v28  ;;  %v357_v34 = vadd.f32 %v582_v30, %v342_v27 }
 0x16a   : > { %689 = vrsqrt.f32 %v318_v24  ;;  %v331_v20 = vmul.f32 %v680_v25, %v884_v21 }
 0x16b   : > { %v343_v31 = vmul.f32 %v581_v22, %v328_v26 }
 0x16c   : > { %v682_v32 = vpop.eup %681  ;;  %v346_v37 = vmul.f32 %v581_v22, %v331_v20 }
 0x16d   : > { %v684_v33 = vpop.eup %683  ;;  %v358_v35 = vadd.f32 %v582_v30, %v343_v31  ;;  %v332_v36 = vmul.f32 %v682_v32, %v892_v29 }
 0x16e   : > { %v329_v40 = vmul.f32 %v684_v33, %v900_v38  ;;  %v361_v45 = vadd.f32 %v582_v30, %v346_v37 }
 0x16f   : > { %v365_v41 = vpack.c.bf16 %v358_v35, %v357_v34  ;;  %v347_v28 = vmul.f32 %v581_v22, %v332_v36 }
 0x170   : > { %v686_v42 = vpop.eup %685  ;;  %v344_v46 = vmul.f32 %v581_v22, %v329_v40 }
 0x171   : > { %v688_v43 = vpop.eup %687  ;;  %v330_v44 = vmul.f32 %v686_v42, %v902_v39  ;;  %618 = vmatprep.mubr.msk.bf16.mxu0 %vm229_vm0, %v365_v41  ;;  %v362_v21 = vadd.f32 %v582_v30, %v347_v28 }
 0x172   : > { %v333_v47 = vmul.f32 %v688_v43, %v910_v48  ;;  %v359_v38 = vadd.f32 %v582_v30, %v344_v46 }
 0x173   : > { %v367_v50 = vpack.c.bf16 %v362_v21, %v361_v45  ;;  %v345_v51 = vmul.f32 %v581_v22, %v330_v44 }
 0x174   : > { %v690_v29 = vpop.eup %689  ;;  %v348_v54 = vmul.f32 %v581_v22, %v333_v47 }
 0x175   : > { %v334_v52 = vmul.f32 %v690_v29, %v912_v49  ;;  %622 = vmatprep.mubr.msk.bf16.mxu1 %vm229_vm0, %v367_v50  ;;  %v360_v53 = vadd.f32 %v582_v30, %v345_v51 }
 0x176   : > { %v363_v56 = vadd.f32 %v582_v30, %v348_v54 }
 0x177   : > { %v366_v55 = vpack.c.bf16 %v360_v53, %v359_v38  ;;  %v349_v39 = vmul.f32 %v581_v22, %v334_v52 }
 0x179   : > { %619 = vmatmul.mubr.msk.bf16.vlgmr.msra.gmra.mrb[0].mxu0 %vm229_vm0, %v366_v55  ;;  %v364_v57 = vadd.f32 %v582_v30, %v349_v39 }
 0x17b   : > { %v368_v58 = vpack.c.bf16 %v364_v57, %v363_v56 }
 0x17d   : > { %623 = vmatmul.mubr.msk.bf16.vlgmr.msra.gmra.mrb[0].mxu1 %vm229_vm0, %v368_v58 }
 0x24c   : > { %v620_v48 = vpop.f32.mrb[0].mxu0 }
 0x24d   : > { %v602_v49 = vpack.c.bf16 %v620_v48, %v620_v48  ;;  %v431_v59 = vpop.f32.mrb[1].mxu0 }
 0x24e   : > { %v600_v60 = vpack.c.bf16 %v431_v59, %v431_v59  ;;  %v621_v61 = vpop.f32.mrb[2].mxu0 }
 0x24f   : > { %497 = vst.msk [vmem:[%s218_s22 + $0x8] sm:$0xf] %vm494_vm2, %v602_v49  ;;  %v603_v62 = vpack.c.bf16 %v621_v61, %v621_v61  ;;  %v434_v63 = vpop.f32.mrb[3].mxu0 }
 0x250   : > { %495 = vst.msk [vmem:[%s218_s22] sm:$0xf] %vm494_vm2, %v600_v60  ;;  %v601_v0 = vpack.c.bf16 %v434_v63, %v434_v63  ;;  %v624_v1 = vpop.f32.mrb[0].mxu1 }
 0x251   : > { %498 = vst.msk [vmem:[%s218_s22 + $0xc] sm:$0xf] %vm494_vm2, %v603_v62  ;;  %v606_v2 = vpack.c.bf16 %v624_v1, %v624_v1  ;;  %v447_v3 = vpop.f32.mrb[1].mxu1 }
 0x252   : > { %496 = vst.msk [vmem:[%s218_s22 + $0x4] sm:$0xf] %vm494_vm2, %v601_v0  ;;  %v604_v4 = vpack.c.bf16 %v447_v3, %v447_v3  ;;  %v625_v5 = vpop.f32.mrb[2].mxu1 }
 0x253   : > { %501 = vst.msk [vmem:[%s218_s22 + $0x18] sm:$0xf] %vm494_vm2, %v606_v2  ;;  %v607_v6 = vpack.c.bf16 %v625_v5, %v625_v5  ;;  %v450_v7 = vpop.f32.mrb[3].mxu1 }
 0x254   : > { %499 = vst.msk [vmem:[%s218_s22 + $0x10] sm:$0xf] %vm494_vm2, %v604_v4  ;;  %v605_v8 = vpack.c.bf16 %v450_v7, %v450_v7 }
 0x255   : > { %502 = vst.msk [vmem:[%s218_s22 + $0x1c] sm:$0xf] %vm494_vm2, %v607_v6 }
 0x256   : > { %500 = vst.msk [vmem:[%s218_s22 + $0x14] sm:$0xf] %vm494_vm2, %v605_v8 }
 0x257 PF: > { %p14_p8 = scmp.ge.s32.totalorder %s805_s20, 4   ;;  %s980_s15 = smov %s747_s16 }
 0x258   : > { %s981_s16 = smov %s751_s17  ;;  %s982_s17 = smov %s815_s23 }
 0x259   : > { %s983_s18 = smov %s805_s20  ;;  %16 = sbr.rel (!%p14_p8) target bundleno = 3 (0x3), region = 76 }
 0x260   :  { %525 = vsyncpa [#allocation3], 1 }
 0x261   :  { %527 = vsyncpa [#allocation3 + $0x1], 1 }

// kernel: sparse_attention_layer_block.8
= control target key start
LH: loop header
LB: loop body
LE: loop exit
PB: predicated region body
PF: predicated region fallthrough
CT: control target
= control target key end

     0   :  { %s832_s15 = smov 0   ;;  %s973_s0 = inlined_call_operand.vmem [shape: bf16[2,64,72], index: 0, kind: input, shape index: {}]   ;;  %s974_s1 = inlined_call_operand.vmem [shape: f32[2,64,24], index: 1, kind: input, shape index: {}]   ;;  %s975_s2 = inlined_call_operand.vmem [shape: f32[24,24], index: 2, kind: input, shape index: {}]   ;;  %s976_s3 = inlined_call_operand.vmem [shape: bf16[24,24], index: 3, kind: input, shape index: {}]   ;;  %s977_s4 = inlined_call_operand.vmem [shape: f32[2,64,24], index: 4, kind: output, shape index: {}]  }
   0x1 LB: > { %s692_s16 = sadd.s32 4294967295, %s803_s15   ;;  %p696_p0 = scmp.ge.s32.totalorder %s803_s15, 1  ;;  %s803_s15 = sphi %s832_s15, %s14_s15  }
   0x2   : > { %p172_p1 = scmp.lt.s32.totalorder %s803_s15, 3 }
   0x4   : > { %p173_p2 = pnand %p696_p0, %p172_p1 }
   0x5   : > { %p203_p3 = scmp.lt.s32.totalorder (!%p173_p2), %s692_s16, 1  ;;  %vm279_vm0 = vcmask (!%p173_p2), 392384   ;;  %vm243_vm1 = vcmask (!%p173_p2), 195584   ;;  %s805_s21 = smov (!%p173_p2), 104   ;;  %vm347_vm2 = vcmask (!%p173_p2), 523264   ;;  %vm447_vm3 = vcmask (!%p173_p2), 1043456  }
   0x6   : > { %176 = sbr.rel (%p173_p2) target bundleno = 985 (0x3d9), region = 36  ;;  %s806_s26 = smov (!%p173_p2), 80  }
   0xd   : > { %s979_s16 = smov (!%p203_p3, %s692_s16), 1 }
   0xe   : > { %s719_s17 = sshll.u32 %s979_s16, 5  ;;  %s720_s7 = sshll.u32 %s979_s16, 6 }
   0xf   : > { %s207_s20 = scalar_lea.vmem %s973_s0, %s719_s17  ;;  %s212_s10 = scalar_lea.vmem %s974_s1, %s720_s7 }
  0x10   : > { %v846_v0 = vld [vmem:[%s207_s20] sm:$0xff]   ;;  %v848_v1 = vld [vmem:[%s207_s20 + $0x8] sm:$0xff]   ;;  %v850_v2 = vld [vmem:[%s207_s20 + $0x10] sm:$0xff]   ;;  %s217_s13 = scalar_lea.vmem %s977_s4, %s720_s7 }
  0x11   : > { %v853_v3 = vunpack.c.l.bf16 %v846_v0  ;;  %v856_v4 = vunpack.c.h.bf16 %v846_v0  ;;  %v859_v5 = vunpack.c.l.bf16 %v848_v1  ;;  %v862_v6 = vunpack.c.h.bf16 %v848_v1  ;;  %v864_v7 = vld [vmem:[%s207_s20 + $0x18] sm:$0xff]  }
  0x12   : > { %v867_v8 = vunpack.c.l.bf16 %v850_v2  ;;  %v876_v12 = vunpack.c.h.bf16 %v850_v2  ;;  %v882_v15 = vunpack.c.l.bf16 %v864_v7  ;;  %v890_v20 = vunpack.c.h.bf16 %v864_v7 }
  0x13   : > { %v235_v9 = vmul.f32 %v853_v3, %v853_v3  ;;  %v236_v10 = vmul.f32 %v856_v4, %v856_v4  ;;  %v237_v11 = vmul.f32 %v859_v5, %v859_v5  ;;  %v238_v13 = vmul.f32 %v862_v6, %v862_v6 }
  0x14   : > { %v239_v16 = vmul.f32 %v867_v8, %v867_v8  ;;  %v240_v22 = vmul.f32 %v876_v12, %v876_v12  ;;  %v241_v28 = vmul.f32 %v882_v15, %v882_v15  ;;  %v242_v33 = vmul.f32 %v890_v20, %v890_v20 }
  0x15   : > { %v280_v14 = vsel %vm279_vm0, %v235_v9, 0.0  ;;  %v245_v17 = vsel %vm243_vm1, %v236_v10, 0.0  ;;  %v281_v18 = vsel %vm279_vm0, %v236_v10, 0.0  ;;  %v283_v19 = vsel %vm279_vm0, %v237_v11, 0.0 }
  0x16   : > { %v282_v21 = vadd.f32 %v281_v18, %v280_v14  ;;  %v247_v23 = vsel %vm243_vm1, %v237_v11, 0.0  ;;  %v285_v24 = vsel %vm279_vm0, %v238_v13, 0.0  ;;  %v244_v25 = vsel %vm243_vm1, %v235_v9, 0.0 }
  0x17   : > { %v246_v27 = vadd.f32 %v245_v17, %v244_v25  ;;  %v249_v29 = vsel %vm243_vm1, %v238_v13, 0.0  ;;  %v287_v30 = vsel %vm279_vm0, %v239_v16, 0.0  ;;  %v251_v34 = vsel %vm243_vm1, %v239_v16, 0.0 }
  0x18   : > { %v284_v26 = vadd.f32 %v283_v19, %v282_v21  ;;  %v289_v35 = vsel %vm279_vm0, %v240_v22, 0.0  ;;  %v253_v38 = vsel %vm243_vm1, %v240_v22, 0.0  ;;  %v291_v39 = vsel %vm279_vm0, %v241_v28, 0.0 }
  0x19   : > { %v248_v32 = vadd.f32 %v247_v23, %v246_v27  ;;  %v255_v42 = vsel %vm243_vm1, %v241_v28, 0.0  ;;  %v293_v43 = vsel %vm279_vm0, %v242_v33, 0.0  ;;  %v257_v46 = vsel %vm243_vm1, %v242_v33, 0.0 }
  0x1a   : > { %v286_v31 = vadd.f32 %v285_v24, %v284_v26 }
  0x1b   : > { %v250_v37 = vadd.f32 %v249_v29, %v248_v32 }
  0x1c   : > { %v288_v36 = vadd.f32 %v287_v30, %v286_v31 }
  0x1d   : > { %v252_v41 = vadd.f32 %v251_v34, %v250_v37  ;;  %v784_v37 = vld [vmem:[%s976_s3 + $0x8] ss:$0 sps:$4 sm:$0xff]  }
  0x1e   : > { %v290_v40 = vadd.f32 %v289_v35, %v288_v36  ;;  %v783_v36 = vld [vmem:[%s976_s3] sm:$0xff]  }
  0x1f   : > { %v254_v45 = vadd.f32 %v253_v38, %v252_v41  ;;  %750 = vmatprep.subr.bf16.mxu1 %v783_v36  ;;  %v449_v38 = vsel %vm447_vm3, %v784_v37, 0  ;;  %v404_v41 = vld [vmem:[%s975_s2 + $0x10] sm:$0xff] }
  0x20   : > { %v292_v44 = vadd.f32 %v291_v39, %v290_v40  ;;  %751 = vmatpush3.bf16.msra.mxu1 %v783_v36  ;;  %v402_v39 = vld [vmem:[%s975_s2] sm:$0xff] }
  0x21   : > { %v256_v48 = vadd.f32 %v255_v42, %v254_v45  ;;  %770 = vmatprep.subr.msk.bf16.mxu1 %vm447_vm3, %v784_v37 }
  0x22   : > { %v294_v47 = vadd.f32 %v293_v43, %v292_v44  ;;  %v403_v43 = vld [vmem:[%s975_s2 + $0x8] sm:$0xff] }
  0x23   : > { %v258_v50 = vadd.f32 %v257_v46, %v256_v48 }
  0x24   : > { %v295_v49 = vrot.slane %v294_v47, 4  ;;  %753 = vmatpush3.bf16.msra.mxu1 %v449_v38 }
  0x25   : > { %v259_v52 = vrot.slane %v258_v50, 4 }
  0x26   : > { %v296_v51 = vadd.f32 %v295_v49, %v294_v47 }
  0x27   : > { %v260_v54 = vadd.f32 %v259_v52, %v258_v50 }
  0x28   : > { %v297_v53 = vrot.slane %v296_v51, 2 }
  0x29   : > { %v261_v56 = vrot.slane %v260_v54, 2 }
  0x2a   : > { %v298_v55 = vadd.f32 %v297_v53, %v296_v51 }
  0x2b   : > { %v262_v58 = vadd.f32 %v261_v56, %v260_v54 }
  0x2c   : > { %v299_v57 = vrot.slane %v298_v55, 1 }
  0x2d   : > { %v263_v60 = vrot.slane %v262_v58, 1 }
  0x2e   : > { %v300_v59 = vadd.f32 %v299_v57, %v298_v55 }
  0x2f   : > { %v264_v62 = vadd.f32 %v263_v60, %v262_v58 }
  0x30   : > { %v301_v61 = vmax.f32 %v300_v59, 1e-24 }
  0x31   : > { %v265_v63 = vmax.f32 %v264_v62, 1e-24 }
  0x32   : > { %793 = vrsqrt.f32 %v301_v61 }
  0x33   : > { %795 = vrsqrt.f32 %v265_v63  ;;  %v503_v63 = vld [vmem:[%s212_s10 + $0x10] sm:$0xff] }
  0x3c   : > { %v794_v9 = vpop.eup %793 }
  0x3d   : > { %v303_v10 = vmul.f32 %v794_v9, %v853_v3  ;;  %v304_v11 = vmul.f32 %v794_v9, %v856_v4  ;;  %v305_v13 = vmul.f32 %v794_v9, %v859_v5  ;;  %v306_v14 = vmul.f32 %v794_v9, %v862_v6  ;;  %v796_v16 = vpop.eup %795 }
  0x3e   : > { %v307_v17 = vmul.f32 %v794_v9, %v867_v8  ;;  %v308_v18 = vmul.f32 %v794_v9, %v876_v12  ;;  %v309_v19 = vmul.f32 %v794_v9, %v882_v15  ;;  %v310_v21 = vmul.f32 %v794_v9, %v890_v20  ;;  %v501_v9 = vld [vmem:[%s212_s10] sm:$0xff] }
  0x3f   : > { %v311_v22 = vpack.c.bf16 %v304_v11, %v303_v10  ;;  %v267_v23 = vmul.f32 %v796_v16, %v853_v3  ;;  %v268_v24 = vmul.f32 %v796_v16, %v856_v4  ;;  %v312_v25 = vpack.c.bf16 %v306_v14, %v305_v13  ;;  %v504_v11 = vld [vmem:[%s212_s10 + $0x18] sm:$0xff] }
  0x40   : > { %v313_v26 = vpack.c.bf16 %v308_v18, %v307_v17  ;;  %v269_v27 = vmul.f32 %v796_v16, %v859_v5  ;;  %v270_v28 = vmul.f32 %v796_v16, %v862_v6  ;;  %v271_v30 = vmul.f32 %v796_v16, %v867_v8 }
  0x41   : > { %335 = vrot.lane.b32.xlu0 %v311_v22, %s805_s21  ;;  %v275_v29 = vpack.c.bf16 %v268_v24, %v267_v23  ;;  %v272_v31 = vmul.f32 %v796_v16, %v876_v12  ;;  %v273_v32 = vmul.f32 %v796_v16, %v882_v15  ;;  %v314_v33 = vpack.c.bf16 %v310_v21, %v309_v19  ;;  %v507_v23 = vld [vmem:[%s212_s10 + $0x30] sm:$0xff]  ;;  %v505_v24 = vld [vmem:[%s212_s10 + $0x20] sm:$0xff] }
  0x42   : > { %339 = vrot.lane.b32.xlu1 %v313_v26, %s805_s21  ;;  %v276_v3 = vpack.c.bf16 %v270_v28, %v269_v27  ;;  %v274_v4 = vmul.f32 %v796_v16, %v890_v20  ;;  %v502_v16 = vld [vmem:[%s212_s10 + $0x8] sm:$0xff]  ;;  %v508_v26 = vld [vmem:[%s212_s10 + $0x38] sm:$0xff] }
  0x43   : > { %v277_v34 = vpack.c.bf16 %v272_v31, %v271_v30 }
  0x44   : > { %v278_v35 = vpack.c.bf16 %v274_v4, %v273_v32 }
  0x45   : > { %337 = vrot.lane.b32.xlu0 %v312_v25, %s805_s21 }
  0x46   : > { %341 = vrot.lane.b32.xlu1 %v314_v33, %s805_s21 }
  0x63   : > { %315 = vxpose.xlu0.c.b16.start [1/4] (short) (narrow) %v275_v29, 32  ;;  %v506_v29 = vld [vmem:[%s212_s10 + $0x28] sm:$0xff] }
  0x67   : > { %316 = vxpose.xlu0.c.b16.cont [2/4] (short) (narrow) %v276_v3, 32 }
  0x6b   : > { %317 = vxpose.xlu0.c.b16.cont [3/4] (short) (narrow) %v277_v34, 32 }
  0x6f   : > { %318 = vxpose.xlu0.c.b16.end [4/4] (short) (narrow) %v278_v35, 32 }
  0x78   : > { %531 = vrot.lane.b32.xlu0 %v848_v1, %s806_s26 }
  0xb3   : > { %v336_v5 = vpop.permute.xlu0 %335 }
  0xb4   : > { %738 = vmatprep.subr.bf16.mxu0 %v336_v5  ;;  %v340_v6 = vpop.permute.xlu1 %339 }
  0xb5   : > { %739 = vmatpush3.bf16.msra.mxu0 %v336_v5 }
  0xb7   : > { %v338_v8 = vpop.permute.xlu0 %337 }
  0xb8   : > { %740 = vmatprep.subr.bf16.mxu0 %v338_v8  ;;  %v342_v12 = vpop.permute.xlu1 %341 }
  0xb9   : > { %741 = vmatpush3.bf16.msra.mxu0 %v338_v8 }
  0xba   : > { %742 = vmatprep.subr.bf16.mxu0 %v340_v6 }
  0xbd   : > { %743 = vmatpush3.bf16.msra.mxu0 %v340_v6 }
  0xbe   : > { %744 = vmatprep.subr.bf16.mxu0 %v342_v12 }
  0xc1   : > { %745 = vmatpush3.bf16.msra.mxu0 %v342_v12 }
  0xc9   : > { %v323_v15 = vpop.trf.xlu0 }
  0xca   : > { %746 = vmatprep.mubr.msk.bf16.mxu0 %vm347_vm2, %v323_v15 }
  0xcd   : > { %v324_v20 = vpop.trf.xlu0 }
  0xce   : > { %747 = vmatmul.mubr.msk.bf16.vlgmr.msra.gmra.mrb[0].mxu0 %vm347_vm2, %v324_v20 }
 0x1a1   : > { %v748_v40 = vpop.f32.mrb[0].mxu0 }
 0x1a2   : > { %v388_v42 = vpop.f32.mrb[1].mxu0  ;;  %v407_v47 = vmul.f32 %v748_v40, %v404_v41 }
 0x1a3   : > { %v405_v44 = vmul.f32 %v402_v39, %v388_v42  ;;  %v749_v45 = vpop.f32.mrb[2].mxu0 }
 0x1a4   : > { %v391_v46 = vpop.f32.mrb[3].mxu0  ;;  %v410_v50 = vmax.f32 %v407_v47, 0.0 }
 0x1a5   : > { %v406_v48 = vmul.f32 %v403_v43, %v391_v46  ;;  %v408_v1 = vmax.f32 %v405_v44, 0.0 }
 0x1a6   : > { %v412_v52 = vpack.c.bf16 %v410_v50, %v410_v50 }
 0x1a7   : > { %v409_v49 = vmax.f32 %v406_v48, 0.0 }
 0x1a9   : > { %v411_v51 = vpack.c.bf16 %v409_v49, %v408_v1 }
 0x1ab   : > { %416 = vxpose.xlu1.c.b16.start [1/2] (short) (narrow) %v411_v51, 32 }
 0x1af   : > { %417 = vxpose.xlu1.c.b16.end [2/2] (short) (narrow) %v412_v52, 32 }
 0x1b3   : > { %529 = vrot.lane.b32.xlu1 %v846_v0, %s806_s26 }
 0x1b7   : > { %533 = vrot.lane.b32.xlu1 %v850_v2, %s806_s26 }
 0x1bb   : > { %535 = vrot.lane.b32.xlu1 %v864_v7, %s806_s26  ;;  %v532_v7 = vpop.permute.xlu0 %531 }
 0x211   : > { %v424_v53 = vpop.trf.xlu1 }
 0x212   : > { %754 = vmatprep.mubr.msk.bf16.mxu1 %vm243_vm1, %v424_v53 }
 0x215   : > { %v425_v54 = vpop.trf.xlu1 }
 0x216   : > { %755 = vmatmul.mubr.msk.bf16.vlgmr.msra.gmra.mrb[0].mxu1 %vm243_vm1, %v425_v54 }
 0x225   : > { %v530_v55 = vpop.permute.xlu1 %529 }
 0x226   : > { %762 = vmatprep.mubr.msk.bf16.mxu1 %vm243_vm1, %v530_v55 }
 0x229   : > { %v534_v61 = vpop.permute.xlu1 %533 }
 0x22d   : > { %v536_v62 = vpop.permute.xlu1 %535 }
 0x2e9   : > { %v756_v56 = vpop.f32.mrb[0].mxu1 }
 0x2ea   : > { %v485_v57 = vpop.f32.mrb[1].mxu1  ;;  %v500_v0 = vpack.c.bf16 %v756_v56, %v756_v56 }
 0x2eb   : > { %v757_v58 = vpop.f32.mrb[2].mxu1 }
 0x2ec   : > { %v488_v59 = vpop.f32.mrb[3].mxu1  ;;  %v550_v2 = vsel %vm447_vm3, %v500_v0, 0 }
 0x2ed   : > { %v499_v60 = vpack.c.bf16 %v488_v59, %v485_v57 }
 0x2ef   : > { %758 = vmatprep.subr.bf16.mxu1 %v499_v60 }
 0x2f0   : > { %759 = vmatpush3.bf16.msra.mxu1 %v499_v60 }
 0x2f1   : > { %771 = vmatprep.subr.msk.bf16.mxu1 %vm447_vm3, %v500_v0 }
 0x2f4   : > { %761 = vmatpush3.bf16.msra.mxu1 %v550_v2 }
 0x2f7   : > { %763 = vmatmul.mubr.msk.bf16.vlgmr.msra.gmra.mrb[4].mxu1 %vm243_vm1, %v532_v7 }
 0x2f8   : > { %766 = vmatprep.mubr.msk.bf16.mxu1 %vm243_vm1, %v534_v61 }
 0x2ff   : > { %767 = vmatmul.mubr.msk.bf16.gmra.mrb[8].mxu1 %vm243_vm1, %v536_v62 }
 0x3ca   : > { %v764_v10 = vpop.f32.mrb[4].mxu1 }
 0x3cb   : > { %v595_v13 = vadd.f32 %v764_v10, %v503_v63  ;;  %v586_v14 = vpop.f32.mrb[5].mxu1 }
 0x3cc   : > { %v587_v17 = vadd.f32 %v586_v14, %v501_v9  ;;  %v765_v18 = vpop.f32.mrb[6].mxu1 }
 0x3cd   : > { %619 = vst.msk [vmem:[%s217_s13 + $0x10] sm:$0xff] %vm243_vm1, %v595_v13  ;;  %v598_v19 = vadd.f32 %v765_v18, %v504_v11  ;;  %v589_v21 = vpop.f32.mrb[7].mxu1 }
 0x3ce   : > { %617 = vst.msk [vmem:[%s217_s13] sm:$0xff] %vm243_vm1, %v587_v17  ;;  %v590_v22 = vadd.f32 %v589_v21, %v502_v16 }
 0x3cf   : > { %620 = vst.msk [vmem:[%s217_s13 + $0x18] sm:$0xff] %vm243_vm1, %v598_v19 }
 0x3d0   : > { %618 = vst.msk [vmem:[%s217_s13 + $0x8] sm:$0xff] %vm243_vm1, %v590_v22 }
 0x3d2   : > { %v768_v25 = vpop.f32.mrb[8].mxu1 }
 0x3d3   : > { %v611_v27 = vadd.f32 %v768_v25, %v507_v23  ;;  %v602_v28 = vpop.f32.mrb[9].mxu1 }
 0x3d4   : > { %v603_v30 = vadd.f32 %v602_v28, %v505_v24  ;;  %v769_v31 = vpop.f32.mrb[10].mxu1 }
 0x3d5   : > { %623 = vst.msk [vmem:[%s217_s13 + $0x30] sm:$0xff] %vm243_vm1, %v611_v27  ;;  %v614_v32 = vadd.f32 %v769_v31, %v508_v26  ;;  %v605_v33 = vpop.f32.mrb[11].mxu1 }
 0x3d6   : > { %621 = vst.msk [vmem:[%s217_s13 + $0x20] sm:$0xff] %vm243_vm1, %v603_v30  ;;  %v606_v3 = vadd.f32 %v605_v33, %v506_v29 }
 0x3d7   : > { %624 = vst.msk [vmem:[%s217_s13 + $0x38] sm:$0xff] %vm243_vm1, %v614_v32 }
 0x3d8   : > { %622 = vst.msk [vmem:[%s217_s13 + $0x28] sm:$0xff] %vm243_vm1, %v606_v3 }
 0x3d9 PF: > { %s14_s15 = sadd.s32 1, %s803_s15  }
 0x3da   : > { %p11_p4 = scmp.ge.s32.totalorder %s14_s15, 4  }
 0x3dc   :  { %13 = sbr.rel (!%p11_p4) target bundleno = 1 (0x1), region = 69 }

// kernel: sparse_attention_layer_block.7
= control target key start
LH: loop header
LB: loop body
LE: loop exit
PB: predicated region body
PF: predicated region fallthrough
CT: control target
= control target key end

     0   :  { %s541_s9 = smov 0   ;;  %s720_s0 = inlined_call_operand.vmem [shape: bf16[2,8,8,72], index: 0, kind: input, shape index: {}]   ;;  %s721_s1 = inlined_call_operand.vmem [shape: f32[3,3,72], index: 1, kind: input, shape index: {}]   ;;  %s722_s2 = inlined_call_operand.vmem [shape: bf16[2,8,8,72], index: 2, kind: output, shape index: {}]  }
   0x1 LB: > { %s476_s10 = sadd.s32 4294967295, %s523_s9   ;;  %p480_p0 = scmp.ge.s32.totalorder %s523_s9, 1  ;;  %s523_s9 = sphi %s541_s9, %s12_s9  }
   0x2   : > { %p112_p1 = scmp.lt.s32.totalorder %s523_s9, 3 }
   0x4   : > { %p113_p2 = pnand %p480_p0, %p112_p1 }
   0x5   : > { %vm144_vm0 = vcmask (!%p113_p2), 588800   ;;  %vm146_vm1 = vcmask (!%p113_p2), 582656   ;;  %p551_p3 = scmp.lt.s32.totalorder (!%p113_p2), %s476_s10, 1  ;;  %v204_v0 = vlaneseq (!%p113_p2)  ;;  %v525_v1 = vmov (!%p113_p2), 0.0   ;;  %v191_v16 = vld [vmem:[%s721_s1] sm:$0x7] (!%p113_p2) }
   0x6   : > { %116 = sbr.rel (%p113_p2) target bundleno = 73 (0x49), region = 28  ;;  %148 = vst.msk [vmem:[#allocation2 + $0x10] sm:$0xff] (!%p113_p2), %vm144_vm0, %v525_v1  ;;  %145 = vst.msk [vmem:[#allocation2] sm:$0xff] (!%p113_p2), %vm144_vm0, %v525_v1  ;;  %v192_v17 = vld [vmem:[%s721_s1 + $0x4] sm:$0x7] (!%p113_p2)  ;;  %vm412_vm2 = vcmask (!%p113_p2), 584704  }
   0x7   : > { %150 = vst.msk [vmem:[#allocation2 + $0x20] sm:$0xff] (!%p113_p2), %vm144_vm0, %v525_v1  ;;  %152 = vst.msk [vmem:[#allocation2 + $0x30] sm:$0xff] (!%p113_p2), %vm144_vm0, %v525_v1  ;;  %v205_v2 = vshrl.u32 (!%p113_p2), %v204_v0, 7  ;;  %v193_v21 = vld [vmem:[%s721_s1 + $0x8] sm:$0x7] (!%p113_p2) }
   0x8   : > { %154 = vst.msk [vmem:[#allocation2 + $0x40] sm:$0xff] (!%p113_p2), %vm144_vm0, %v525_v1  ;;  %156 = vst.msk [vmem:[#allocation2 + $0x50] sm:$0xff] (!%p113_p2), %vm144_vm0, %v525_v1 }
   0x9   : > { %158 = vst.msk [vmem:[#allocation2 + $0x60] sm:$0xff] (!%p113_p2), %vm144_vm0, %v525_v1  ;;  %160 = vst.msk [vmem:[#allocation2 + $0x70] sm:$0xff] (!%p113_p2), %vm144_vm0, %v525_v1  ;;  %v206_v6 = vsub.s32 (!%p113_p2), 0, %v205_v2  ;;  %v276_v18 = vsub.s32 (!%p113_p2), 1, %v205_v2  ;;  %v346_v20 = vsub.s32 (!%p113_p2), 2, %v205_v2 }
   0xa   : > { %162 = vst.msk [vmem:[#allocation2 + $0x80] sm:$0xff] (!%p113_p2), %vm144_vm0, %v525_v1  ;;  %164 = vst.msk [vmem:[#allocation2 + $0x90] sm:$0xff] (!%p113_p2), %vm144_vm0, %v525_v1 }
   0xb   : > { %149 = vst.msk [vmem:[#allocation2 + $0x18] sm:$0x3] (!%p113_p2), %vm146_vm1, %v525_v1  ;;  %147 = vst.msk [vmem:[#allocation2 + $0x8] sm:$0x3] (!%p113_p2), %vm146_vm1, %v525_v1  ;;  %v601_v19 = vrot.slane (!%p113_p2), %v191_v16, %v206_v6  ;;  %v606_v23 = vrot.slane (!%p113_p2), %v192_v17, %v206_v6  ;;  %v608_v24 = vrot.slane (!%p113_p2), %v191_v16, %v276_v18 }
   0xc   : > { %151 = vst.msk [vmem:[#allocation2 + $0x28] sm:$0x3] (!%p113_p2), %vm146_vm1, %v525_v1  ;;  %153 = vst.msk [vmem:[#allocation2 + $0x38] sm:$0x3] (!%p113_p2), %vm146_vm1, %v525_v1  ;;  %v611_v26 = vrot.slane (!%p113_p2), %v193_v21, %v206_v6  ;;  %v613_v28 = vrot.slane (!%p113_p2), %v192_v17, %v276_v18  ;;  %v615_v30 = vrot.slane (!%p113_p2), %v191_v16, %v346_v20 }
   0xd   : > { %155 = vst.msk [vmem:[#allocation2 + $0x48] sm:$0x3] %vm146_vm1, %v525_v1  ;;  %157 = vst.msk [vmem:[#allocation2 + $0x58] sm:$0x3] %vm146_vm1, %v525_v1  ;;  %s725_s10 = smov (!%p551_p3, %s476_s10), 1  ;;  %v194_v22 = vld [vmem:[#allocation2] sm:$0xff]  ;;  %v617_v34 = vrot.slane %v193_v21, %v276_v18  ;;  %v619_v35 = vrot.slane %v192_v17, %v346_v20  ;;  %v622_v39 = vrot.slane %v193_v21, %v346_v20 }
   0xe   : > { %159 = vst.msk [vmem:[#allocation2 + $0x68] sm:$0x3] %vm146_vm1, %v525_v1  ;;  %161 = vst.msk [vmem:[#allocation2 + $0x78] sm:$0x3] %vm146_vm1, %v525_v1  ;;  %s487_s12 = sshll.u32 %s725_s10, 5  ;;  %v208_v25 = vmul.f32 %v601_v19, %v194_v22 }
   0xf   : > { %163 = vst.msk [vmem:[#allocation2 + $0x88] sm:$0x3] %vm146_vm1, %v525_v1  ;;  %165 = vst.msk [vmem:[#allocation2 + $0x98] sm:$0x3] %vm146_vm1, %v525_v1  ;;  %s138_s15 = scalar_lea.vmem %s720_s0, %s487_s12  ;;  %s665_s24 = scalar_lea.vmem %s722_s2, %s487_s12 }
  0x10   : > { %v490_v3 = vld [vmem:[%s138_s15] sm:$0xff]   ;;  %v505_v4 = vld [vmem:[%s138_s15 + $0x8] sm:$0xff]   ;;  %v506_v5 = vld [vmem:[%s138_s15 + $0x10] sm:$0xff]  }
  0x11   : > { %v491_v7 = vunpack.c.l.bf16 %v490_v3  ;;  %v492_v8 = vunpack.c.h.bf16 %v490_v3  ;;  %v495_v9 = vunpack.c.l.bf16 %v505_v4  ;;  %v496_v10 = vunpack.c.h.bf16 %v505_v4  ;;  %v507_v11 = vld [vmem:[%s138_s15 + $0x18] sm:$0xff]  }
  0x12   : > { %v499_v12 = vunpack.c.l.bf16 %v506_v5  ;;  %v500_v13 = vunpack.c.h.bf16 %v506_v5  ;;  %v503_v14 = vunpack.c.l.bf16 %v507_v11  ;;  %v504_v15 = vunpack.c.h.bf16 %v507_v11  ;;  %v264_v27 = vld [vmem:[#allocation2 + $0x1] sm:$0xff] }
  0x13   : > { %183 = vst.msk [vmem:[#allocation2 + $0x11] sm:$0xff] %vm144_vm0, %v491_v7  ;;  %184 = vst.msk [vmem:[#allocation2 + $0x21] sm:$0xff] %vm144_vm0, %v492_v8  ;;  %v334_v29 = vld [vmem:[#allocation2 + $0x2] sm:$0xff]  ;;  %v278_v41 = vmul.f32 %v608_v24, %v264_v27 }
  0x14   : > { %185 = vst.msk [vmem:[#allocation2 + $0x31] sm:$0xff] %vm144_vm0, %v495_v9  ;;  %186 = vst.msk [vmem:[#allocation2 + $0x41] sm:$0xff] %vm144_vm0, %v496_v10  ;;  %v348_v48 = vmul.f32 %v615_v30, %v334_v29 }
  0x15   : > { %187 = vst.msk [vmem:[#allocation2 + $0x51] sm:$0xff] %vm144_vm0, %v499_v12  ;;  %188 = vst.msk [vmem:[#allocation2 + $0x61] sm:$0xff] %vm144_vm0, %v500_v13 }
  0x16   : > { %189 = vst.msk [vmem:[#allocation2 + $0x71] sm:$0xff] %vm144_vm0, %v503_v14  ;;  %190 = vst.msk [vmem:[#allocation2 + $0x81] sm:$0xff] %vm144_vm0, %v504_v15 }
  0x1a   : > { %v195_v31 = vld [vmem:[#allocation2 + $0x10] sm:$0xff]  ;;  %v196_v32 = vld [vmem:[#allocation2 + $0x20] sm:$0xff] }
  0x1b   : > { %v265_v33 = vld [vmem:[#allocation2 + $0x11] sm:$0xff]  ;;  %v228_v36 = vmul.f32 %v606_v23, %v195_v31  ;;  %v266_v37 = vld [vmem:[#allocation2 + $0x21] sm:$0xff]  ;;  %v209_v40 = vmul.f32 %v601_v19, %v195_v31  ;;  %v229_v44 = vmul.f32 %v606_v23, %v196_v32  ;;  %v248_v46 = vmul.f32 %v611_v26, %v196_v32 }
  0x1c   : > { %v335_v38 = vld [vmem:[#allocation2 + $0x12] sm:$0xff]  ;;  %v336_v42 = vld [vmem:[#allocation2 + $0x22] sm:$0xff]  ;;  %v298_v47 = vmul.f32 %v613_v28, %v265_v33  ;;  %v318_v50 = vmul.f32 %v617_v34, %v266_v37  ;;  %v210_v58 = vmul.f32 %v601_v19, %v196_v32  ;;  %v279_v61 = vmul.f32 %v608_v24, %v265_v33 }
  0x1d   : > { %v197_v43 = vld [vmem:[#allocation2 + $0x30] sm:$0xff]  ;;  %v236_v45 = vadd.f32 %v228_v36, %v208_v25  ;;  %v368_v51 = vmul.f32 %v619_v35, %v335_v38  ;;  %v237_v52 = vadd.f32 %v229_v44, %v209_v40  ;;  %v198_v54 = vld [vmem:[#allocation2 + $0x40] sm:$0xff]  ;;  %v388_v56 = vmul.f32 %v622_v39, %v336_v42 }
  0x1e   : > { %v267_v49 = vld [vmem:[#allocation2 + $0x31] sm:$0xff]  ;;  %v249_v53 = vmul.f32 %v611_v26, %v197_v43  ;;  %v230_v59 = vmul.f32 %v606_v23, %v197_v43  ;;  %v299_v62 = vmul.f32 %v613_v28, %v266_v37  ;;  %v349_v1 = vmul.f32 %v615_v30, %v335_v38  ;;  %v268_v4 = vld [vmem:[#allocation2 + $0x41] sm:$0xff] }
  0x1f   : > { %v256_v55 = vadd.f32 %v248_v46, %v236_v45  ;;  %v337_v57 = vld [vmem:[#allocation2 + $0x32] sm:$0xff]  ;;  %v319_v63 = vmul.f32 %v617_v34, %v267_v49  ;;  %v250_v3 = vmul.f32 %v611_v26, %v198_v54  ;;  %v369_v6 = vmul.f32 %v619_v35, %v336_v42  ;;  %v338_v21 = vld [vmem:[#allocation2 + $0x42] sm:$0xff] }
  0x20   : > { %v257_v60 = vadd.f32 %v249_v53, %v237_v52  ;;  %v238_v2 = vadd.f32 %v230_v59, %v210_v58  ;;  %v389_v7 = vmul.f32 %v622_v39, %v337_v57  ;;  %v199_v8 = vld [vmem:[#allocation2 + $0x50] sm:$0xff]  ;;  %v211_v9 = vmul.f32 %v601_v19, %v197_v43  ;;  %v200_v27 = vld [vmem:[#allocation2 + $0x60] sm:$0xff] }
  0x21   : > { %v286_v0 = vadd.f32 %v278_v41, %v256_v55  ;;  %v280_v12 = vmul.f32 %v608_v24, %v266_v37  ;;  %v231_v13 = vmul.f32 %v606_v23, %v198_v54  ;;  %v300_v15 = vmul.f32 %v613_v28, %v267_v49  ;;  %v269_v40 = vld [vmem:[#allocation2 + $0x51] sm:$0xff] }
  0x22   : > { %v287_v5 = vadd.f32 %v279_v61, %v257_v60  ;;  %v258_v11 = vadd.f32 %v250_v3, %v238_v2  ;;  %v320_v16 = vmul.f32 %v617_v34, %v268_v4  ;;  %v350_v17 = vmul.f32 %v615_v30, %v336_v42  ;;  %v201_v61 = vld [vmem:[#allocation2 + $0x70] sm:$0xff] }
  0x23   : > { %v306_v10 = vadd.f32 %v298_v47, %v286_v0  ;;  %v239_v22 = vadd.f32 %v231_v13, %v211_v9  ;;  %v251_v25 = vmul.f32 %v611_v26, %v199_v8  ;;  %v370_v31 = vmul.f32 %v619_v35, %v337_v57  ;;  %v339_v3 = vld [vmem:[#allocation2 + $0x52] sm:$0xff] }
  0x24   : > { %v307_v14 = vadd.f32 %v299_v62, %v287_v5  ;;  %v288_v20 = vadd.f32 %v280_v12, %v258_v11  ;;  %v281_v32 = vmul.f32 %v608_v24, %v267_v49  ;;  %v212_v33 = vmul.f32 %v601_v19, %v198_v54  ;;  %v270_v62 = vld [vmem:[#allocation2 + $0x61] sm:$0xff]  ;;  %v203_v5 = vld [vmem:[#allocation2 + $0x90] sm:$0xff] }
  0x25   : > { %v326_v18 = vadd.f32 %v318_v50, %v306_v10  ;;  %v259_v38 = vadd.f32 %v251_v25, %v239_v22  ;;  %v232_v41 = vmul.f32 %v606_v23, %v199_v8  ;;  %v390_v43 = vmul.f32 %v622_v39, %v338_v21 }
  0x26   : > { %v327_v29 = vadd.f32 %v319_v63, %v307_v14  ;;  %v308_v37 = vadd.f32 %v300_v15, %v288_v20  ;;  %v301_v44 = vmul.f32 %v613_v28, %v268_v4  ;;  %v252_v45 = vmul.f32 %v611_v26, %v200_v27  ;;  %v340_v15 = vld [vmem:[#allocation2 + $0x62] sm:$0xff] }
  0x27   : > { %v356_v36 = vadd.f32 %v348_v48, %v326_v18  ;;  %v289_v50 = vadd.f32 %v281_v32, %v259_v38  ;;  %v240_v49 = vadd.f32 %v232_v41, %v212_v33  ;;  %v321_v48 = vmul.f32 %v617_v34, %v269_v40  ;;  %v202_v32 = vld [vmem:[#allocation2 + $0x80] sm:$0xff] }
  0x28   : > { %v357_v42 = vadd.f32 %v349_v1, %v327_v29  ;;  %v328_v47 = vadd.f32 %v320_v16, %v308_v37  ;;  %v351_v53 = vmul.f32 %v615_v30, %v337_v57  ;;  %v282_v54 = vmul.f32 %v608_v24, %v268_v4 }
  0x29   : > { %v376_v46 = vadd.f32 %v368_v51, %v356_v36  ;;  %v309_v59 = vadd.f32 %v301_v44, %v289_v50  ;;  %v260_v60 = vadd.f32 %v252_v45, %v240_v49  ;;  %v302_v63 = vmul.f32 %v613_v28, %v269_v40 }
  0x2a   : > { %v377_v52 = vadd.f32 %v369_v6, %v357_v42  ;;  %v358_v58 = vadd.f32 %v350_v17, %v328_v47  ;;  %v213_v57 = vmul.f32 %v601_v19, %v199_v8  ;;  %v233_v0 = vmul.f32 %v606_v23, %v200_v27 }
  0x2b   : > { %v396_v55 = vadd.f32 %v388_v56, %v376_v46  ;;  %v329_v2 = vadd.f32 %v321_v48, %v309_v59  ;;  %v290_v4 = vadd.f32 %v282_v54, %v260_v60  ;;  %v371_v9 = vmul.f32 %v619_v35, %v338_v21  ;;  %v341_v48 = vld [vmem:[#allocation2 + $0x72] sm:$0xff]  ;;  %v272_v54 = vld [vmem:[#allocation2 + $0x81] sm:$0xff] }
  0x2c   : > { %v397_v51 = vadd.f32 %v389_v7, %v377_v52  ;;  %v378_v1 = vadd.f32 %v370_v31, %v358_v58  ;;  %v241_v10 = vadd.f32 %v233_v0, %v213_v57  ;;  %v253_v7 = vmul.f32 %v611_v26, %v201_v61  ;;  %v271_v31 = vld [vmem:[#allocation2 + $0x71] sm:$0xff] }
  0x2d   : > { %v404_v56 = vpack.c.bf16 %v396_v55, %v396_v55  ;;  %v359_v12 = vadd.f32 %v351_v53, %v329_v2  ;;  %v310_v8 = vadd.f32 %v302_v63, %v290_v4  ;;  %v322_v13 = vmul.f32 %v617_v34, %v270_v62 }
  0x2e   : > { %v405_v6 = vpack.c.bf16 %v397_v51, %v397_v51  ;;  %v398_v11 = vadd.f32 %v390_v43, %v378_v1  ;;  %v391_v14 = vmul.f32 %v622_v39, %v339_v3  ;;  %v261_v16 = vadd.f32 %v253_v7, %v241_v10  ;;  %v342_v10 = vld [vmem:[#allocation2 + $0x82] sm:$0xff] }
  0x2f   : > { %413 = vst.msk [vmem:[%s665_s24] sm:$0xf] %vm412_vm2, %v404_v56  ;;  %v283_v17 = vmul.f32 %v608_v24, %v269_v40  ;;  %v255_v18 = vmul.f32 %v611_v26, %v203_v5  ;;  %v379_v22 = vadd.f32 %v371_v9, %v359_v12  ;;  %v330_v25 = vadd.f32 %v322_v13, %v310_v8 }
  0x30   : > { %414 = vst.msk [vmem:[%s665_s24 + $0x4] sm:$0xf] %vm412_vm2, %v405_v6  ;;  %v406_v20 = vpack.c.bf16 %v398_v11, %v398_v11  ;;  %v352_v29 = vmul.f32 %v615_v30, %v338_v21  ;;  %v303_v36 = vmul.f32 %v613_v28, %v270_v62  ;;  %v214_v37 = vmul.f32 %v601_v19, %v200_v27 }
  0x31   : > { %v291_v33 = vadd.f32 %v283_v17, %v261_v16  ;;  %v234_v38 = vmul.f32 %v606_v23, %v201_v61  ;;  %v399_v41 = vadd.f32 %v391_v14, %v379_v22  ;;  %v372_v42 = vmul.f32 %v619_v35, %v339_v3  ;;  %v343_v17 = vld [vmem:[#allocation2 + $0x92] sm:$0xff] }
  0x32   : > { %415 = vst.msk [vmem:[%s665_s24 + $0x8] sm:$0xf] %vm412_vm2, %v406_v20  ;;  %v360_v40 = vadd.f32 %v352_v29, %v330_v25  ;;  %v392_v43 = vmul.f32 %v622_v39, %v340_v15  ;;  %v323_v21 = vmul.f32 %v617_v34, %v271_v31  ;;  %v254_v46 = vmul.f32 %v611_v26, %v202_v32 }
  0x33   : > { %v311_v44 = vadd.f32 %v303_v36, %v291_v33  ;;  %v242_v45 = vadd.f32 %v234_v38, %v214_v37  ;;  %v407_v47 = vpack.c.bf16 %v399_v41, %v399_v41  ;;  %v353_v27 = vmul.f32 %v615_v30, %v339_v3 }
  0x34   : > { %v380_v50 = vadd.f32 %v372_v42, %v360_v40  ;;  %v284_v49 = vmul.f32 %v608_v24, %v270_v62  ;;  %v215_v55 = vmul.f32 %v601_v19, %v201_v61  ;;  %v235_v58 = vmul.f32 %v606_v23, %v202_v32  ;;  %v273_v61 = vld [vmem:[#allocation2 + $0x91] sm:$0xff] }
  0x35   : > { %v331_v52 = vadd.f32 %v323_v21, %v311_v44  ;;  %v262_v53 = vadd.f32 %v254_v46, %v242_v45  ;;  %416 = vst.msk [vmem:[%s665_s24 + $0xc] sm:$0xf] %vm412_vm2, %v407_v47  ;;  %v373_v26 = vmul.f32 %v619_v35, %v340_v15  ;;  %v304_v63 = vmul.f32 %v613_v28, %v271_v31 }
  0x36   : > { %v400_v59 = vadd.f32 %v392_v43, %v380_v50  ;;  %v243_v57 = vadd.f32 %v235_v58, %v215_v55  ;;  %v393_v0 = vmul.f32 %v622_v39, %v341_v48  ;;  %v324_v56 = vmul.f32 %v617_v34, %v272_v54 }
  0x37   : > { %v361_v60 = vadd.f32 %v353_v27, %v331_v52  ;;  %v292_v51 = vadd.f32 %v284_v49, %v262_v53  ;;  %v285_v2 = vmul.f32 %v608_v24, %v271_v31  ;;  %v354_v3 = vmul.f32 %v615_v30, %v340_v15 }
  0x38   : > { %v408_v62 = vpack.c.bf16 %v400_v59, %v400_v59  ;;  %v263_v23 = vadd.f32 %v255_v18, %v243_v57  ;;  %v305_v9 = vmul.f32 %v613_v28, %v272_v54  ;;  %v325_v7 = vmul.f32 %v617_v34, %v273_v61 }
  0x39   : > { %v381_v1 = vadd.f32 %v373_v26, %v361_v60  ;;  %v312_v19 = vadd.f32 %v304_v63, %v292_v51  ;;  %v374_v8 = vmul.f32 %v619_v35, %v341_v48  ;;  %v394_v14 = vmul.f32 %v622_v39, %v342_v10 }
  0x3a   : > { %417 = vst.msk [vmem:[%s665_s24 + $0x10] sm:$0xf] %vm412_vm2, %v408_v62  ;;  %v293_v6 = vadd.f32 %v285_v2, %v263_v23  ;;  %v355_v16 = vmul.f32 %v615_v30, %v341_v48  ;;  %v375_v34 = vmul.f32 %v619_v35, %v342_v10  ;;  %v395_v25 = vmul.f32 %v622_v39, %v343_v17 }
  0x3b   : > { %v401_v4 = vadd.f32 %v393_v0, %v381_v1  ;;  %v332_v5 = vadd.f32 %v324_v56, %v312_v19 }
  0x3c   : > { %v313_v13 = vadd.f32 %v305_v9, %v293_v6 }
  0x3d   : > { %v409_v11 = vpack.c.bf16 %v401_v4, %v401_v4  ;;  %v362_v12 = vadd.f32 %v354_v3, %v332_v5 }
  0x3e   : > { %v333_v15 = vadd.f32 %v325_v7, %v313_v13 }
  0x3f   : > { %418 = vst.msk [vmem:[%s665_s24 + $0x14] sm:$0xf] %vm412_vm2, %v409_v11  ;;  %v382_v24 = vadd.f32 %v374_v8, %v362_v12 }
  0x40   : > { %v363_v18 = vadd.f32 %v355_v16, %v333_v15 }
  0x41   : > { %v402_v28 = vadd.f32 %v394_v14, %v382_v24 }
  0x42   : > { %v383_v22 = vadd.f32 %v375_v34, %v363_v18 }
  0x43   : > { %v410_v20 = vpack.c.bf16 %v402_v28, %v402_v28 }
  0x44   : > { %v403_v29 = vadd.f32 %v395_v25, %v383_v22 }
  0x45   : > { %419 = vst.msk [vmem:[%s665_s24 + $0x18] sm:$0xf] %vm412_vm2, %v410_v20 }
  0x46   : > { %v411_v31 = vpack.c.bf16 %v403_v29, %v403_v29 }
  0x48   : > { %420 = vst.msk [vmem:[%s665_s24 + $0x1c] sm:$0xf] %vm412_vm2, %v411_v31 }
  0x49 PF: > { %s12_s9 = sadd.s32 1, %s523_s9  }
  0x4a   : > { %p9_p4 = scmp.ge.s32.totalorder %s12_s9, 4  }
  0x4c   :  { %11 = sbr.rel (!%p9_p4) target bundleno = 1 (0x1), region = 59 }

// kernel: sparse_attention_layer_block.10
= control target key start
LH: loop header
LB: loop body
LE: loop exit
PB: predicated region body
PF: predicated region fallthrough
CT: control target
= control target key end

     0   :  { %s541_s9 = smov 0   ;;  %s720_s0 = inlined_call_operand.vmem [shape: bf16[2,8,8,96], index: 0, kind: input, shape index: {}]   ;;  %s721_s1 = inlined_call_operand.vmem [shape: f32[3,3,96], index: 1, kind: input, shape index: {}]   ;;  %s722_s2 = inlined_call_operand.vmem [shape: bf16[2,8,8,96], index: 2, kind: output, shape index: {}]  }
   0x1 LB: > { %s476_s10 = sadd.s32 4294967295, %s523_s9   ;;  %p480_p0 = scmp.ge.s32.totalorder %s523_s9, 1  ;;  %s523_s9 = sphi %s541_s9, %s12_s9  }
   0x2   : > { %p112_p1 = scmp.lt.s32.totalorder %s523_s9, 3 }
   0x4   : > { %p113_p2 = pnand %p480_p0, %p112_p1 }
   0x5   : > { %vm144_vm0 = vcmask (!%p113_p2), 785408   ;;  %vm146_vm1 = vcmask (!%p113_p2), 779264   ;;  %p551_p3 = scmp.lt.s32.totalorder (!%p113_p2), %s476_s10, 1  ;;  %v204_v0 = vlaneseq (!%p113_p2)  ;;  %v525_v1 = vmov (!%p113_p2), 0.0   ;;  %v191_v16 = vld [vmem:[%s721_s1] sm:$0x7] (!%p113_p2) }
   0x6   : > { %116 = sbr.rel (%p113_p2) target bundleno = 73 (0x49), region = 28  ;;  %148 = vst.msk [vmem:[#allocation2 + $0x10] sm:$0xff] (!%p113_p2), %vm144_vm0, %v525_v1  ;;  %145 = vst.msk [vmem:[#allocation2] sm:$0xff] (!%p113_p2), %vm144_vm0, %v525_v1  ;;  %v192_v17 = vld [vmem:[%s721_s1 + $0x4] sm:$0x7] (!%p113_p2)  ;;  %vm412_vm2 = vcmask (!%p113_p2), 781312  }
   0x7   : > { %150 = vst.msk [vmem:[#allocation2 + $0x20] sm:$0xff] (!%p113_p2), %vm144_vm0, %v525_v1  ;;  %152 = vst.msk [vmem:[#allocation2 + $0x30] sm:$0xff] (!%p113_p2), %vm144_vm0, %v525_v1  ;;  %v205_v2 = vshrl.u32 (!%p113_p2), %v204_v0, 7  ;;  %v193_v21 = vld [vmem:[%s721_s1 + $0x8] sm:$0x7] (!%p113_p2) }
   0x8   : > { %154 = vst.msk [vmem:[#allocation2 + $0x40] sm:$0xff] (!%p113_p2), %vm144_vm0, %v525_v1  ;;  %156 = vst.msk [vmem:[#allocation2 + $0x50] sm:$0xff] (!%p113_p2), %vm144_vm0, %v525_v1 }
   0x9   : > { %158 = vst.msk [vmem:[#allocation2 + $0x60] sm:$0xff] (!%p113_p2), %vm144_vm0, %v525_v1  ;;  %160 = vst.msk [vmem:[#allocation2 + $0x70] sm:$0xff] (!%p113_p2), %vm144_vm0, %v525_v1  ;;  %v206_v6 = vsub.s32 (!%p113_p2), 0, %v205_v2  ;;  %v276_v18 = vsub.s32 (!%p113_p2), 1, %v205_v2  ;;  %v346_v20 = vsub.s32 (!%p113_p2), 2, %v205_v2 }
   0xa   : > { %162 = vst.msk [vmem:[#allocation2 + $0x80] sm:$0xff] (!%p113_p2), %vm144_vm0, %v525_v1  ;;  %164 = vst.msk [vmem:[#allocation2 + $0x90] sm:$0xff] (!%p113_p2), %vm144_vm0, %v525_v1 }
   0xb   : > { %149 = vst.msk [vmem:[#allocation2 + $0x18] sm:$0x3] (!%p113_p2), %vm146_vm1, %v525_v1  ;;  %147 = vst.msk [vmem:[#allocation2 + $0x8] sm:$0x3] (!%p113_p2), %vm146_vm1, %v525_v1  ;;  %v601_v19 = vrot.slane (!%p113_p2), %v191_v16, %v206_v6  ;;  %v606_v23 = vrot.slane (!%p113_p2), %v192_v17, %v206_v6  ;;  %v608_v24 = vrot.slane (!%p113_p2), %v191_v16, %v276_v18 }
   0xc   : > { %151 = vst.msk [vmem:[#allocation2 + $0x28] sm:$0x3] (!%p113_p2), %vm146_vm1, %v525_v1  ;;  %153 = vst.msk [vmem:[#allocation2 + $0x38] sm:$0x3] (!%p113_p2), %vm146_vm1, %v525_v1  ;;  %v611_v26 = vrot.slane (!%p113_p2), %v193_v21, %v206_v6  ;;  %v613_v28 = vrot.slane (!%p113_p2), %v192_v17, %v276_v18  ;;  %v615_v30 = vrot.slane (!%p113_p2), %v191_v16, %v346_v20 }
   0xd   : > { %155 = vst.msk [vmem:[#allocation2 + $0x48] sm:$0x3] %vm146_vm1, %v525_v1  ;;  %157 = vst.msk [vmem:[#allocation2 + $0x58] sm:$0x3] %vm146_vm1, %v525_v1  ;;  %s725_s10 = smov (!%p551_p3, %s476_s10), 1  ;;  %v194_v22 = vld [vmem:[#allocation2] sm:$0xff]  ;;  %v617_v34 = vrot.slane %v193_v21, %v276_v18  ;;  %v619_v35 = vrot.slane %v192_v17, %v346_v20  ;;  %v622_v39 = vrot.slane %v193_v21, %v346_v20 }
   0xe   : > { %159 = vst.msk [vmem:[#allocation2 + $0x68] sm:$0x3] %vm146_vm1, %v525_v1  ;;  %161 = vst.msk [vmem:[#allocation2 + $0x78] sm:$0x3] %vm146_vm1, %v525_v1  ;;  %s487_s12 = sshll.u32 %s725_s10, 5  ;;  %v208_v25 = vmul.f32 %v601_v19, %v194_v22 }
   0xf   : > { %163 = vst.msk [vmem:[#allocation2 + $0x88] sm:$0x3] %vm146_vm1, %v525_v1  ;;  %165 = vst.msk [vmem:[#allocation2 + $0x98] sm:$0x3] %vm146_vm1, %v525_v1  ;;  %s138_s15 = scalar_lea.vmem %s720_s0, %s487_s12  ;;  %s665_s24 = scalar_lea.vmem %s722_s2, %s487_s12 }
  0x10   : > { %v490_v3 = vld [vmem:[%s138_s15] sm:$0xff]   ;;  %v505_v4 = vld [vmem:[%s138_s15 + $0x8] sm:$0xff]   ;;  %v506_v5 = vld [vmem:[%s138_s15 + $0x10] sm:$0xff]  }
  0x11   : > { %v491_v7 = vunpack.c.l.bf16 %v490_v3  ;;  %v492_v8 = vunpack.c.h.bf16 %v490_v3  ;;  %v495_v9 = vunpack.c.l.bf16 %v505_v4  ;;  %v496_v10 = vunpack.c.h.bf16 %v505_v4  ;;  %v507_v11 = vld [vmem:[%s138_s15 + $0x18] sm:$0xff]  }
  0x12   : > { %v499_v12 = vunpack.c.l.bf16 %v506_v5  ;;  %v500_v13 = vunpack.c.h.bf16 %v506_v5  ;;  %v503_v14 = vunpack.c.l.bf16 %v507_v11  ;;  %v504_v15 = vunpack.c.h.bf16 %v507_v11  ;;  %v264_v27 = vld [vmem:[#allocation2 + $0x1] sm:$0xff] }
  0x13   : > { %183 = vst.msk [vmem:[#allocation2 + $0x11] sm:$0xff] %vm144_vm0, %v491_v7  ;;  %184 = vst.msk [vmem:[#allocation2 + $0x21] sm:$0xff] %vm144_vm0, %v492_v8  ;;  %v334_v29 = vld [vmem:[#allocation2 + $0x2] sm:$0xff]  ;;  %v278_v41 = vmul.f32 %v608_v24, %v264_v27 }
  0x14   : > { %185 = vst.msk [vmem:[#allocation2 + $0x31] sm:$0xff] %vm144_vm0, %v495_v9  ;;  %186 = vst.msk [vmem:[#allocation2 + $0x41] sm:$0xff] %vm144_vm0, %v496_v10  ;;  %v348_v48 = vmul.f32 %v615_v30, %v334_v29 }
  0x15   : > { %187 = vst.msk [vmem:[#allocation2 + $0x51] sm:$0xff] %vm144_vm0, %v499_v12  ;;  %188 = vst.msk [vmem:[#allocation2 + $0x61] sm:$0xff] %vm144_vm0, %v500_v13 }
  0x16   : > { %189 = vst.msk [vmem:[#allocation2 + $0x71] sm:$0xff] %vm144_vm0, %v503_v14  ;;  %190 = vst.msk [vmem:[#allocation2 + $0x81] sm:$0xff] %vm144_vm0, %v504_v15 }
  0x1a   : > { %v195_v31 = vld [vmem:[#allocation2 + $0x10] sm:$0xff]  ;;  %v196_v32 = vld [vmem:[#allocation2 + $0x20] sm:$0xff] }
  0x1b   : > { %v265_v33 = vld [vmem:[#allocation2 + $0x11] sm:$0xff]  ;;  %v228_v36 = vmul.f32 %v606_v23, %v195_v31  ;;  %v266_v37 = vld [vmem:[#allocation2 + $0x21] sm:$0xff]  ;;  %v209_v40 = vmul.f32 %v601_v19, %v195_v31  ;;  %v229_v44 = vmul.f32 %v606_v23, %v196_v32  ;;  %v248_v46 = vmul.f32 %v611_v26, %v196_v32 }
  0x1c   : > { %v335_v38 = vld [vmem:[#allocation2 + $0x12] sm:$0xff]  ;;  %v336_v42 = vld [vmem:[#allocation2 + $0x22] sm:$0xff]  ;;  %v298_v47 = vmul.f32 %v613_v28, %v265_v33  ;;  %v318_v50 = vmul.f32 %v617_v34, %v266_v37  ;;  %v210_v58 = vmul.f32 %v601_v19, %v196_v32  ;;  %v279_v61 = vmul.f32 %v608_v24, %v265_v33 }
  0x1d   : > { %v197_v43 = vld [vmem:[#allocation2 + $0x30] sm:$0xff]  ;;  %v236_v45 = vadd.f32 %v228_v36, %v208_v25  ;;  %v368_v51 = vmul.f32 %v619_v35, %v335_v38  ;;  %v237_v52 = vadd.f32 %v229_v44, %v209_v40  ;;  %v198_v54 = vld [vmem:[#allocation2 + $0x40] sm:$0xff]  ;;  %v388_v56 = vmul.f32 %v622_v39, %v336_v42 }
  0x1e   : > { %v267_v49 = vld [vmem:[#allocation2 + $0x31] sm:$0xff]  ;;  %v249_v53 = vmul.f32 %v611_v26, %v197_v43  ;;  %v230_v59 = vmul.f32 %v606_v23, %v197_v43  ;;  %v299_v62 = vmul.f32 %v613_v28, %v266_v37  ;;  %v349_v1 = vmul.f32 %v615_v30, %v335_v38  ;;  %v268_v4 = vld [vmem:[#allocation2 + $0x41] sm:$0xff] }
  0x1f   : > { %v256_v55 = vadd.f32 %v248_v46, %v236_v45  ;;  %v337_v57 = vld [vmem:[#allocation2 + $0x32] sm:$0xff]  ;;  %v319_v63 = vmul.f32 %v617_v34, %v267_v49  ;;  %v250_v3 = vmul.f32 %v611_v26, %v198_v54  ;;  %v369_v6 = vmul.f32 %v619_v35, %v336_v42  ;;  %v338_v21 = vld [vmem:[#allocation2 + $0x42] sm:$0xff] }
  0x20   : > { %v257_v60 = vadd.f32 %v249_v53, %v237_v52  ;;  %v238_v2 = vadd.f32 %v230_v59, %v210_v58  ;;  %v389_v7 = vmul.f32 %v622_v39, %v337_v57  ;;  %v199_v8 = vld [vmem:[#allocation2 + $0x50] sm:$0xff]  ;;  %v211_v9 = vmul.f32 %v601_v19, %v197_v43  ;;  %v200_v27 = vld [vmem:[#allocation2 + $0x60] sm:$0xff] }
  0x21   : > { %v286_v0 = vadd.f32 %v278_v41, %v256_v55  ;;  %v280_v12 = vmul.f32 %v608_v24, %v266_v37  ;;  %v231_v13 = vmul.f32 %v606_v23, %v198_v54  ;;  %v300_v15 = vmul.f32 %v613_v28, %v267_v49  ;;  %v269_v40 = vld [vmem:[#allocation2 + $0x51] sm:$0xff] }
  0x22   : > { %v287_v5 = vadd.f32 %v279_v61, %v257_v60  ;;  %v258_v11 = vadd.f32 %v250_v3, %v238_v2  ;;  %v320_v16 = vmul.f32 %v617_v34, %v268_v4  ;;  %v350_v17 = vmul.f32 %v615_v30, %v336_v42  ;;  %v201_v61 = vld [vmem:[#allocation2 + $0x70] sm:$0xff] }
  0x23   : > { %v306_v10 = vadd.f32 %v298_v47, %v286_v0  ;;  %v239_v22 = vadd.f32 %v231_v13, %v211_v9  ;;  %v251_v25 = vmul.f32 %v611_v26, %v199_v8  ;;  %v370_v31 = vmul.f32 %v619_v35, %v337_v57  ;;  %v339_v3 = vld [vmem:[#allocation2 + $0x52] sm:$0xff] }
  0x24   : > { %v307_v14 = vadd.f32 %v299_v62, %v287_v5  ;;  %v288_v20 = vadd.f32 %v280_v12, %v258_v11  ;;  %v281_v32 = vmul.f32 %v608_v24, %v267_v49  ;;  %v212_v33 = vmul.f32 %v601_v19, %v198_v54  ;;  %v270_v62 = vld [vmem:[#allocation2 + $0x61] sm:$0xff]  ;;  %v203_v5 = vld [vmem:[#allocation2 + $0x90] sm:$0xff] }
  0x25   : > { %v326_v18 = vadd.f32 %v318_v50, %v306_v10  ;;  %v259_v38 = vadd.f32 %v251_v25, %v239_v22  ;;  %v232_v41 = vmul.f32 %v606_v23, %v199_v8  ;;  %v390_v43 = vmul.f32 %v622_v39, %v338_v21 }
  0x26   : > { %v327_v29 = vadd.f32 %v319_v63, %v307_v14  ;;  %v308_v37 = vadd.f32 %v300_v15, %v288_v20  ;;  %v301_v44 = vmul.f32 %v613_v28, %v268_v4  ;;  %v252_v45 = vmul.f32 %v611_v26, %v200_v27  ;;  %v340_v15 = vld [vmem:[#allocation2 + $0x62] sm:$0xff] }
  0x27   : > { %v356_v36 = vadd.f32 %v348_v48, %v326_v18  ;;  %v289_v50 = vadd.f32 %v281_v32, %v259_v38  ;;  %v240_v49 = vadd.f32 %v232_v41, %v212_v33  ;;  %v321_v48 = vmul.f32 %v617_v34, %v269_v40  ;;  %v202_v32 = vld [vmem:[#allocation2 + $0x80] sm:$0xff] }
  0x28   : > { %v357_v42 = vadd.f32 %v349_v1, %v327_v29  ;;  %v328_v47 = vadd.f32 %v320_v16, %v308_v37  ;;  %v351_v53 = vmul.f32 %v615_v30, %v337_v57  ;;  %v282_v54 = vmul.f32 %v608_v24, %v268_v4 }
  0x29   : > { %v376_v46 = vadd.f32 %v368_v51, %v356_v36  ;;  %v309_v59 = vadd.f32 %v301_v44, %v289_v50  ;;  %v260_v60 = vadd.f32 %v252_v45, %v240_v49  ;;  %v302_v63 = vmul.f32 %v613_v28, %v269_v40 }
  0x2a   : > { %v377_v52 = vadd.f32 %v369_v6, %v357_v42  ;;  %v358_v58 = vadd.f32 %v350_v17, %v328_v47  ;;  %v213_v57 = vmul.f32 %v601_v19, %v199_v8  ;;  %v233_v0 = vmul.f32 %v606_v23, %v200_v27 }
  0x2b   : > { %v396_v55 = vadd.f32 %v388_v56, %v376_v46  ;;  %v329_v2 = vadd.f32 %v321_v48, %v309_v59  ;;  %v290_v4 = vadd.f32 %v282_v54, %v260_v60  ;;  %v371_v9 = vmul.f32 %v619_v35, %v338_v21  ;;  %v341_v48 = vld [vmem:[#allocation2 + $0x72] sm:$0xff]  ;;  %v272_v54 = vld [vmem:[#allocation2 + $0x81] sm:$0xff] }
  0x2c   : > { %v397_v51 = vadd.f32 %v389_v7, %v377_v52  ;;  %v378_v1 = vadd.f32 %v370_v31, %v358_v58  ;;  %v241_v10 = vadd.f32 %v233_v0, %v213_v57  ;;  %v253_v7 = vmul.f32 %v611_v26, %v201_v61  ;;  %v271_v31 = vld [vmem:[#allocation2 + $0x71] sm:$0xff] }
  0x2d   : > { %v404_v56 = vpack.c.bf16 %v396_v55, %v396_v55  ;;  %v359_v12 = vadd.f32 %v351_v53, %v329_v2  ;;  %v310_v8 = vadd.f32 %v302_v63, %v290_v4  ;;  %v322_v13 = vmul.f32 %v617_v34, %v270_v62 }
  0x2e   : > { %v405_v6 = vpack.c.bf16 %v397_v51, %v397_v51  ;;  %v398_v11 = vadd.f32 %v390_v43, %v378_v1  ;;  %v391_v14 = vmul.f32 %v622_v39, %v339_v3  ;;  %v261_v16 = vadd.f32 %v253_v7, %v241_v10  ;;  %v342_v10 = vld [vmem:[#allocation2 + $0x82] sm:$0xff] }
  0x2f   : > { %413 = vst.msk [vmem:[%s665_s24] sm:$0xf] %vm412_vm2, %v404_v56  ;;  %v283_v17 = vmul.f32 %v608_v24, %v269_v40  ;;  %v255_v18 = vmul.f32 %v611_v26, %v203_v5  ;;  %v379_v22 = vadd.f32 %v371_v9, %v359_v12  ;;  %v330_v25 = vadd.f32 %v322_v13, %v310_v8 }
  0x30   : > { %414 = vst.msk [vmem:[%s665_s24 + $0x4] sm:$0xf] %vm412_vm2, %v405_v6  ;;  %v406_v20 = vpack.c.bf16 %v398_v11, %v398_v11  ;;  %v352_v29 = vmul.f32 %v615_v30, %v338_v21  ;;  %v303_v36 = vmul.f32 %v613_v28, %v270_v62  ;;  %v214_v37 = vmul.f32 %v601_v19, %v200_v27 }
  0x31   : > { %v291_v33 = vadd.f32 %v283_v17, %v261_v16  ;;  %v234_v38 = vmul.f32 %v606_v23, %v201_v61  ;;  %v399_v41 = vadd.f32 %v391_v14, %v379_v22  ;;  %v372_v42 = vmul.f32 %v619_v35, %v339_v3  ;;  %v343_v17 = vld [vmem:[#allocation2 + $0x92] sm:$0xff] }
  0x32   : > { %415 = vst.msk [vmem:[%s665_s24 + $0x8] sm:$0xf] %vm412_vm2, %v406_v20  ;;  %v360_v40 = vadd.f32 %v352_v29, %v330_v25  ;;  %v392_v43 = vmul.f32 %v622_v39, %v340_v15  ;;  %v323_v21 = vmul.f32 %v617_v34, %v271_v31  ;;  %v254_v46 = vmul.f32 %v611_v26, %v202_v32 }
  0x33   : > { %v311_v44 = vadd.f32 %v303_v36, %v291_v33  ;;  %v242_v45 = vadd.f32 %v234_v38, %v214_v37  ;;  %v407_v47 = vpack.c.bf16 %v399_v41, %v399_v41  ;;  %v353_v27 = vmul.f32 %v615_v30, %v339_v3 }
  0x34   : > { %v380_v50 = vadd.f32 %v372_v42, %v360_v40  ;;  %v284_v49 = vmul.f32 %v608_v24, %v270_v62  ;;  %v215_v55 = vmul.f32 %v601_v19, %v201_v61  ;;  %v235_v58 = vmul.f32 %v606_v23, %v202_v32  ;;  %v273_v61 = vld [vmem:[#allocation2 + $0x91] sm:$0xff] }
  0x35   : > { %v331_v52 = vadd.f32 %v323_v21, %v311_v44  ;;  %v262_v53 = vadd.f32 %v254_v46, %v242_v45  ;;  %416 = vst.msk [vmem:[%s665_s24 + $0xc] sm:$0xf] %vm412_vm2, %v407_v47  ;;  %v373_v26 = vmul.f32 %v619_v35, %v340_v15  ;;  %v304_v63 = vmul.f32 %v613_v28, %v271_v31 }
  0x36   : > { %v400_v59 = vadd.f32 %v392_v43, %v380_v50  ;;  %v243_v57 = vadd.f32 %v235_v58, %v215_v55  ;;  %v393_v0 = vmul.f32 %v622_v39, %v341_v48  ;;  %v324_v56 = vmul.f32 %v617_v34, %v272_v54 }
  0x37   : > { %v361_v60 = vadd.f32 %v353_v27, %v331_v52  ;;  %v292_v51 = vadd.f32 %v284_v49, %v262_v53  ;;  %v285_v2 = vmul.f32 %v608_v24, %v271_v31  ;;  %v354_v3 = vmul.f32 %v615_v30, %v340_v15 }
  0x38   : > { %v408_v62 = vpack.c.bf16 %v400_v59, %v400_v59  ;;  %v263_v23 = vadd.f32 %v255_v18, %v243_v57  ;;  %v305_v9 = vmul.f32 %v613_v28, %v272_v54  ;;  %v325_v7 = vmul.f32 %v617_v34, %v273_v61 }
  0x39   : > { %v381_v1 = vadd.f32 %v373_v26, %v361_v60  ;;  %v312_v19 = vadd.f32 %v304_v63, %v292_v51  ;;  %v374_v8 = vmul.f32 %v619_v35, %v341_v48  ;;  %v394_v14 = vmul.f32 %v622_v39, %v342_v10 }
  0x3a   : > { %417 = vst.msk [vmem:[%s665_s24 + $0x10] sm:$0xf] %vm412_vm2, %v408_v62  ;;  %v293_v6 = vadd.f32 %v285_v2, %v263_v23  ;;  %v355_v16 = vmul.f32 %v615_v30, %v341_v48  ;;  %v375_v34 = vmul.f32 %v619_v35, %v342_v10  ;;  %v395_v25 = vmul.f32 %v622_v39, %v343_v17 }
  0x3b   : > { %v401_v4 = vadd.f32 %v393_v0, %v381_v1  ;;  %v332_v5 = vadd.f32 %v324_v56, %v312_v19 }
  0x3c   : > { %v313_v13 = vadd.f32 %v305_v9, %v293_v6 }
  0x3d   : > { %v409_v11 = vpack.c.bf16 %v401_v4, %v401_v4  ;;  %v362_v12 = vadd.f32 %v354_v3, %v332_v5 }
  0x3e   : > { %v333_v15 = vadd.f32 %v325_v7, %v313_v13 }
  0x3f   : > { %418 = vst.msk [vmem:[%s665_s24 + $0x14] sm:$0xf] %vm412_vm2, %v409_v11  ;;  %v382_v24 = vadd.f32 %v374_v8, %v362_v12 }
  0x40   : > { %v363_v18 = vadd.f32 %v355_v16, %v333_v15 }
  0x41   : > { %v402_v28 = vadd.f32 %v394_v14, %v382_v24 }
  0x42   : > { %v383_v22 = vadd.f32 %v375_v34, %v363_v18 }
  0x43   : > { %v410_v20 = vpack.c.bf16 %v402_v28, %v402_v28 }
  0x44   : > { %v403_v29 = vadd.f32 %v395_v25, %v383_v22 }
  0x45   : > { %419 = vst.msk [vmem:[%s665_s24 + $0x18] sm:$0xf] %vm412_vm2, %v410_v20 }
  0x46   : > { %v411_v31 = vpack.c.bf16 %v403_v29, %v403_v29 }
  0x48   : > { %420 = vst.msk [vmem:[%s665_s24 + $0x1c] sm:$0xf] %vm412_vm2, %v411_v31 }
  0x49 PF: > { %s12_s9 = sadd.s32 1, %s523_s9  }
  0x4a   : > { %p9_p4 = scmp.ge.s32.totalorder %s12_s9, 4  }
  0x4c   :  { %11 = sbr.rel (!%p9_p4) target bundleno = 1 (0x1), region = 59 }

// kernel: sparse_attention_layer_block.11
= control target key start
LH: loop header
LB: loop body
LE: loop exit
PB: predicated region body
PF: predicated region fallthrough
CT: control target
= control target key end

     0   :  { %8 = vsyncpa [#allocation3], 0  ;;  %s873_s0 = inlined_call_operand.vmem [shape: bf16[128,96], index: 0, kind: input, shape index: {}]   ;;  %s874_s1 = inlined_call_operand.vmem [shape: f32[128,24], index: 1, kind: input, shape index: {}]   ;;  %s875_s2 = inlined_call_operand.vmem [shape: bf16[48,24], index: 2, kind: input, shape index: {}]   ;;  %s876_s3 = inlined_call_operand.hbm [shape: f32[128,24], index: 3, kind: output, shape index: {}]  }
   0x1   :  { %10 = vsyncpa [#allocation3 + $0x1], 0  ;;  %s739_s12 = smov 0   ;;  %s741_s13 = smov 0  }
   0x2   :  { %s743_s14 = smov 0   ;;  %s745_s15 = smov 0  }
   0x3 LB: > { %s760_s16 = sadd.s32 4294967295, %s713_s15   ;;  %s502_s17 = sadd.s32 4294967294, %s713_s15   ;;  %s713_s15 = sphi %s745_s15, %s882_s15   ;;  %s709_s14 = sphi %s743_s14, %s881_s14   ;;  %s705_s13 = sphi %s741_s13, %s880_s13   ;;  %s701_s12 = sphi %s739_s12, %s879_s12  }
   0x4   : > { %s764_s18 = sadd.s32 1, %s713_s15   ;;  %s96_s19 = sadd.s32 1, %s709_s14 }
   0x5   : > { %s93_s20 = ssub.s32 %s713_s15, %s764_s18  ;;  %p106_p0 = scmp.ne.s32.totalorder %s709_s14, %s705_s13 }
   0x6   : > { %p94_p1 = scmp.eq.s32.totalorder %s93_s20, 0  ;;  %p107_p2 = scmp.eq.s32.totalorder %s760_s16, 1 }
   0x7   : > { %p112_p3 = scmp.ne.s32.totalorder %s705_s13, %s701_s12  ;;  %p113_p4 = scmp.eq.s32.totalorder %s502_s17, 1 }
   0x8   : > { %s775_s21 = scalar_select %p94_p1, %s709_s14, %s96_s19  }
   0x9   : > { %p777_p5 = por %p107_p2, %p106_p0  ;;  %p781_p6 = por %p113_p4, %p112_p3 }
   0xa   : > { %p505_p7 = scmp.ge.s32.totalorder %s713_s15, 1  ;;  %p152_p8 = scmp.lt.s32.totalorder %s713_s15, 3 }
   0xc   : > { %p153_p9 = pnand %p505_p7, %p152_p8 }
   0xd   : > { %s507_s24 = sshll.u32 (!%p153_p9), %s760_s16, 3  ;;  %v632_v0 = vld [vmem:[%s875_s2] sm:$0xff] (!%p153_p9)   ;;  %v633_v1 = vld [vmem:[%s875_s2 + $0x8] sm:$0xff] (!%p153_p9)   ;;  %v634_v2 = vld [vmem:[%s875_s2 + $0x10] sm:$0xff] (!%p153_p9)   ;;  %s715_s8 = smov (!%p153_p9), 80   ;;  %vm327_vm0 = vcmask (!%p153_p9), 392192  }
   0xe   : > { %156 = sbr.rel (%p153_p9) target bundleno = 387 (0x183), region = 32  ;;  %p182_p10 = scmp.lt.s32.totalorder (!%p153_p9), %s507_s24, 15  ;;  %550 = vmatprep.subr.bf16.mxu0 (!%p153_p9), %v632_v0  ;;  %564 = vmatprep.subr.bf16.mxu1 (!%p153_p9), %v632_v0  ;;  %vm405_vm1 = vcmask (!%p153_p9), 195584  }
   0xf   : > { %551 = vmatpush3.bf16.msra.mxu0 (!%p153_p9), %v632_v0  ;;  %567 = vmatpush3.bf16.msra.mxu1 (!%p153_p9), %v632_v0  ;;  %s178_s10 = sand.u32 (!%p153_p9), 1, %s705_s13   ;;  %s523_s25 = sshll.u32 (!%p153_p9), %s760_s16, 10 }
  0x10   : > { %552 = vmatprep.subr.bf16.mxu0 (!%p153_p9), %v633_v1  ;;  %565 = vmatprep.subr.bf16.mxu1 (!%p153_p9), %v633_v1  ;;  %s506_s20 = sshll.u32 (!%p153_p9), %s178_s10, 6  ;;  %s823_s16 = scalar_lea.hbm (!%p153_p9), %s876_s3, %s523_s25 }
  0x11   : > { %s716_s4 = smov (!%p153_p9), [#allocation2]  }
  0x12   : > { %s655_s5 = sshll.u32 (!%p153_p9), %s716_s4, 4  ;;  %s656_s5 = int_to_ptr.vmem [resolvable:$false] %s655_s5 }
  0x13   : > { %553 = vmatpush3.bf16.msra.mxu0 (!%p153_p9), %v633_v1  ;;  %568 = vmatpush3.bf16.msra.mxu1 (!%p153_p9), %v633_v1  ;;  %s657_s6 = scalar_lea.vmem (!%p153_p9), %s656_s5, 2048 }
  0x14   : > { %554 = vmatprep.subr.bf16.mxu0 (!%p153_p9), %v634_v2  ;;  %566 = vmatprep.subr.bf16.mxu1 (!%p153_p9), %v634_v2 }
  0x15   : > { %s884_s24 = smov (!%p182_p10, %s507_s24), 15 }
  0x16   : > { %s508_s29 = sshll.u32 %s884_s24, 2  ;;  %s510_s9 = sshll.u32 %s884_s24, 3 }
  0x17   : > { %s185_s7 = scalar_lea.vmem %s873_s0, %s508_s29  ;;  %555 = vmatpush3.bf16.msra.mxu0 %v634_v2  ;;  %569 = vmatpush3.bf16.msra.mxu1 %v634_v2  ;;  %s191_s19 = scalar_lea.vmem %s874_s1, %s510_s9 }
  0x18   : > { %v525_v3 = vld [vmem:[%s185_s7] sm:$0xff]   ;;  %v540_v4 = vld [vmem:[%s185_s7 + $0x8] sm:$0xff]   ;;  %v541_v5 = vld [vmem:[%s185_s7 + $0x10] sm:$0xff]   ;;  %s180_s24 = scalar_lea.vmem [#allocation2], %s506_s20  ;;  %s832_s29 = scalar_lea.sflag [#allocation3], %s178_s10 }
  0x19   : > { %v526_v6 = vunpack.c.l.bf16 %v525_v3  ;;  %v527_v7 = vunpack.c.h.bf16 %v525_v3  ;;  %v530_v8 = vunpack.c.l.bf16 %v540_v4  ;;  %v531_v9 = vunpack.c.h.bf16 %v540_v4  ;;  %v542_v10 = vld [vmem:[%s185_s7 + $0x18] sm:$0xff]   ;;  %s428_s26 = sshll.u32 %s180_s24, 4  ;;  %s825_s26 = int_to_ptr.vmem [resolvable:$true] %s428_s26 }
  0x1a   : > { %v534_v11 = vunpack.c.l.bf16 %v541_v5  ;;  %v535_v12 = vunpack.c.h.bf16 %v541_v5  ;;  %v538_v13 = vunpack.c.l.bf16 %v542_v10  ;;  %v539_v14 = vunpack.c.h.bf16 %v542_v10  ;;  %s651_s30 = scalar_lea.vmem %s825_s26, 1024  ;;  %p658_p0 = scmp.lt.s32.totalorder %s825_s26, %s656_s5 }
  0x1b   : > { %v612_v15 = vpack.i.bf16 %v527_v7, %v526_v6  ;;  %v622_v16 = vpack.i.bf16 %v531_v9, %v530_v8  ;;  %v222_v19 = vmul.f32 0.70710677, %v531_v9  ;;  %v219_v20 = vmul.f32 0.70710677, %v526_v6  ;;  %p652_p11 = scmp.ne.s32.totalorder %s825_s26, %s651_s30  ;;  %p659_p1 = scmp.lt.s32.totalorder %s657_s6, %s651_s30 }
  0x1c   : > { %v617_v17 = vpack.i.bf16 %v535_v12, %v534_v11  ;;  %v627_v18 = vpack.i.bf16 %v539_v14, %v538_v13  ;;  %v220_v21 = vmul.f32 0.70710677, %v527_v7  ;;  %v221_v22 = vmul.f32 0.70710677, %v530_v8 }
  0x1d   : > { %613 = vrot.lane.b32.xlu0 %v612_v15, %s715_s8  ;;  %623 = vrot.lane.b32.xlu1 %v622_v16, %s715_s8  ;;  %635 = verf.f32 %v222_v19  ;;  %v223_v23 = vmul.f32 0.70710677, %v534_v11  ;;  %v224_v24 = vmul.f32 0.70710677, %v535_v12  ;;  %v225_v25 = vmul.f32 0.70710677, %v538_v13  ;;  %p653_p12 = pnand %p652_p11, %p777_p5  ;;  %p660_p2 = por %p659_p1, %p658_p0 }
  0x1e   : > { %637 = verf.f32 %v219_v20  ;;  %v226_v26 = vmul.f32 0.70710677, %v539_v14  ;;  %v211_v33 = vmul.f32 0.5, %v526_v6  ;;  %v212_v34 = vmul.f32 0.5, %v527_v7  ;;  %v303_v19 = vld [vmem:[%s191_s19 + $0x10] sm:$0xff]  ;;  %v301_v20 = vld [vmem:[%s191_s19] sm:$0xff] }
  0x1f   : > { %639 = verf.f32 %v220_v21  ;;  %v214_v38 = vmul.f32 0.5, %v531_v9  ;;  %v213_v40 = vmul.f32 0.5, %v530_v8  ;;  %v215_v43 = vmul.f32 0.5, %v534_v11  ;;  %p654_p13 = pneg %p653_p12 }
  0x20   : > { %641 = verf.f32 %v221_v22  ;;  %v216_v44 = vmul.f32 0.5, %v535_v12  ;;  %v217_v45 = vmul.f32 0.5, %v538_v13  ;;  %v218_v46 = vmul.f32 0.5, %v539_v14  ;;  %v304_v22 = vld [vmem:[%s191_s19 + $0x18] sm:$0xff] }
  0x21   : > { %618 = vrot.lane.b32.xlu0 %v617_v17, %s715_s8  ;;  %628 = vrot.lane.b32.xlu1 %v627_v18, %s715_s8  ;;  %643 = verf.f32 %v223_v23  ;;  %p661_p3 = pnand %p660_p2, %p654_p13 }
  0x22   : > { %645 = verf.f32 %v224_v24 }
  0x23   : > { %647 = verf.f32 %v225_v25  ;;  %v302_v25 = vld [vmem:[%s191_s19 + $0x8] sm:$0xff] }
  0x24   : > { %649 = verf.f32 %v226_v26 }
  0x27   : > { %v636_v27 = vpop.eup %635 }
  0x28   : > { %v638_v28 = vpop.eup %637  ;;  %v238_v39 = vadd.f32 1.0, %v636_v27 }
  0x29   : > { %v640_v29 = vpop.eup %639  ;;  %v235_v35 = vadd.f32 1.0, %v638_v28  ;;  %v307_v28 = vld [vmem:[%s191_s19 + $0x30] sm:$0xff] }
  0x2a   : > { %v642_v30 = vpop.eup %641  ;;  %v236_v36 = vadd.f32 1.0, %v640_v29  ;;  %v246_v52 = vmul.f32 %v238_v39, %v214_v38 }
  0x2b   : > { %v644_v31 = vpop.eup %643  ;;  %v237_v41 = vadd.f32 1.0, %v642_v30  ;;  %v243_v49 = vmul.f32 %v235_v35, %v211_v33 }
  0x2c   : > { %v646_v32 = vpop.eup %645  ;;  %v239_v47 = vadd.f32 1.0, %v644_v31  ;;  %v244_v50 = vmul.f32 %v236_v36, %v212_v34  ;;  %v305_v31 = vld [vmem:[%s191_s19 + $0x20] sm:$0xff]  ;;  %v308_v34 = vld [vmem:[%s191_s19 + $0x38] sm:$0xff] }
  0x2d   : > { %v648_v37 = vpop.eup %647  ;;  %v240_v48 = vadd.f32 1.0, %v646_v32  ;;  %v245_v53 = vmul.f32 %v237_v41, %v213_v40 }
  0x2e   : > { %v650_v42 = vpop.eup %649  ;;  %v241_v54 = vadd.f32 1.0, %v648_v37  ;;  %v247_v61 = vmul.f32 %v239_v47, %v215_v43  ;;  %v306_v37 = vld [vmem:[%s191_s19 + $0x28] sm:$0xff] }
  0x2f   : > { %v242_v55 = vadd.f32 1.0, %v650_v42  ;;  %v248_v62 = vmul.f32 %v240_v48, %v216_v44 }
  0x30   : > { %v249_v4 = vmul.f32 %v241_v54, %v217_v45 }
  0x31   : > { %v250_v5 = vmul.f32 %v242_v55, %v218_v46 }
  0x8f   : > { %v614_v51 = vpop.permute.xlu0 %613  ;;  %v624_v58 = vpop.permute.xlu1 %623 }
  0x90   : > { %v616_v56 = vunpack.i.h.bf16 %v614_v51  ;;  %v615_v57 = vunpack.i.l.bf16 %v614_v51  ;;  %v626_v59 = vunpack.i.h.bf16 %v624_v58  ;;  %v625_v60 = vunpack.i.l.bf16 %v624_v58 }
  0x92   : > { %v283_v63 = vmul.f32 %v615_v57, %v243_v49  ;;  %v284_v0 = vmul.f32 %v616_v56, %v244_v50  ;;  %v286_v1 = vmul.f32 %v626_v59, %v246_v52  ;;  %v285_v2 = vmul.f32 %v625_v60, %v245_v53 }
  0x93   : > { %v619_v3 = vpop.permute.xlu0 %618  ;;  %v629_v8 = vpop.permute.xlu1 %628 }
  0x94   : > { %v621_v6 = vunpack.i.h.bf16 %v619_v3  ;;  %v620_v7 = vunpack.i.l.bf16 %v619_v3  ;;  %v291_v9 = vpack.c.bf16 %v284_v0, %v283_v63  ;;  %v292_v10 = vpack.c.bf16 %v286_v1, %v285_v2 }
  0x95   : > { %v631_v11 = vunpack.i.h.bf16 %v629_v8  ;;  %v630_v12 = vunpack.i.l.bf16 %v629_v8 }
  0x96   : > { %v288_v13 = vmul.f32 %v621_v6, %v248_v62  ;;  %v287_v14 = vmul.f32 %v620_v7, %v247_v61  ;;  %556 = vmatprep.mubr.msk.bf16.mxu0 %vm327_vm0, %v291_v9 }
  0x97   : > { %v290_v15 = vmul.f32 %v631_v11, %v250_v5  ;;  %v289_v16 = vmul.f32 %v630_v12, %v249_v4  ;;  %557 = vmatmul.mubr.msk.bf16.vlgmr.msra.gmra.mrb[0].mxu0 %vm327_vm0, %v292_v10 }
  0x98   : > { %v293_v17 = vpack.c.bf16 %v288_v13, %v287_v14 }
  0x99   : > { %v294_v18 = vpack.c.bf16 %v290_v15, %v289_v16 }
  0x9a   : > { %560 = vmatprep.mubr.msk.bf16.mxu1 %vm327_vm0, %v293_v17 }
  0x9b   : > { %561 = vmatmul.mubr.msk.bf16.vlgmr.msra.gmra.mrb[0].mxu1 %vm327_vm0, %v294_v18 }
 0x16a   : > { %v558_v21 = vpop.f32.mrb[0].mxu0 }
 0x16b   : > { %v383_v23 = vadd.f32 %v558_v21, %v303_v19  ;;  %v374_v24 = vpop.f32.mrb[1].mxu0 }
 0x16c   : > { %v375_v26 = vadd.f32 %v374_v24, %v301_v20  ;;  %v559_v27 = vpop.f32.mrb[2].mxu0 }
 0x16d   : > { %408 = vst.msk [vmem:[%s180_s24 + $0x10] sm:$0xff] %vm405_vm1, %v383_v23  ;;  %v386_v29 = vadd.f32 %v559_v27, %v304_v22  ;;  %v377_v30 = vpop.f32.mrb[3].mxu0 }
 0x16e   : > { %406 = vst.msk [vmem:[%s180_s24] sm:$0xff] %vm405_vm1, %v375_v26  ;;  %v378_v32 = vadd.f32 %v377_v30, %v302_v25  ;;  %v562_v33 = vpop.f32.mrb[0].mxu1 }
 0x16f   : > { %409 = vst.msk [vmem:[%s180_s24 + $0x18] sm:$0xff] %vm405_vm1, %v386_v29  ;;  %v399_v35 = vadd.f32 %v562_v33, %v307_v28  ;;  %v390_v36 = vpop.f32.mrb[1].mxu1 }
 0x170   : > { %407 = vst.msk [vmem:[%s180_s24 + $0x8] sm:$0xff] %vm405_vm1, %v378_v32  ;;  %v391_v38 = vadd.f32 %v390_v36, %v305_v31  ;;  %v563_v39 = vpop.f32.mrb[2].mxu1 }
 0x171   : > { %412 = vst.msk [vmem:[%s180_s24 + $0x30] sm:$0xff] %vm405_vm1, %v399_v35  ;;  %v402_v40 = vadd.f32 %v563_v39, %v308_v34  ;;  %v393_v41 = vpop.f32.mrb[3].mxu1 }
 0x172   : > { %410 = vst.msk [vmem:[%s180_s24 + $0x20] sm:$0xff] %vm405_vm1, %v391_v38  ;;  %v394_v42 = vadd.f32 %v393_v41, %v306_v37 }
 0x173   : > { %413 = vst.msk [vmem:[%s180_s24 + $0x38] sm:$0xff] %vm405_vm1, %v402_v40 }
 0x174   : > { %411 = vst.msk [vmem:[%s180_s24 + $0x28] sm:$0xff] %vm405_vm1, %v394_v42 }
 0x175   : > { %664 = shalt.err (!%p661_p3)
}
 0x176   : > { %s665_s7 = scalar_lea.hbm %s823_s16, 1024  ;;  %s669_s10 = scalar_lea.hbm %s876_s3, 2048 }
 0x177   : > { %p666_p4 = scmp.ne.s32.totalorder %s823_s16, %s665_s7  ;;  %p670_p9 = scmp.lt.u32.totalorder %s823_s16, %s876_s3 }
 0x178   : > { %p671_p10 = scmp.lt.u32.totalorder %s669_s10, %s665_s7  ;;  %p673_p12 = scmp.lt.u32.totalorder %s665_s7, %s823_s16 }
 0x179   : > { %p667_p7 = pnand %p666_p4, %p777_p5 }
 0x17a   : > { %p672_p11 = por %p671_p10, %p670_p9 }
 0x17b   : > { %p668_p8 = pneg %p667_p7 }
 0x17c   : > { %p674_p13 = por %p673_p12, %p672_p11 }
 0x17e   : > { %p675_p0 = pnand %p674_p13, %p668_p8 }
 0x180   : > { %678 = shalt.err (!%p675_p0)
}
 0x181   : > { %s717_s19 = smov 128   ;;  %s718_s20 = smov 8  }
 0x182   : > { %570 = dma.vmem_to_hbm [thread:$0]  (%p777_p5), %s825_s26, 1024, %s823_s16, %s832_s29, %s717_s19, %s717_s19, %s718_s20  }
 0x183 PF: > { %p576_p1 = scmp.ge.s32.totalorder %s713_s15, 2  ;;  %s443_s24 = sand.u32 1, %s701_s12  }
 0x184   : > { %s444_s25 = scalar_lea.sflag [#allocation3], %s443_s24 }
 0x185   : > { %p573_p2 = pnand %p576_p1, %p781_p6 }
 0x187   : > { %696 = dma.done.wait (!%p573_p2), %s444_s25, 1024  }
 0x188   : > { %698 = vsyncadd (!%p573_p2), %s444_s25, 4294966272  ;;  %p13_p3 = scmp.ge.s32.totalorder %s764_s18, 4   ;;  %s879_s12 = smov %s705_s13 }
 0x189   : > { %s880_s13 = smov %s709_s14  ;;  %s881_s14 = smov %s775_s21 }
 0x18a   : > { %s882_s15 = smov %s764_s18  ;;  %15 = sbr.rel (!%p13_p3) target bundleno = 3 (0x3), region = 70 }
 0x191   :  { %449 = vsyncpa [#allocation3], 1 }
 0x192   :  { %451 = vsyncpa [#allocation3 + $0x1], 1 }

</bundles_post_ra>
